<compile_context>
chip_gen: v7x
topology: tpu7x:2x2x1
jax: 0.10.0
libtpu: 0.0.40
codegen_flags: <defaults>
</compile_context>

<pallas_src>
import jax
import jax.numpy as jnp
from jax import lax
from jax.experimental import pallas as pl
from jax.experimental.pallas import tpu as pltpu


def _conv_block_kernel(x_ref, w1_ref, b1_ref, w2_ref, b2_ref, o_ref,
                       xp_ref, yp_ref, patch_ref):
    """Fused (conv3x3 reflect-pad + BN + LeakyReLU) x 2 for one batch element.

    x_ref    : (1, H, W, Cin)           unpadded input tile
    w1_ref   : (9*Cin,  Cmid)           stage-1 weights, BN1 scale folded in
    b1_ref   : (1, Cmid)                stage-1 folded BN bias
    w2_ref   : (9*Cmid, Cout)           stage-2 weights, BN2 scale folded in
    b2_ref   : (1, Cout)                stage-2 folded BN bias
    o_ref    : (1, H, W, Cout)
    xp_ref   : (H+2, W+2, Cin)          VMEM scratch: reflect-padded input
    yp_ref   : (H+2, W+2, Cmid)         VMEM scratch: reflect-padded stage-1 out
    patch_ref: (H, W, 9*max(Cin,Cmid))  VMEM scratch: shared im2col patches
    """
    _, H, W, _ = o_ref.shape

    def reflect_fill(dst_ref, src):
        # src: (H, W, C) f32 value; dst: (H+2, W+2, C) scratch ref.
        # PyTorch 'reflect' pad of 1: row -1 -> row 1, row H -> row H-2, etc.
        dst_ref[1:H + 1, 1:W + 1, :] = src
        dst_ref[0:1, 1:W + 1, :] = src[1:2]
        dst_ref[H + 1:H + 2, 1:W + 1, :] = src[H - 2:H - 1]
        # Columns (read from the already row-padded buffer -> corners correct).
        dst_ref[:, 0:1, :] = dst_ref[:, 2:3, :]
        dst_ref[:, W + 1:W + 2, :] = dst_ref[:, W - 1:W, :]

    def conv_stage(pad_ref, w_ref, b_ref):
        # im2col gather once: 9 shifted windows packed along the lane axis of
        # the shared patch scratch (only the first 9*C lanes are used).
        C = pad_ref.shape[-1]
        for kh in range(3):
            for kw in range(3):
                k = kh * 3 + kw
                patch_ref[:, :, k * C:(k + 1) * C] = \
                    pad_ref[kh:kh + H, kw:kw + W, :]
        # Single MXU matmul with contraction K = 9*C, f32 accumulation.
        y = jnp.einsum("hwk,ko->hwo", patch_ref[:, :, :9 * C], w_ref[...],
                       preferred_element_type=jnp.float32)
        y = y + b_ref[0]                                   # folded BN bias
        return jnp.where(y >= 0, y, jnp.float32(0.01) * y)  # LeakyReLU(0.01)

    reflect_fill(xp_ref, x_ref[0].astype(jnp.float32))
    y1 = conv_stage(xp_ref, w1_ref, b1_ref)   # (H, W, Cmid), stays in VMEM
    reflect_fill(yp_ref, y1)
    y2 = conv_stage(yp_ref, w2_ref, b2_ref)   # (H, W, Cout)
    o_ref[0] = y2.astype(o_ref.dtype)


def _fold_bn_into_conv(w_hwio, gamma, beta, mean, var, eps):
    """Fold eval-mode BN affine into the conv weights (f32). Returns (w, bias)."""
    kh, kw, cin, cout = w_hwio.shape
    scale = gamma / jnp.sqrt(var + eps)                        # (Cout,)
    w = (w_hwio.astype(jnp.float32).reshape(kh * kw * cin, cout)
         * scale[None, :])                                     # (9*Cin, Cout)
    bias = (beta - mean * scale).reshape(1, cout).astype(jnp.float32)
    return w, bias


def conv_block_nhwc(x_nhwc, params, eps=1e-5):
    """Full fused Conv_Block on an NHWC input."""
    N, H, W, Cin = x_nhwc.shape
    Cmid = params["w1"].shape[-1]
    Cout = params["w2"].shape[-1]
    assert H >= 2 and W >= 2, "reflect pad=1 requires H, W >= 2"

    w1, c1 = _fold_bn_into_conv(params["w1"], params["g1"], params["b1"],
                                params["m1"], params["v1"], eps)
    w2, c2 = _fold_bn_into_conv(params["w2"], params["g2"], params["b2"],
                                params["m2"], params["v2"], eps)

    return pl.pallas_call(
        _conv_block_kernel,
        out_shape=jax.ShapeDtypeStruct((N, H, W, Cout), x_nhwc.dtype),
        grid=(N,),
        in_specs=[
            pl.BlockSpec((1, H, W, Cin), lambda n: (n, 0, 0, 0)),
            pl.BlockSpec((9 * Cin, Cmid), lambda n: (0, 0)),
            pl.BlockSpec((1, Cmid), lambda n: (0, 0)),
            pl.BlockSpec((9 * Cmid, Cout), lambda n: (0, 0)),
            pl.BlockSpec((1, Cout), lambda n: (0, 0)),
        ],
        out_specs=pl.BlockSpec((1, H, W, Cout), lambda n: (n, 0, 0, 0)),
        scratch_shapes=[
            pltpu.VMEM((H + 2, W + 2, Cin), jnp.float32),
            pltpu.VMEM((H + 2, W + 2, Cmid), jnp.float32),
            pltpu.VMEM((H, W, 9 * max(Cin, Cmid)), jnp.float32),  # shared patches
        ],
        compiler_params=pltpu.CompilerParams(
            dimension_semantics=("parallel",),
            vmem_limit_bytes=48 * 1024 * 1024,   # headroom under v7x's 64 MiB
        ),
    )(x_nhwc, w1, c1, w2, c2)


@jax.jit
def conv_block_forward(x_nchw, params):
    """Conv_Block.forward on NCHW input (PyTorch convention)."""
    x = jnp.transpose(x_nchw, (0, 2, 3, 1))      # NCHW -> NHWC (channels->lanes)
    y = conv_block_nhwc(x, params)
    return jnp.transpose(y, (0, 3, 1, 2))        # NHWC -> NCHW


def init_conv_block_params(key, in_channel, out_channel):
    """Deterministic synthetic parameters (conv in PyTorch OIHW, stored HWIO)."""
    ks = jax.random.split(key, 10)
    w1_oihw = 0.1 * jax.random.normal(
        ks[0], (out_channel, in_channel, 3, 3), jnp.float32)
    w2_oihw = 0.1 * jax.random.normal(
        ks[1], (out_channel, out_channel, 3, 3), jnp.float32)
    return {
        "w1": jnp.transpose(w1_oihw, (2, 3, 1, 0)),   # OIHW -> HWIO
        "w2": jnp.transpose(w2_oihw, (2, 3, 1, 0)),
        "g1": 1.0 + 0.1 * jax.random.normal(ks[2], (out_channel,), jnp.float32),
        "b1": 0.1 * jax.random.normal(ks[3], (out_channel,), jnp.float32),
        "m1": 0.05 * jax.random.normal(ks[6], (out_channel,), jnp.float32),
        "v1": 1.0 + 0.1 * jax.random.uniform(ks[7], (out_channel,), jnp.float32),
        "g2": 1.0 + 0.1 * jax.random.normal(ks[4], (out_channel,), jnp.float32),
        "b2": 0.1 * jax.random.normal(ks[5], (out_channel,), jnp.float32),
        "m2": 0.05 * jax.random.normal(ks[8], (out_channel,), jnp.float32),
        "v2": 1.0 + 0.1 * jax.random.uniform(ks[9], (out_channel,), jnp.float32),
    }


# ---------------------------------------------------------------------------
# Pure-JAX reference (in-script correctness check only).
# ---------------------------------------------------------------------------
def _ref_stage(x_nhwc, w_hwio, g, b, m, v, eps=1e-5):
    xp = jnp.pad(x_nhwc, ((0, 0), (1, 1), (1, 1), (0, 0)), mode="reflect")
    y = lax.conv_general_dilated(
        xp, w_hwio, window_strides=(1, 1), padding="VALID",
        dimension_numbers=("NHWC", "HWIO", "NHWC"))
    scale = g / jnp.sqrt(v + eps)
    y = y * scale + (b - m * scale)
    return jnp.where(y >= 0, y, 0.01 * y)


def conv_block_reference(x_nchw, params):
    x = jnp.transpose(x_nchw, (0, 2, 3, 1))
    y = _ref_stage(x, params["w1"], params["g1"], params["b1"],
                   params["m1"], params["v1"])
    y = _ref_stage(y, params["w2"], params["g2"], params["b2"],
                   params["m2"], params["v2"])
    return jnp.transpose(y, (0, 3, 1, 2))


if __name__ == "__main__":
    key = jax.random.PRNGKey(0)
    kx, kp = jax.random.split(key)

    N, Cin, Cout, H, W = 2, 4, 8, 16, 16
    x = jax.random.normal(kx, (N, Cin, H, W), jnp.float32)   # NCHW, like PyTorch
    params = init_conv_block_params(kp, Cin, Cout)

    out = jax.block_until_ready(conv_block_forward(x, params))
    ref = jax.block_until_ready(conv_block_reference(x, params))

    assert out.shape == (N, Cout, H, W), out.shape
    max_err = float(jnp.max(jnp.abs(out - ref)))
    assert jnp.allclose(out, ref, atol=2e-4, rtol=2e-4), max_err

    print("KERNEL_OK")
</pallas_src>

<mosaic_0001>
module attributes {stable_mosaic.version = 11 : i64} {
  func.func @_conv_block_kernel(%arg0: i32, %arg1: memref<1x16x16x4xf32, #tpu.memory_space<vmem>>, %arg2: memref<36x8xf32, #tpu.memory_space<vmem>>, %arg3: memref<1x8xf32, #tpu.memory_space<vmem>>, %arg4: memref<72x8xf32, #tpu.memory_space<vmem>>, %arg5: memref<1x8xf32, #tpu.memory_space<vmem>>, %arg6: memref<1x16x16x8xf32, #tpu.memory_space<vmem>>, %arg7: memref<18x18x4xf32, #tpu.memory_space<vmem>>, %arg8: memref<18x18x8xf32, #tpu.memory_space<vmem>>, %arg9: memref<16x16x72xf32, #tpu.memory_space<vmem>>) attributes {dimension_semantics = [#tpu.dimension_semantics<parallel>], iteration_bounds = array<i64: 2>, scalar_prefetch = 0 : i64, scratch_operands = 3 : i64, tpu.core_type = #tpu.core_type<tc>, window_params = [{transform_indices = @transform_0, window_bounds = array<i64: 1, 16, 16, 4>}, {pipeline_mode = #tpu.pipeline_mode<synchronous>, transform_indices = @transform_1, window_bounds = array<i64: 36, 8>}, {pipeline_mode = #tpu.pipeline_mode<synchronous>, transform_indices = @transform_2, window_bounds = array<i64: 1, 8>}, {pipeline_mode = #tpu.pipeline_mode<synchronous>, transform_indices = @transform_3, window_bounds = array<i64: 72, 8>}, {pipeline_mode = #tpu.pipeline_mode<synchronous>, transform_indices = @transform_4, window_bounds = array<i64: 1, 8>}, {transform_indices = @transform_5, window_bounds = array<i64: 1, 16, 16, 8>}]} {
    %c0 = arith.constant 0 : index
    %c0_0 = arith.constant 0 : index
    %c0_1 = arith.constant 0 : index
    %c0_2 = arith.constant 0 : index
    %0 = vector.load %arg1[%c0, %c0_0, %c0_1, %c0_2] : memref<1x16x16x4xf32, #tpu.memory_space<vmem>>, vector<1x16x16x4xf32>
    %1 = vector.shape_cast %0 : vector<1x16x16x4xf32> to vector<16x16x4xf32>
    %c1 = arith.constant 1 : index
    %c1_3 = arith.constant 1 : index
    %c0_4 = arith.constant 0 : index
    %2 = vector.load %arg7[%c1, %c1_3, %c0_4] : memref<18x18x4xf32, #tpu.memory_space<vmem>>, vector<16x16x4xf32>
    tpu.vector_store %arg7[%c1, %c1_3, %c0_4], %1 {strides = array<i32>} : memref<18x18x4xf32, #tpu.memory_space<vmem>>, vector<16x16x4xf32>,
    %3 = vector.extract_strided_slice %1 {offsets = [1, 0, 0], sizes = [1, 16, 4], strides = [1, 1, 1]} : vector<16x16x4xf32> to vector<1x16x4xf32>
    %c0_5 = arith.constant 0 : index
    %c1_6 = arith.constant 1 : index
    %c0_7 = arith.constant 0 : index
    %4 = vector.load %arg7[%c0_5, %c1_6, %c0_7] : memref<18x18x4xf32, #tpu.memory_space<vmem>>, vector<1x16x4xf32>
    tpu.vector_store %arg7[%c0_5, %c1_6, %c0_7], %3 {strides = array<i32>} : memref<18x18x4xf32, #tpu.memory_space<vmem>>, vector<1x16x4xf32>,
    %5 = vector.extract_strided_slice %1 {offsets = [14, 0, 0], sizes = [1, 16, 4], strides = [1, 1, 1]} : vector<16x16x4xf32> to vector<1x16x4xf32>
    %c17 = arith.constant 17 : index
    %c1_8 = arith.constant 1 : index
    %c0_9 = arith.constant 0 : index
    %6 = vector.load %arg7[%c17, %c1_8, %c0_9] : memref<18x18x4xf32, #tpu.memory_space<vmem>>, vector<1x16x4xf32>
    tpu.vector_store %arg7[%c17, %c1_8, %c0_9], %5 {strides = array<i32>} : memref<18x18x4xf32, #tpu.memory_space<vmem>>, vector<1x16x4xf32>,
    %c0_10 = arith.constant 0 : index
    %c2 = arith.constant 2 : index
    %c0_11 = arith.constant 0 : index
    %7 = vector.load %arg7[%c0_10, %c2, %c0_11] : memref<18x18x4xf32, #tpu.memory_space<vmem>>, vector<18x1x4xf32>
    %c0_12 = arith.constant 0 : index
    %c0_13 = arith.constant 0 : index
    %c0_14 = arith.constant 0 : index
    %8 = vector.load %arg7[%c0_12, %c0_13, %c0_14] : memref<18x18x4xf32, #tpu.memory_space<vmem>>, vector<18x1x4xf32>
    tpu.vector_store %arg7[%c0_12, %c0_13, %c0_14], %7 {strides = array<i32>} : memref<18x18x4xf32, #tpu.memory_space<vmem>>, vector<18x1x4xf32>,
    %c0_15 = arith.constant 0 : index
    %c15 = arith.constant 15 : index
    %c0_16 = arith.constant 0 : index
    %9 = vector.load %arg7[%c0_15, %c15, %c0_16] : memref<18x18x4xf32, #tpu.memory_space<vmem>>, vector<18x1x4xf32>
    %c0_17 = arith.constant 0 : index
    %c17_18 = arith.constant 17 : index
    %c0_19 = arith.constant 0 : index
    %10 = vector.load %arg7[%c0_17, %c17_18, %c0_19] : memref<18x18x4xf32, #tpu.memory_space<vmem>>, vector<18x1x4xf32>
    tpu.vector_store %arg7[%c0_17, %c17_18, %c0_19], %9 {strides = array<i32>} : memref<18x18x4xf32, #tpu.memory_space<vmem>>, vector<18x1x4xf32>,
    %c0_20 = arith.constant 0 : index
    %c0_21 = arith.constant 0 : index
    %c0_22 = arith.constant 0 : index
    %11 = vector.load %arg7[%c0_20, %c0_21, %c0_22] : memref<18x18x4xf32, #tpu.memory_space<vmem>>, vector<16x16x4xf32>
    %c0_23 = arith.constant 0 : index
    %c0_24 = arith.constant 0 : index
    %c0_25 = arith.constant 0 : index
    %12 = vector.load %arg9[%c0_23, %c0_24, %c0_25] : memref<16x16x72xf32, #tpu.memory_space<vmem>>, vector<16x16x4xf32>
    tpu.vector_store %arg9[%c0_23, %c0_24, %c0_25], %11 {strides = array<i32>} : memref<16x16x72xf32, #tpu.memory_space<vmem>>, vector<16x16x4xf32>,
    %c0_26 = arith.constant 0 : index
    %c1_27 = arith.constant 1 : index
    %c0_28 = arith.constant 0 : index
    %13 = vector.load %arg7[%c0_26, %c1_27, %c0_28] : memref<18x18x4xf32, #tpu.memory_space<vmem>>, vector<16x16x4xf32>
    %c0_29 = arith.constant 0 : index
    %c0_30 = arith.constant 0 : index
    %c4 = arith.constant 4 : index
    %14 = vector.load %arg9[%c0_29, %c0_30, %c4] : memref<16x16x72xf32, #tpu.memory_space<vmem>>, vector<16x16x4xf32>
    tpu.vector_store %arg9[%c0_29, %c0_30, %c4], %13 {strides = array<i32>} : memref<16x16x72xf32, #tpu.memory_space<vmem>>, vector<16x16x4xf32>,
    %c0_31 = arith.constant 0 : index
    %c2_32 = arith.constant 2 : index
    %c0_33 = arith.constant 0 : index
    %15 = vector.load %arg7[%c0_31, %c2_32, %c0_33] : memref<18x18x4xf32, #tpu.memory_space<vmem>>, vector<16x16x4xf32>
    %c0_34 = arith.constant 0 : index
    %c0_35 = arith.constant 0 : index
    %c8 = arith.constant 8 : index
    %16 = vector.load %arg9[%c0_34, %c0_35, %c8] : memref<16x16x72xf32, #tpu.memory_space<vmem>>, vector<16x16x4xf32>
    tpu.vector_store %arg9[%c0_34, %c0_35, %c8], %15 {strides = array<i32>} : memref<16x16x72xf32, #tpu.memory_space<vmem>>, vector<16x16x4xf32>,
    %c1_36 = arith.constant 1 : index
    %c0_37 = arith.constant 0 : index
    %c0_38 = arith.constant 0 : index
    %17 = vector.load %arg7[%c1_36, %c0_37, %c0_38] : memref<18x18x4xf32, #tpu.memory_space<vmem>>, vector<16x16x4xf32>
    %c0_39 = arith.constant 0 : index
    %c0_40 = arith.constant 0 : index
    %c12 = arith.constant 12 : index
    %18 = vector.load %arg9[%c0_39, %c0_40, %c12] : memref<16x16x72xf32, #tpu.memory_space<vmem>>, vector<16x16x4xf32>
    tpu.vector_store %arg9[%c0_39, %c0_40, %c12], %17 {strides = array<i32>} : memref<16x16x72xf32, #tpu.memory_space<vmem>>, vector<16x16x4xf32>,
    %c1_41 = arith.constant 1 : index
    %c1_42 = arith.constant 1 : index
    %c0_43 = arith.constant 0 : index
    %19 = vector.load %arg7[%c1_41, %c1_42, %c0_43] : memref<18x18x4xf32, #tpu.memory_space<vmem>>, vector<16x16x4xf32>
    %c0_44 = arith.constant 0 : index
    %c0_45 = arith.constant 0 : index
    %c16 = arith.constant 16 : index
    %20 = vector.load %arg9[%c0_44, %c0_45, %c16] : memref<16x16x72xf32, #tpu.memory_space<vmem>>, vector<16x16x4xf32>
    tpu.vector_store %arg9[%c0_44, %c0_45, %c16], %19 {strides = array<i32>} : memref<16x16x72xf32, #tpu.memory_space<vmem>>, vector<16x16x4xf32>,
    %c1_46 = arith.constant 1 : index
    %c2_47 = arith.constant 2 : index
    %c0_48 = arith.constant 0 : index
    %21 = vector.load %arg7[%c1_46, %c2_47, %c0_48] : memref<18x18x4xf32, #tpu.memory_space<vmem>>, vector<16x16x4xf32>
    %c0_49 = arith.constant 0 : index
    %c0_50 = arith.constant 0 : index
    %c20 = arith.constant 20 : index
    %22 = vector.load %arg9[%c0_49, %c0_50, %c20] : memref<16x16x72xf32, #tpu.memory_space<vmem>>, vector<16x16x4xf32>
    tpu.vector_store %arg9[%c0_49, %c0_50, %c20], %21 {strides = array<i32>} : memref<16x16x72xf32, #tpu.memory_space<vmem>>, vector<16x16x4xf32>,
    %c2_51 = arith.constant 2 : index
    %c0_52 = arith.constant 0 : index
    %c0_53 = arith.constant 0 : index
    %23 = vector.load %arg7[%c2_51, %c0_52, %c0_53] : memref<18x18x4xf32, #tpu.memory_space<vmem>>, vector<16x16x4xf32>
    %c0_54 = arith.constant 0 : index
    %c0_55 = arith.constant 0 : index
    %c24 = arith.constant 24 : index
    %24 = vector.load %arg9[%c0_54, %c0_55, %c24] : memref<16x16x72xf32, #tpu.memory_space<vmem>>, vector<16x16x4xf32>
    tpu.vector_store %arg9[%c0_54, %c0_55, %c24], %23 {strides = array<i32>} : memref<16x16x72xf32, #tpu.memory_space<vmem>>, vector<16x16x4xf32>,
    %c2_56 = arith.constant 2 : index
    %c1_57 = arith.constant 1 : index
    %c0_58 = arith.constant 0 : index
    %25 = vector.load %arg7[%c2_56, %c1_57, %c0_58] : memref<18x18x4xf32, #tpu.memory_space<vmem>>, vector<16x16x4xf32>
    %c0_59 = arith.constant 0 : index
    %c0_60 = arith.constant 0 : index
    %c28 = arith.constant 28 : index
    %26 = vector.load %arg9[%c0_59, %c0_60, %c28] : memref<16x16x72xf32, #tpu.memory_space<vmem>>, vector<16x16x4xf32>
    tpu.vector_store %arg9[%c0_59, %c0_60, %c28], %25 {strides = array<i32>} : memref<16x16x72xf32, #tpu.memory_space<vmem>>, vector<16x16x4xf32>,
    %c2_61 = arith.constant 2 : index
    %c2_62 = arith.constant 2 : index
    %c0_63 = arith.constant 0 : index
    %27 = vector.load %arg7[%c2_61, %c2_62, %c0_63] : memref<18x18x4xf32, #tpu.memory_space<vmem>>, vector<16x16x4xf32>
    %c0_64 = arith.constant 0 : index
    %c0_65 = arith.constant 0 : index
    %c32 = arith.constant 32 : index
    %28 = vector.load %arg9[%c0_64, %c0_65, %c32] : memref<16x16x72xf32, #tpu.memory_space<vmem>>, vector<16x16x4xf32>
    tpu.vector_store %arg9[%c0_64, %c0_65, %c32], %27 {strides = array<i32>} : memref<16x16x72xf32, #tpu.memory_space<vmem>>, vector<16x16x4xf32>,
    %c0_66 = arith.constant 0 : index
    %c0_67 = arith.constant 0 : index
    %c0_68 = arith.constant 0 : index
    %29 = vector.load %arg9[%c0_66, %c0_67, %c0_68] : memref<16x16x72xf32, #tpu.memory_space<vmem>>, vector<16x16x36xf32>
    %c0_69 = arith.constant 0 : index
    %c0_70 = arith.constant 0 : index
    %30 = vector.load %arg2[%c0_69, %c0_70] : memref<36x8xf32, #tpu.memory_space<vmem>>, vector<36x8xf32>
    "tpu.trace_start"() <{level = 10 : i32, message = "hwk,ko->hwo"}> : () -> ()
    %cst = arith.constant dense<0.000000e+00> : vector<16x16x8xf32>
    %31 = tpu.matmul %29, %30, %cst {dimension_numbers = #tpu.dot_dimension_numbers<[2], [0], [0, 1], [1], [0, 0, 0, 1, 1, 1], [], []>} : vector<16x16x36xf32>, vector<36x8xf32>, vector<16x16x8xf32> -> vector<16x16x8xf32>
    "tpu.trace_stop"() : () -> ()
    %c0_71 = arith.constant 0 : index
    %c0_72 = arith.constant 0 : index
    %32 = vector.load %arg3[%c0_71, %c0_72] : memref<1x8xf32, #tpu.memory_space<vmem>>, vector<1x8xf32>
    %33 = vector.shape_cast %32 : vector<1x8xf32> to vector<8xf32>
    %34 = vector.shape_cast %33 : vector<8xf32> to vector<1x1x8xf32>
    %35 = vector.broadcast %34 : vector<1x1x8xf32> to vector<16x16x8xf32>
    %36 = arith.addf %31, %35 : vector<16x16x8xf32>
    %cst_73 = arith.constant 0.000000e+00 : f32
    %37 = vector.broadcast %cst_73 : f32 to vector<16x16x8xf32>
    %38 = arith.cmpf oge, %36, %37 : vector<16x16x8xf32>
    %cst_74 = arith.constant 0.00999999977 : f32
    %39 = vector.broadcast %cst_74 : f32 to vector<16x16x8xf32>
    %40 = arith.mulf %39, %36 : vector<16x16x8xf32>
    %41 = arith.select %38, %36, %40 : vector<16x16x8xi1>, vector<16x16x8xf32>
    %c1_75 = arith.constant 1 : index
    %c1_76 = arith.constant 1 : index
    %c0_77 = arith.constant 0 : index
    %42 = vector.load %arg8[%c1_75, %c1_76, %c0_77] : memref<18x18x8xf32, #tpu.memory_space<vmem>>, vector<16x16x8xf32>
    tpu.vector_store %arg8[%c1_75, %c1_76, %c0_77], %41 {strides = array<i32>} : memref<18x18x8xf32, #tpu.memory_space<vmem>>, vector<16x16x8xf32>,
    %43 = vector.extract_strided_slice %41 {offsets = [1, 0, 0], sizes = [1, 16, 8], strides = [1, 1, 1]} : vector<16x16x8xf32> to vector<1x16x8xf32>
    %c0_78 = arith.constant 0 : index
    %c1_79 = arith.constant 1 : index
    %c0_80 = arith.constant 0 : index
    %44 = vector.load %arg8[%c0_78, %c1_79, %c0_80] : memref<18x18x8xf32, #tpu.memory_space<vmem>>, vector<1x16x8xf32>
    tpu.vector_store %arg8[%c0_78, %c1_79, %c0_80], %43 {strides = array<i32>} : memref<18x18x8xf32, #tpu.memory_space<vmem>>, vector<1x16x8xf32>,
    %45 = vector.extract_strided_slice %41 {offsets = [14, 0, 0], sizes = [1, 16, 8], strides = [1, 1, 1]} : vector<16x16x8xf32> to vector<1x16x8xf32>
    %c17_81 = arith.constant 17 : index
    %c1_82 = arith.constant 1 : index
    %c0_83 = arith.constant 0 : index
    %46 = vector.load %arg8[%c17_81, %c1_82, %c0_83] : memref<18x18x8xf32, #tpu.memory_space<vmem>>, vector<1x16x8xf32>
    tpu.vector_store %arg8[%c17_81, %c1_82, %c0_83], %45 {strides = array<i32>} : memref<18x18x8xf32, #tpu.memory_space<vmem>>, vector<1x16x8xf32>,
    %c0_84 = arith.constant 0 : index
    %c2_85 = arith.constant 2 : index
    %c0_86 = arith.constant 0 : index
    %47 = vector.load %arg8[%c0_84, %c2_85, %c0_86] : memref<18x18x8xf32, #tpu.memory_space<vmem>>, vector<18x1x8xf32>
    %c0_87 = arith.constant 0 : index
    %c0_88 = arith.constant 0 : index
    %c0_89 = arith.constant 0 : index
    %48 = vector.load %arg8[%c0_87, %c0_88, %c0_89] : memref<18x18x8xf32, #tpu.memory_space<vmem>>, vector<18x1x8xf32>
    tpu.vector_store %arg8[%c0_87, %c0_88, %c0_89], %47 {strides = array<i32>} : memref<18x18x8xf32, #tpu.memory_space<vmem>>, vector<18x1x8xf32>,
    %c0_90 = arith.constant 0 : index
    %c15_91 = arith.constant 15 : index
    %c0_92 = arith.constant 0 : index
    %49 = vector.load %arg8[%c0_90, %c15_91, %c0_92] : memref<18x18x8xf32, #tpu.memory_space<vmem>>, vector<18x1x8xf32>
    %c0_93 = arith.constant 0 : index
    %c17_94 = arith.constant 17 : index
    %c0_95 = arith.constant 0 : index
    %50 = vector.load %arg8[%c0_93, %c17_94, %c0_95] : memref<18x18x8xf32, #tpu.memory_space<vmem>>, vector<18x1x8xf32>
    tpu.vector_store %arg8[%c0_93, %c17_94, %c0_95], %49 {strides = array<i32>} : memref<18x18x8xf32, #tpu.memory_space<vmem>>, vector<18x1x8xf32>,
    %c0_96 = arith.constant 0 : index
    %c0_97 = arith.constant 0 : index
    %c0_98 = arith.constant 0 : index
    %51 = vector.load %arg8[%c0_96, %c0_97, %c0_98] : memref<18x18x8xf32, #tpu.memory_space<vmem>>, vector<16x16x8xf32>
    %c0_99 = arith.constant 0 : index
    %c0_100 = arith.constant 0 : index
    %c0_101 = arith.constant 0 : index
    %52 = vector.load %arg9[%c0_99, %c0_100, %c0_101] : memref<16x16x72xf32, #tpu.memory_space<vmem>>, vector<16x16x8xf32>
    tpu.vector_store %arg9[%c0_99, %c0_100, %c0_101], %51 {strides = array<i32>} : memref<16x16x72xf32, #tpu.memory_space<vmem>>, vector<16x16x8xf32>,
    %c0_102 = arith.constant 0 : index
    %c1_103 = arith.constant 1 : index
    %c0_104 = arith.constant 0 : index
    %53 = vector.load %arg8[%c0_102, %c1_103, %c0_104] : memref<18x18x8xf32, #tpu.memory_space<vmem>>, vector<16x16x8xf32>
    %c0_105 = arith.constant 0 : index
    %c0_106 = arith.constant 0 : index
    %c8_107 = arith.constant 8 : index
    %54 = vector.load %arg9[%c0_105, %c0_106, %c8_107] : memref<16x16x72xf32, #tpu.memory_space<vmem>>, vector<16x16x8xf32>
    tpu.vector_store %arg9[%c0_105, %c0_106, %c8_107], %53 {strides = array<i32>} : memref<16x16x72xf32, #tpu.memory_space<vmem>>, vector<16x16x8xf32>,
    %c0_108 = arith.constant 0 : index
    %c2_109 = arith.constant 2 : index
    %c0_110 = arith.constant 0 : index
    %55 = vector.load %arg8[%c0_108, %c2_109, %c0_110] : memref<18x18x8xf32, #tpu.memory_space<vmem>>, vector<16x16x8xf32>
    %c0_111 = arith.constant 0 : index
    %c0_112 = arith.constant 0 : index
    %c16_113 = arith.constant 16 : index
    %56 = vector.load %arg9[%c0_111, %c0_112, %c16_113] : memref<16x16x72xf32, #tpu.memory_space<vmem>>, vector<16x16x8xf32>
    tpu.vector_store %arg9[%c0_111, %c0_112, %c16_113], %55 {strides = array<i32>} : memref<16x16x72xf32, #tpu.memory_space<vmem>>, vector<16x16x8xf32>,
    %c1_114 = arith.constant 1 : index
    %c0_115 = arith.constant 0 : index
    %c0_116 = arith.constant 0 : index
    %57 = vector.load %arg8[%c1_114, %c0_115, %c0_116] : memref<18x18x8xf32, #tpu.memory_space<vmem>>, vector<16x16x8xf32>
    %c0_117 = arith.constant 0 : index
    %c0_118 = arith.constant 0 : index
    %c24_119 = arith.constant 24 : index
    %58 = vector.load %arg9[%c0_117, %c0_118, %c24_119] : memref<16x16x72xf32, #tpu.memory_space<vmem>>, vector<16x16x8xf32>
    tpu.vector_store %arg9[%c0_117, %c0_118, %c24_119], %57 {strides = array<i32>} : memref<16x16x72xf32, #tpu.memory_space<vmem>>, vector<16x16x8xf32>,
    %c1_120 = arith.constant 1 : index
    %c1_121 = arith.constant 1 : index
    %c0_122 = arith.constant 0 : index
    %59 = vector.load %arg8[%c1_120, %c1_121, %c0_122] : memref<18x18x8xf32, #tpu.memory_space<vmem>>, vector<16x16x8xf32>
    %c0_123 = arith.constant 0 : index
    %c0_124 = arith.constant 0 : index
    %c32_125 = arith.constant 32 : index
    %60 = vector.load %arg9[%c0_123, %c0_124, %c32_125] : memref<16x16x72xf32, #tpu.memory_space<vmem>>, vector<16x16x8xf32>
    tpu.vector_store %arg9[%c0_123, %c0_124, %c32_125], %59 {strides = array<i32>} : memref<16x16x72xf32, #tpu.memory_space<vmem>>, vector<16x16x8xf32>,
    %c1_126 = arith.constant 1 : index
    %c2_127 = arith.constant 2 : index
    %c0_128 = arith.constant 0 : index
    %61 = vector.load %arg8[%c1_126, %c2_127, %c0_128] : memref<18x18x8xf32, #tpu.memory_space<vmem>>, vector<16x16x8xf32>
    %c0_129 = arith.constant 0 : index
    %c0_130 = arith.constant 0 : index
    %c40 = arith.constant 40 : index
    %62 = vector.load %arg9[%c0_129, %c0_130, %c40] : memref<16x16x72xf32, #tpu.memory_space<vmem>>, vector<16x16x8xf32>
    tpu.vector_store %arg9[%c0_129, %c0_130, %c40], %61 {strides = array<i32>} : memref<16x16x72xf32, #tpu.memory_space<vmem>>, vector<16x16x8xf32>,
    %c2_131 = arith.constant 2 : index
    %c0_132 = arith.constant 0 : index
    %c0_133 = arith.constant 0 : index
    %63 = vector.load %arg8[%c2_131, %c0_132, %c0_133] : memref<18x18x8xf32, #tpu.memory_space<vmem>>, vector<16x16x8xf32>
    %c0_134 = arith.constant 0 : index
    %c0_135 = arith.constant 0 : index
    %c48 = arith.constant 48 : index
    %64 = vector.load %arg9[%c0_134, %c0_135, %c48] : memref<16x16x72xf32, #tpu.memory_space<vmem>>, vector<16x16x8xf32>
    tpu.vector_store %arg9[%c0_134, %c0_135, %c48], %63 {strides = array<i32>} : memref<16x16x72xf32, #tpu.memory_space<vmem>>, vector<16x16x8xf32>,
    %c2_136 = arith.constant 2 : index
    %c1_137 = arith.constant 1 : index
    %c0_138 = arith.constant 0 : index
    %65 = vector.load %arg8[%c2_136, %c1_137, %c0_138] : memref<18x18x8xf32, #tpu.memory_space<vmem>>, vector<16x16x8xf32>
    %c0_139 = arith.constant 0 : index
    %c0_140 = arith.constant 0 : index
    %c56 = arith.constant 56 : index
    %66 = vector.load %arg9[%c0_139, %c0_140, %c56] : memref<16x16x72xf32, #tpu.memory_space<vmem>>, vector<16x16x8xf32>
    tpu.vector_store %arg9[%c0_139, %c0_140, %c56], %65 {strides = array<i32>} : memref<16x16x72xf32, #tpu.memory_space<vmem>>, vector<16x16x8xf32>,
    %c2_141 = arith.constant 2 : index
    %c2_142 = arith.constant 2 : index
    %c0_143 = arith.constant 0 : index
    %67 = vector.load %arg8[%c2_141, %c2_142, %c0_143] : memref<18x18x8xf32, #tpu.memory_space<vmem>>, vector<16x16x8xf32>
    %c0_144 = arith.constant 0 : index
    %c0_145 = arith.constant 0 : index
    %c64 = arith.constant 64 : index
    %68 = vector.load %arg9[%c0_144, %c0_145, %c64] : memref<16x16x72xf32, #tpu.memory_space<vmem>>, vector<16x16x8xf32>
    tpu.vector_store %arg9[%c0_144, %c0_145, %c64], %67 {strides = array<i32>} : memref<16x16x72xf32, #tpu.memory_space<vmem>>, vector<16x16x8xf32>,
    %c0_146 = arith.constant 0 : index
    %c0_147 = arith.constant 0 : index
    %c0_148 = arith.constant 0 : index
    %69 = vector.load %arg9[%c0_146, %c0_147, %c0_148] : memref<16x16x72xf32, #tpu.memory_space<vmem>>, vector<16x16x72xf32>
    %c0_149 = arith.constant 0 : index
    %c0_150 = arith.constant 0 : index
    %70 = vector.load %arg4[%c0_149, %c0_150] : memref<72x8xf32, #tpu.memory_space<vmem>>, vector<72x8xf32>
    "tpu.trace_start"() <{level = 10 : i32, message = "hwk,ko->hwo"}> : () -> ()
    %cst_151 = arith.constant dense<0.000000e+00> : vector<16x16x8xf32>
    %71 = tpu.matmul %69, %70, %cst_151 {dimension_numbers = #tpu.dot_dimension_numbers<[2], [0], [0, 1], [1], [0, 0, 0, 1, 1, 1], [], []>} : vector<16x16x72xf32>, vector<72x8xf32>, vector<16x16x8xf32> -> vector<16x16x8xf32>
    "tpu.trace_stop"() : () -> ()
    %c0_152 = arith.constant 0 : index
    %c0_153 = arith.constant 0 : index
    %72 = vector.load %arg5[%c0_152, %c0_153] : memref<1x8xf32, #tpu.memory_space<vmem>>, vector<1x8xf32>
    %73 = vector.shape_cast %72 : vector<1x8xf32> to vector<8xf32>
    %74 = vector.shape_cast %73 : vector<8xf32> to vector<1x1x8xf32>
    %75 = vector.broadcast %74 : vector<1x1x8xf32> to vector<16x16x8xf32>
    %76 = arith.addf %71, %75 : vector<16x16x8xf32>
    %cst_154 = arith.constant 0.000000e+00 : f32
    %77 = vector.broadcast %cst_154 : f32 to vector<16x16x8xf32>
    %78 = arith.cmpf oge, %76, %77 : vector<16x16x8xf32>
    %cst_155 = arith.constant 0.00999999977 : f32
    %79 = vector.broadcast %cst_155 : f32 to vector<16x16x8xf32>
    %80 = arith.mulf %79, %76 : vector<16x16x8xf32>
    %81 = arith.select %78, %76, %80 : vector<16x16x8xi1>, vector<16x16x8xf32>
    %c0_156 = arith.constant 0 : index
    %c0_157 = arith.constant 0 : index
    %c0_158 = arith.constant 0 : index
    %c0_159 = arith.constant 0 : index
    %82 = vector.load %arg6[%c0_156, %c0_157, %c0_158, %c0_159] : memref<1x16x16x8xf32, #tpu.memory_space<vmem>>, vector<1x16x16x8xf32>
    %83 = vector.shape_cast %82 : vector<1x16x16x8xf32> to vector<16x16x8xf32>
    %84 = vector.shape_cast %81 : vector<16x16x8xf32> to vector<1x16x16x8xf32>
    tpu.vector_store %arg6[%c0_156, %c0_157, %c0_158, %c0_159], %84 {strides = array<i32>} : memref<1x16x16x8xf32, #tpu.memory_space<vmem>>, vector<1x16x16x8xf32>,
    return
  }
  func.func @transform_0(%arg0: i32) -> (i32, i32, i32, i32) {
    %c0_i32 = arith.constant 0 : i32
    %c0_i32_0 = arith.constant 0 : i32
    %c0_i32_1 = arith.constant 0 : i32
    %c0_i32_2 = arith.constant 0 : i32
    return %arg0, %c0_i32, %c0_i32_0, %c0_i32_1 : i32, i32, i32, i32
  }
  func.func @transform_1(%arg0: i32) -> (i32, i32) {
    %c0_i32 = arith.constant 0 : i32
    %c0_i32_0 = arith.constant 0 : i32
    %c0_i32_1 = arith.constant 0 : i32
    return %c0_i32, %c0_i32_0 : i32, i32
  }
  func.func @transform_2(%arg0: i32) -> (i32, i32) {
    %c0_i32 = arith.constant 0 : i32
    %c0_i32_0 = arith.constant 0 : i32
    %c0_i32_1 = arith.constant 0 : i32
    return %c0_i32, %c0_i32_0 : i32, i32
  }
  func.func @transform_3(%arg0: i32) -> (i32, i32) {
    %c0_i32 = arith.constant 0 : i32
    %c0_i32_0 = arith.constant 0 : i32
    %c0_i32_1 = arith.constant 0 : i32
    return %c0_i32, %c0_i32_0 : i32, i32
  }
  func.func @transform_4(%arg0: i32) -> (i32, i32) {
    %c0_i32 = arith.constant 0 : i32
    %c0_i32_0 = arith.constant 0 : i32
    %c0_i32_1 = arith.constant 0 : i32
    return %c0_i32, %c0_i32_0 : i32, i32
  }
  func.func @transform_5(%arg0: i32) -> (i32, i32, i32, i32) {
    %c0_i32 = arith.constant 0 : i32
    %c0_i32_0 = arith.constant 0 : i32
    %c0_i32_1 = arith.constant 0 : i32
    %c0_i32_2 = arith.constant 0 : i32
    return %arg0, %c0_i32, %c0_i32_0, %c0_i32_1 : i32, i32, i32, i32
  }
}

</mosaic_0001>

<bundles_post_ra>
// kernel: conv_block_forward.1
= control target key start
LH: loop header
LB: loop body
LE: loop exit
PB: predicated region body
PF: predicated region fallthrough
CT: control target
= control target key end

     0   :  { %s5105_s18 = smov 0   ;;  %s7260_s0 = inlined_call_operand.vmem [shape: f32[2,16,16,4], index: 0, kind: input, shape index: {}]   ;;  %s7261_s1 = inlined_call_operand.vmem [shape: f32[36,8], index: 1, kind: input, shape index: {}]   ;;  %s7262_s2 = inlined_call_operand.vmem [shape: f32[1,8], index: 2, kind: input, shape index: {}]   ;;  %s7263_s3 = inlined_call_operand.vmem [shape: f32[72,8], index: 3, kind: input, shape index: {}]   ;;  %s7264_s4 = inlined_call_operand.vmem [shape: f32[1,8], index: 4, kind: input, shape index: {}]   ;;  %s7265_s5 = inlined_call_operand.vmem [shape: f32[2,16,16,8], index: 5, kind: output, shape index: {}]  }
   0x1 LB: > { %s4718_s19 = sadd.s32 4294967295, %s5061_s18   ;;  %p4722_p0 = scmp.ge.s32.totalorder %s5061_s18, 1  ;;  %s5061_s18 = sphi %s5105_s18, %s15_s18  }
   0x2   : > { %p187_p1 = scmp.lt.s32.totalorder %s5061_s18, 3 }
   0x4   : > { %p188_p2 = pnand %p4722_p0, %p187_p1 }
   0x6   : > { %191 = sbr.rel (%p188_p2) target bundleno = 1668 (0x684), region = 40 }
   0xd   : > { %p215_p3 = scmp.lt.s32.totalorder %s4718_s19, 1  ;;  %vm258_vm0 = vcmask 31744   ;;  %s5063_s24 = smov 4   ;;  %vm314_vm1 = vcmask 24576   ;;  %vm593_vm2 = vcmask 64544   ;;  %vm786_vm3 = vcmask 97344  }
   0xe   : > { %s5064_s25 = smov 8   ;;  %s5065_s26 = smov 12   ;;  %vm979_vm4 = vcmask 130144   ;;  %vm1172_vm5 = vcmask 162944   ;;  %vm1365_vm6 = vcmask 195744   ;;  %vm2119_vm7 = vcmask 1043456  }
   0xf   : > { %s7360_s19 = smov (!%p215_p3, %s4718_s19), 1  ;;  %s5066_s27 = smov 16   ;;  %vm1559_vm8 = vcmask 228544   ;;  %vm1752_vm9 = vcmask 261344   ;;  %vm1945_vm10 = vcmask 294144   ;;  %vm2022_vm11 = vcmask 293888  }
  0x10   : > { %s4796_s20 = sshll.u32 %s7360_s19, 8  ;;  %s5067_s28 = smov 20   ;;  %vm2445_vm13 = vcmask 64512   ;;  %vm2501_vm15 = vcmask 57344  }
  0x11   : > { %s5121_s23 = scalar_lea.vmem %s7260_s0, %s4796_s20  ;;  %s5068_s29 = smov 24  }
  0x12   : > { %v227_v0 = vld [vmem:[%s5121_s23 + $0x10] sm:$0xff]  ;;  %v225_v1 = vld [vmem:[%s5121_s23] sm:$0xff]  ;;  %v228_v2 = vld [vmem:[%s5121_s23 + $0x18] sm:$0xff]  ;;  %s5069_s15 = smov 28   ;;  %s5070_s16 = smov 32  }
  0x13   : > { %291 = vst.msk [vmem:[#allocation2 + $0x1] sm:$0xff] %vm258_vm0, %v227_v0  ;;  %261 = vst.msk [vmem:[#allocation2 + $0x31] sm:$0xff] %vm258_vm0, %v227_v0  ;;  %v226_v3 = vld [vmem:[%s5121_s23 + $0x8] sm:$0xff]  ;;  %v229_v4 = vld [vmem:[%s5121_s23 + $0x20] sm:$0xff]  ;;  %s5072_s7 = smov 48   ;;  %s5073_s12 = smov 56  }
  0x14   : > { %259 = vst.msk [vmem:[#allocation2 + $0x19] sm:$0xff] %vm258_vm0, %v225_v1  ;;  %292 = vst.msk [vmem:[#allocation2 + $0x9] sm:$0xff] %vm258_vm0, %v228_v2  ;;  %v230_v5 = vld [vmem:[%s5121_s23 + $0x28] sm:$0xff]  ;;  %v231_v6 = vld [vmem:[%s5121_s23 + $0x30] sm:$0xff]  ;;  %s5074_s21 = smov 64  }
  0x15   : > { %262 = vst.msk [vmem:[#allocation2 + $0x39] sm:$0xff] %vm258_vm0, %v228_v2  ;;  %260 = vst.msk [vmem:[#allocation2 + $0x21] sm:$0xff] %vm258_vm0, %v226_v3  ;;  %v232_v7 = vld [vmem:[%s5121_s23 + $0x38] sm:$0xff]  ;;  %v233_v8 = vld [vmem:[%s5121_s23 + $0x40] sm:$0xff] }
  0x16   : > { %263 = vst.msk [vmem:[#allocation2 + $0x49] sm:$0xff] %vm258_vm0, %v229_v4  ;;  %264 = vst.msk [vmem:[#allocation2 + $0x51] sm:$0xff] %vm258_vm0, %v230_v5  ;;  %v234_v9 = vld [vmem:[%s5121_s23 + $0x48] sm:$0xff]  ;;  %v235_v10 = vld [vmem:[%s5121_s23 + $0x50] sm:$0xff] }
  0x17   : > { %265 = vst.msk [vmem:[#allocation2 + $0x61] sm:$0xff] %vm258_vm0, %v231_v6  ;;  %266 = vst.msk [vmem:[#allocation2 + $0x69] sm:$0xff] %vm258_vm0, %v232_v7  ;;  %v236_v11 = vld [vmem:[%s5121_s23 + $0x58] sm:$0xff]  ;;  %v237_v12 = vld [vmem:[%s5121_s23 + $0x60] sm:$0xff] }
  0x18   : > { %267 = vst.msk [vmem:[#allocation2 + $0x79] sm:$0xff] %vm258_vm0, %v233_v8  ;;  %268 = vst.msk [vmem:[#allocation2 + $0x81] sm:$0xff] %vm258_vm0, %v234_v9  ;;  %v238_v13 = vld [vmem:[%s5121_s23 + $0x68] sm:$0xff]  ;;  %v239_v14 = vld [vmem:[%s5121_s23 + $0x70] sm:$0xff] }
  0x19   : > { %269 = vst.msk [vmem:[#allocation2 + $0x91] sm:$0xff] %vm258_vm0, %v235_v10  ;;  %270 = vst.msk [vmem:[#allocation2 + $0x99] sm:$0xff] %vm258_vm0, %v236_v11  ;;  %v240_v15 = vld [vmem:[%s5121_s23 + $0x78] sm:$0xff]  ;;  %v241_v16 = vld [vmem:[%s5121_s23 + $0x80] sm:$0xff] }
  0x1a   : > { %271 = vst.msk [vmem:[#allocation2 + $0xa9] sm:$0xff] %vm258_vm0, %v237_v12  ;;  %272 = vst.msk [vmem:[#allocation2 + $0xb1] sm:$0xff] %vm258_vm0, %v238_v13  ;;  %v242_v17 = vld [vmem:[%s5121_s23 + $0x88] sm:$0xff]  ;;  %v243_v18 = vld [vmem:[%s5121_s23 + $0x90] sm:$0xff] }
  0x1b   : > { %273 = vst.msk [vmem:[#allocation2 + $0xc1] sm:$0xff] %vm258_vm0, %v239_v14  ;;  %274 = vst.msk [vmem:[#allocation2 + $0xc9] sm:$0xff] %vm258_vm0, %v240_v15  ;;  %v244_v19 = vld [vmem:[%s5121_s23 + $0x98] sm:$0xff]  ;;  %v245_v20 = vld [vmem:[%s5121_s23 + $0xa0] sm:$0xff] }
  0x1c   : > { %275 = vst.msk [vmem:[#allocation2 + $0xd9] sm:$0xff] %vm258_vm0, %v241_v16  ;;  %276 = vst.msk [vmem:[#allocation2 + $0xe1] sm:$0xff] %vm258_vm0, %v242_v17  ;;  %v246_v21 = vld [vmem:[%s5121_s23 + $0xa8] sm:$0xff]  ;;  %v247_v22 = vld [vmem:[%s5121_s23 + $0xb0] sm:$0xff] }
  0x1d   : > { %277 = vst.msk [vmem:[#allocation2 + $0xf1] sm:$0xff] %vm258_vm0, %v243_v18  ;;  %278 = vst.msk [vmem:[#allocation2 + $0xf9] sm:$0xff] %vm258_vm0, %v244_v19  ;;  %v248_v23 = vld [vmem:[%s5121_s23 + $0xb8] sm:$0xff]  ;;  %v433_v24 = vld [vmem:[#allocation2 + $0x1] sm:$0xff] }
  0x1e   : > { %279 = vst.msk [vmem:[#allocation2 + $0x109] sm:$0xff] %vm258_vm0, %v245_v20  ;;  %v5170_v25 = vld [vmem:[#allocation2 + $0x19] sm:$0xff]  ;;  %280 = vst.msk [vmem:[#allocation2 + $0x111] sm:$0xff] %vm258_vm0, %v246_v21  ;;  %497 = vrot.lane.b32.xlu0 %v433_v24, %s5063_s24  ;;  %v434_v26 = vld [vmem:[#allocation2 + $0x9] sm:$0xff] }
  0x1f   : > { %281 = vst.msk [vmem:[#allocation2 + $0x121] sm:$0xff] %vm258_vm0, %v247_v22  ;;  %282 = vst.msk [vmem:[#allocation2 + $0x129] sm:$0xff] %vm258_vm0, %v248_v23  ;;  %501 = vrot.lane.b32.xlu1 %v5170_v25, %s5063_s24  ;;  %v5178_v27 = vld [vmem:[#allocation2 + $0x21] sm:$0xff]  ;;  %v5183_v28 = vld [vmem:[#allocation2 + $0x31] sm:$0xff] }
  0x20   : > { %v5185_v29 = vld [vmem:[#allocation2 + $0x39] sm:$0xff]  ;;  %v5187_v30 = vld [vmem:[#allocation2 + $0x49] sm:$0xff]  ;;  %v5194_v32 = vld [vmem:[#allocation2 + $0x51] sm:$0xff] }
  0x21   : > { %v249_v31 = vld [vmem:[%s5121_s23 + $0xc0] sm:$0xff]  ;;  %v250_v33 = vld [vmem:[%s5121_s23 + $0xc8] sm:$0xff]  ;;  %v251_v34 = vld [vmem:[%s5121_s23 + $0xd0] sm:$0xff] }
  0x22   : > { %499 = vrot.lane.b32.xlu0 %v434_v26, %s5063_s24  ;;  %283 = vst.msk [vmem:[#allocation2 + $0x139] sm:$0xff] %vm258_vm0, %v249_v31  ;;  %284 = vst.msk [vmem:[#allocation2 + $0x141] sm:$0xff] %vm258_vm0, %v250_v33  ;;  %v252_v35 = vld [vmem:[%s5121_s23 + $0xd8] sm:$0xff]  ;;  %v253_v36 = vld [vmem:[%s5121_s23 + $0xe0] sm:$0xff] }
  0x23   : > { %503 = vrot.lane.b32.xlu1 %v5178_v27, %s5063_s24  ;;  %285 = vst.msk [vmem:[#allocation2 + $0x151] sm:$0xff] %vm258_vm0, %v251_v34  ;;  %v254_v37 = vld [vmem:[%s5121_s23 + $0xe8] sm:$0xff]  ;;  %286 = vst.msk [vmem:[#allocation2 + $0x159] sm:$0xff] %vm258_vm0, %v252_v35  ;;  %v334_v39 = vld [vmem:[#allocation2 + $0x27] sm:$0x1] }
  0x24   : > { %287 = vst.msk [vmem:[#allocation2 + $0x169] sm:$0xff] %vm258_vm0, %v253_v36  ;;  %294 = vst.msk [vmem:[#allocation2 + $0x199] sm:$0xff] %vm258_vm0, %v253_v36  ;;  %v333_v38 = vld [vmem:[#allocation2 + $0xf] sm:$0x1]  ;;  %v335_v40 = vld [vmem:[#allocation2 + $0x3f] sm:$0x1] }
  0x25   : > { %288 = vst.msk [vmem:[#allocation2 + $0x171] sm:$0xff] %vm258_vm0, %v254_v37  ;;  %295 = vst.msk [vmem:[#allocation2 + $0x1a1] sm:$0xff] %vm258_vm0, %v254_v37  ;;  %v336_v41 = vld [vmem:[#allocation2 + $0x57] sm:$0x1]  ;;  %v337_v42 = vld [vmem:[#allocation2 + $0x6f] sm:$0x1] }
  0x26   : > { %505 = vrot.lane.b32.xlu0 %v5183_v28, %s5063_s24  ;;  %351 = vst.msk [vmem:[#allocation2 + $0x11] sm:$0x1] %vm314_vm1, %v333_v38  ;;  %352 = vst.msk [vmem:[#allocation2 + $0x29] sm:$0x1] %vm314_vm1, %v334_v39  ;;  %v5216_v43 = vld [vmem:[#allocation2 + $0x61] sm:$0xff]  ;;  %v5218_v44 = vld [vmem:[#allocation2 + $0x69] sm:$0xff] }
  0x27   : > { %507 = vrot.lane.b32.xlu1 %v5185_v29, %s5063_s24  ;;  %353 = vst.msk [vmem:[#allocation2 + $0x41] sm:$0x1] %vm314_vm1, %v335_v40  ;;  %354 = vst.msk [vmem:[#allocation2 + $0x59] sm:$0x1] %vm314_vm1, %v336_v41  ;;  %v338_v45 = vld [vmem:[#allocation2 + $0x87] sm:$0x1] }
  0x28   : > { %355 = vst.msk [vmem:[#allocation2 + $0x71] sm:$0x1] %vm314_vm1, %v337_v42  ;;  %356 = vst.msk [vmem:[#allocation2 + $0x89] sm:$0x1] %vm314_vm1, %v338_v45  ;;  %v339_v46 = vld [vmem:[#allocation2 + $0x9f] sm:$0x1] }
  0x29   : > { %v340_v47 = vld [vmem:[#allocation2 + $0xb7] sm:$0x1]  ;;  %357 = vst.msk [vmem:[#allocation2 + $0xa1] sm:$0x1] %vm314_vm1, %v339_v46  ;;  %v341_v48 = vld [vmem:[#allocation2 + $0xcf] sm:$0x1] }
  0x2a   : > { %509 = vrot.lane.b32.xlu0 %v5187_v30, %s5063_s24  ;;  %358 = vst.msk [vmem:[#allocation2 + $0xb9] sm:$0x1] %vm314_vm1, %v340_v47  ;;  %359 = vst.msk [vmem:[#allocation2 + $0xd1] sm:$0x1] %vm314_vm1, %v341_v48  ;;  %v5230_v49 = vld [vmem:[#allocation2 + $0x79] sm:$0xff]  ;;  %v5232_v50 = vld [vmem:[#allocation2 + $0x81] sm:$0xff] }
  0x2b   : > { %511 = vrot.lane.b32.xlu1 %v5194_v32, %s5063_s24  ;;  %v342_v51 = vld [vmem:[#allocation2 + $0xe7] sm:$0x1]  ;;  %v343_v52 = vld [vmem:[#allocation2 + $0xff] sm:$0x1]  ;;  %v5240_v53 = vld [vmem:[#allocation2 + $0x91] sm:$0xff] }
  0x2c   : > { %360 = vst.msk [vmem:[#allocation2 + $0xe9] sm:$0x1] %vm314_vm1, %v342_v51  ;;  %361 = vst.msk [vmem:[#allocation2 + $0x101] sm:$0x1] %vm314_vm1, %v343_v52  ;;  %v5242_v54 = vld [vmem:[#allocation2 + $0x99] sm:$0xff]  ;;  %v5250_v59 = vld [vmem:[#allocation2 + $0xa9] sm:$0xff] }
  0x2d   : > { %v344_v55 = vld [vmem:[#allocation2 + $0x117] sm:$0x1]  ;;  %v345_v56 = vld [vmem:[#allocation2 + $0x12f] sm:$0x1]  ;;  %v296_v57 = vld [vmem:[#allocation2 + $0x2] sm:$0x1] }
  0x2e   : > { %513 = vrot.lane.b32.xlu0 %v5216_v43, %s5063_s24  ;;  %362 = vst.msk [vmem:[#allocation2 + $0x119] sm:$0x1] %vm314_vm1, %v344_v55  ;;  %363 = vst.msk [vmem:[#allocation2 + $0x131] sm:$0x1] %vm314_vm1, %v345_v56  ;;  %v297_v58 = vld [vmem:[#allocation2 + $0x1a] sm:$0x1] }
  0x2f   : > { %515 = vrot.lane.b32.xlu1 %v5218_v44, %s5063_s24  ;;  %315 = vst.msk [vmem:[#allocation2] sm:$0x1] %vm314_vm1, %v296_v57  ;;  %316 = vst.msk [vmem:[#allocation2 + $0x18] sm:$0x1] %vm314_vm1, %v297_v58  ;;  %v346_v60 = vld [vmem:[#allocation2 + $0x147] sm:$0x1] }
  0x30   : > { %v370_v61 = vld [vmem:[#allocation2 + $0x8] sm:$0xff]  ;;  %v5254_v62 = vld [vmem:[#allocation2 + $0xb1] sm:$0xff]  ;;  %364 = vst.msk [vmem:[#allocation2 + $0x149] sm:$0x1] %vm314_vm1, %v346_v60  ;;  %v5258_v63 = vld [vmem:[#allocation2 + $0x20] sm:$0xff] }
  0x31   : > { %402 = vst.msk [vmem:[#allocation4 + $0x8] sm:$0xff] %vm258_vm0, %v370_v61  ;;  %v347_v0 = vld [vmem:[#allocation2 + $0x15f] sm:$0x1]  ;;  %404 = vst.msk [vmem:[#allocation4 + $0x18] sm:$0xff] %vm258_vm0, %v5258_v63  ;;  %v298_v1 = vld [vmem:[#allocation2 + $0x32] sm:$0x1] }
  0x32   : > { %517 = vrot.lane.b32.xlu0 %v5230_v49, %s5063_s24  ;;  %365 = vst.msk [vmem:[#allocation2 + $0x161] sm:$0x1] %vm314_vm1, %v347_v0  ;;  %v5263_v2 = vld [vmem:[#allocation2 + $0x38] sm:$0xff]  ;;  %v5265_v3 = vld [vmem:[#allocation2 + $0xc1] sm:$0xff]  ;;  %317 = vst.msk [vmem:[#allocation2 + $0x30] sm:$0x1] %vm314_vm1, %v298_v1 }
  0x33   : > { %519 = vrot.lane.b32.xlu1 %v5232_v50, %s5063_s24  ;;  %406 = vst.msk [vmem:[#allocation4 + $0x28] sm:$0xff] %vm258_vm0, %v5263_v2  ;;  %v348_v4 = vld [vmem:[#allocation2 + $0x177] sm:$0x1]  ;;  %v299_v5 = vld [vmem:[#allocation2 + $0x4a] sm:$0x1]  ;;  %v5288_v11 = vld [vmem:[#allocation2 + $0x80] sm:$0xff] }
  0x34   : > { %366 = vst.msk [vmem:[#allocation2 + $0x179] sm:$0x1] %vm314_vm1, %v348_v4  ;;  %v5275_v6 = vld [vmem:[#allocation2 + $0x50] sm:$0xff]  ;;  %v300_v7 = vld [vmem:[#allocation2 + $0x62] sm:$0x1]  ;;  %v5283_v9 = vld [vmem:[#allocation2 + $0x68] sm:$0xff] }
  0x35   : > { %v5277_v8 = vld [vmem:[#allocation2 + $0xc9] sm:$0xff]  ;;  %318 = vst.msk [vmem:[#allocation2 + $0x48] sm:$0x1] %vm314_vm1, %v299_v5  ;;  %319 = vst.msk [vmem:[#allocation2 + $0x60] sm:$0x1] %vm314_vm1, %v300_v7  ;;  %v5295_v15 = vld [vmem:[#allocation2 + $0x98] sm:$0xff] }
  0x36   : > { %521 = vrot.lane.b32.xlu0 %v5240_v53, %s5063_s24  ;;  %408 = vst.msk [vmem:[#allocation4 + $0x38] sm:$0xff] %vm258_vm0, %v5275_v6  ;;  %v301_v10 = vld [vmem:[#allocation2 + $0x7a] sm:$0x1]  ;;  %410 = vst.msk [vmem:[#allocation4 + $0x48] sm:$0xff] %vm258_vm0, %v5283_v9  ;;  %v302_v12 = vld [vmem:[#allocation2 + $0x92] sm:$0x1] }
  0x37   : > { %523 = vrot.lane.b32.xlu1 %v5242_v54, %s5063_s24  ;;  %320 = vst.msk [vmem:[#allocation2 + $0x78] sm:$0x1] %vm314_vm1, %v301_v10  ;;  %v369_v13 = vld [vmem:[#allocation2] sm:$0xff]  ;;  %v5290_v14 = vld [vmem:[#allocation2 + $0x18] sm:$0xff]  ;;  %321 = vst.msk [vmem:[#allocation2 + $0x90] sm:$0x1] %vm314_vm1, %v302_v12 }
  0x38   : > { %412 = vst.msk [vmem:[#allocation4 + $0x58] sm:$0xff] %vm258_vm0, %v5288_v11  ;;  %v5301_v16 = vld [vmem:[#allocation2 + $0xd9] sm:$0xff]  ;;  %401 = vst.msk [vmem:[#allocation4] sm:$0xff] %vm258_vm0, %v369_v13  ;;  %v303_v17 = vld [vmem:[#allocation2 + $0xaa] sm:$0x1] }
  0x39   : > { %403 = vst.msk [vmem:[#allocation4 + $0x10] sm:$0xff] %vm258_vm0, %v5290_v14  ;;  %414 = vst.msk [vmem:[#allocation4 + $0x68] sm:$0xff] %vm258_vm0, %v5295_v15  ;;  %v5308_v18 = vld [vmem:[#allocation2 + $0xb0] sm:$0xff]  ;;  %v5310_v19 = vld [vmem:[#allocation2 + $0xe1] sm:$0xff] }
  0x3a   : > { %525 = vrot.lane.b32.xlu0 %v5250_v59, %s5063_s24  ;;  %322 = vst.msk [vmem:[#allocation2 + $0xa8] sm:$0x1] %vm314_vm1, %v303_v17  ;;  %v304_v20 = vld [vmem:[#allocation2 + $0xc2] sm:$0x1]  ;;  %v5315_v21 = vld [vmem:[#allocation2 + $0xc8] sm:$0xff]  ;;  %v5317_v22 = vld [vmem:[#allocation2 + $0x30] sm:$0xff] }
  0x3b   : > { %527 = vrot.lane.b32.xlu1 %v5254_v62, %s5063_s24  ;;  %416 = vst.msk [vmem:[#allocation4 + $0x78] sm:$0xff] %vm258_vm0, %v5308_v18  ;;  %418 = vst.msk [vmem:[#allocation4 + $0x88] sm:$0xff] %vm258_vm0, %v5315_v21  ;;  %v305_v23 = vld [vmem:[#allocation2 + $0xda] sm:$0x1]  ;;  %v5322_v24 = vld [vmem:[#allocation2 + $0xe0] sm:$0xff] }
  0x3c   : > { %323 = vst.msk [vmem:[#allocation2 + $0xc0] sm:$0x1] %vm314_vm1, %v304_v20  ;;  %v5324_v26 = vld [vmem:[#allocation2 + $0xf1] sm:$0xff]  ;;  %v5326_v31 = vld [vmem:[#allocation2 + $0xf9] sm:$0xff]  ;;  %324 = vst.msk [vmem:[#allocation2 + $0xd8] sm:$0x1] %vm314_vm1, %v305_v23 }
  0x3d   : > { %405 = vst.msk [vmem:[#allocation4 + $0x20] sm:$0xff] %vm258_vm0, %v5317_v22  ;;  %420 = vst.msk [vmem:[#allocation4 + $0x98] sm:$0xff] %vm258_vm0, %v5322_v24  ;;  %v306_v33 = vld [vmem:[#allocation2 + $0xf2] sm:$0x1]  ;;  %v5333_v34 = vld [vmem:[#allocation2 + $0xf8] sm:$0xff] }
  0x3e   : > { %529 = vrot.lane.b32.xlu0 %v5265_v3, %s5063_s24  ;;  %v5339_v35 = vld [vmem:[#allocation2 + $0x48] sm:$0xff]  ;;  %v5341_v36 = vld [vmem:[#allocation2 + $0x60] sm:$0xff]  ;;  %325 = vst.msk [vmem:[#allocation2 + $0xf0] sm:$0x1] %vm314_vm1, %v306_v33  ;;  %v5350_v38 = vld [vmem:[#allocation2 + $0x78] sm:$0xff] }
  0x3f   : > { %531 = vrot.lane.b32.xlu1 %v5277_v8, %s5063_s24  ;;  %422 = vst.msk [vmem:[#allocation4 + $0xa8] sm:$0xff] %vm258_vm0, %v5333_v34  ;;  %v307_v37 = vld [vmem:[#allocation2 + $0x10a] sm:$0x1]  ;;  %407 = vst.msk [vmem:[#allocation4 + $0x30] sm:$0xff] %vm258_vm0, %v5339_v35  ;;  %v5353_v39 = vld [vmem:[#allocation2 + $0x110] sm:$0xff] }
  0x40   : > { %409 = vst.msk [vmem:[#allocation4 + $0x40] sm:$0xff] %vm258_vm0, %v5341_v36  ;;  %v308_v40 = vld [vmem:[#allocation2 + $0x122] sm:$0x1]  ;;  %411 = vst.msk [vmem:[#allocation4 + $0x50] sm:$0xff] %vm258_vm0, %v5350_v38  ;;  %v5357_v41 = vld [vmem:[#allocation2 + $0x90] sm:$0xff] }
  0x41   : > { %326 = vst.msk [vmem:[#allocation2 + $0x108] sm:$0x1] %vm314_vm1, %v307_v37  ;;  %327 = vst.msk [vmem:[#allocation2 + $0x120] sm:$0x1] %vm314_vm1, %v308_v40  ;;  %v5362_v42 = vld [vmem:[#allocation2 + $0x128] sm:$0xff]  ;;  %v5369_v46 = vld [vmem:[#allocation2 + $0x140] sm:$0xff] }
  0x42   : > { %533 = vrot.lane.b32.xlu0 %v5301_v16, %s5063_s24  ;;  %424 = vst.msk [vmem:[#allocation4 + $0xb8] sm:$0xff] %vm258_vm0, %v5353_v39  ;;  %v309_v45 = vld [vmem:[#allocation2 + $0x13a] sm:$0x1]  ;;  %413 = vst.msk [vmem:[#allocation4 + $0x60] sm:$0xff] %vm258_vm0, %v5357_v41  ;;  %v310_v47 = vld [vmem:[#allocation2 + $0x152] sm:$0x1] }
  0x43   : > { %535 = vrot.lane.b32.xlu1 %v5310_v19, %s5063_s24  ;;  %426 = vst.msk [vmem:[#allocation4 + $0xc8] sm:$0xff] %vm258_vm0, %v5362_v42  ;;  %v311_v48 = vld [vmem:[#allocation2 + $0x16a] sm:$0x1]  ;;  %428 = vst.msk [vmem:[#allocation4 + $0xd8] sm:$0xff] %vm258_vm0, %v5369_v46  ;;  %v5383_v55 = vld [vmem:[#allocation2 + $0x111] sm:$0xff] }
  0x44   : > { %328 = vst.msk [vmem:[#allocation2 + $0x138] sm:$0x1] %vm314_vm1, %v309_v45  ;;  %v5375_v51 = vld [vmem:[#allocation2 + $0xa8] sm:$0xff]  ;;  %329 = vst.msk [vmem:[#allocation2 + $0x150] sm:$0x1] %vm314_vm1, %v310_v47  ;;  %v5387_v56 = vld [vmem:[#allocation2 + $0xc0] sm:$0xff] }
  0x45   : > { %330 = vst.msk [vmem:[#allocation2 + $0x168] sm:$0x1] %vm314_vm1, %v311_v48  ;;  %v5381_v52 = vld [vmem:[#allocation2 + $0x109] sm:$0xff]  ;;  %v5391_v57 = vld [vmem:[#allocation2 + $0xd8] sm:$0xff]  ;;  %v5411_v1 = vld [vmem:[#allocation2 + $0x121] sm:$0xff] }
  0x46   : > { %537 = vrot.lane.b32.xlu0 %v5324_v26, %s5063_s24  ;;  %415 = vst.msk [vmem:[#allocation4 + $0x70] sm:$0xff] %vm258_vm0, %v5375_v51  ;;  %417 = vst.msk [vmem:[#allocation4 + $0x80] sm:$0xff] %vm258_vm0, %v5387_v56  ;;  %v5393_v58 = vld [vmem:[#allocation2 + $0x158] sm:$0xff]  ;;  %v5397_v60 = vld [vmem:[#allocation2 + $0xf0] sm:$0xff] }
  0x47   : > { %539 = vrot.lane.b32.xlu1 %v5326_v31, %s5063_s24  ;;  %419 = vst.msk [vmem:[#allocation4 + $0x90] sm:$0xff] %vm258_vm0, %v5391_v57  ;;  %430 = vst.msk [vmem:[#allocation4 + $0xe8] sm:$0xff] %vm258_vm0, %v5393_v58  ;;  %v255_v61 = vld [vmem:[%s5121_s23 + $0xf0] sm:$0xff]  ;;  %v5441_v17 = vld [vmem:[#allocation2 + $0x139] sm:$0xff] }
  0x48   : > { %421 = vst.msk [vmem:[#allocation4 + $0xa0] sm:$0xff] %vm258_vm0, %v5397_v60  ;;  %v5408_v0 = vld [vmem:[#allocation2 + $0x108] sm:$0xff]  ;;  %289 = vst.msk [vmem:[#allocation2 + $0x181] sm:$0xff] %vm258_vm0, %v255_v61  ;;  %v5417_v5 = vld [vmem:[#allocation2 + $0x120] sm:$0xff] }
  0x49   : > { %v5413_v4 = vld [vmem:[#allocation2 + $0x129] sm:$0xff]  ;;  %423 = vst.msk [vmem:[#allocation4 + $0xb0] sm:$0xff] %vm258_vm0, %v5408_v0  ;;  %425 = vst.msk [vmem:[#allocation4 + $0xc0] sm:$0xff] %vm258_vm0, %v5417_v5  ;;  %v5443_v20 = vld [vmem:[#allocation2 + $0x141] sm:$0xff] }
  0x4a   : > { %541 = vrot.lane.b32.xlu0 %v5381_v52, %s5063_s24  ;;  %v5423_v10 = vld [vmem:[#allocation2 + $0x170] sm:$0xff]  ;;  %v256_v33 = vld [vmem:[%s5121_s23 + $0xf8] sm:$0xff]  ;;  %v626_v48 = vld [vmem:[#allocation2 + $0x2] sm:$0xff] }
  0x4b   : > { %543 = vrot.lane.b32.xlu1 %v5383_v55, %s5063_s24  ;;  %v5421_v7 = vld [vmem:[#allocation2 + $0x138] sm:$0xff]  ;;  %v5427_v12 = vld [vmem:[#allocation2 + $0x150] sm:$0xff]  ;;  %432 = vst.msk [vmem:[#allocation4 + $0xf8] sm:$0xff] %vm258_vm0, %v5423_v10  ;;  %290 = vst.msk [vmem:[#allocation2 + $0x189] sm:$0xff] %vm258_vm0, %v256_v33 }
  0x4c   : > { %427 = vst.msk [vmem:[#allocation4 + $0xd0] sm:$0xff] %vm258_vm0, %v5421_v7  ;;  %7297 = vst [vmem:[#allocation5_spill] sm:$0xff] %v5427_v12  ;;  %v5429_v13 = vld [vmem:[#allocation2 + $0x168] sm:$0xff]  ;;  %v5451_v37 = vld [vmem:[#allocation2 + $0x151] sm:$0xff] }
  0x4d   : > { %429 = vst.msk [vmem:[#allocation4 + $0xe0] sm:$0xff] %vm258_vm0, %v5427_v12  ;;  %431 = vst.msk [vmem:[#allocation4 + $0xf0] sm:$0xff] %vm258_vm0, %v5429_v13  ;;  %v5453_v40 = vld [vmem:[#allocation2 + $0x159] sm:$0xff]  ;;  %v5460_v45 = vld [vmem:[#allocation2 + $0x169] sm:$0xff] }
  0x4e   : > { %545 = vrot.lane.b32.xlu0 %v5411_v1, %s5063_s24  ;;  %7298 = vst [vmem:[#allocation6_spill] sm:$0xff] %v5451_v37  ;;  %7299 = vst [vmem:[#allocation7_spill] sm:$0xff] %v5453_v40  ;;  %v5462_v47 = vld [vmem:[#allocation2 + $0x171] sm:$0xff]  ;;  %v5472_v33 = vld [vmem:[#allocation2 + $0x22] sm:$0xff] }
  0x4f   : > { %547 = vrot.lane.b32.xlu1 %v5413_v4, %s5063_s24  ;;  %v312_v23 = vld [vmem:[#allocation2 + $0x182] sm:$0x1]  ;;  %7300 = vst [vmem:[#allocation8_spill] sm:$0xff] %v5460_v45  ;;  %7301 = vst [vmem:[#allocation9_spill] sm:$0xff] %v5462_v47  ;;  %v627_v61 = vld [vmem:[#allocation2 + $0xa] sm:$0xff] }
  0x50   : > { %331 = vst.msk [vmem:[#allocation2 + $0x180] sm:$0x1] %vm314_vm1, %v312_v23  ;;  %v5470_v23 = vld [vmem:[#allocation2 + $0x1a] sm:$0xff]  ;;  %7303 = vst [vmem:[#allocation11_spill] sm:$0xff] %v5472_v33 }
  0x51   : > { %7302 = vst [vmem:[#allocation10_spill] sm:$0xff] %v5470_v23 }
  0x52   : > { %549 = vrot.lane.b32.xlu0 %v5441_v17, %s5063_s24 }
  0x53   : > { %551 = vrot.lane.b32.xlu1 %v5443_v20, %s5063_s24 }
  0x56   : > { %553 = vrot.lane.b32.xlu0 %v5451_v37, %s5063_s24 }
  0x57   : > { %555 = vrot.lane.b32.xlu1 %v5453_v40, %s5063_s24 }
  0x5a   : > { %557 = vrot.lane.b32.xlu0 %v5460_v45, %s5063_s24  ;;  %v5478_v45 = vld [vmem:[#allocation2 + $0x32] sm:$0xff] }
  0x5b   : > { %559 = vrot.lane.b32.xlu1 %v5462_v47, %s5063_s24  ;;  %7304 = vst [vmem:[#allocation12_spill] sm:$0xff] %v5478_v45  ;;  %v5480_v47 = vld [vmem:[#allocation2 + $0x3a] sm:$0xff] }
  0x5c   : > { %7305 = vst [vmem:[#allocation13_spill] sm:$0xff] %v5480_v47 }
  0x5e   : > { %690 = vrot.lane.b32.xlu0 %v626_v48, %s5064_s25  ;;  %v5486_v48 = vld [vmem:[#allocation2 + $0x4a] sm:$0xff] }
  0x5f   : > { %692 = vrot.lane.b32.xlu1 %v627_v61, %s5064_s25  ;;  %7306 = vst [vmem:[#allocation14_spill] sm:$0xff] %v5486_v48  ;;  %v5488_v61 = vld [vmem:[#allocation2 + $0x52] sm:$0xff] }
  0x60   : > { %7307 = vst [vmem:[#allocation15_spill] sm:$0xff] %v5488_v61 }
  0x62   : > { %694 = vrot.lane.b32.xlu0 %v5470_v23, %s5064_s25  ;;  %v5496_v23 = vld [vmem:[#allocation2 + $0x6a] sm:$0xff] }
  0x63   : > { %696 = vrot.lane.b32.xlu1 %v5472_v33, %s5064_s25  ;;  %v5494_v33 = vld [vmem:[#allocation2 + $0x62] sm:$0xff]  ;;  %7309 = vst [vmem:[#allocation17_spill] sm:$0xff] %v5496_v23 }
  0x64   : > { %7308 = vst [vmem:[#allocation16_spill] sm:$0xff] %v5494_v33 }
  0x66   : > { %698 = vrot.lane.b32.xlu0 %v5478_v45, %s5064_s25  ;;  %v5504_v45 = vld [vmem:[#allocation2 + $0x82] sm:$0xff] }
  0x67   : > { %700 = vrot.lane.b32.xlu1 %v5480_v47, %s5064_s25  ;;  %v5502_v47 = vld [vmem:[#allocation2 + $0x7a] sm:$0xff]  ;;  %7311 = vst [vmem:[#allocation19_spill] sm:$0xff] %v5504_v45 }
  0x68   : > { %7310 = vst [vmem:[#allocation18_spill] sm:$0xff] %v5502_v47 }
  0x6a   : > { %702 = vrot.lane.b32.xlu0 %v5486_v48, %s5064_s25  ;;  %v5512_v48 = vld [vmem:[#allocation2 + $0x9a] sm:$0xff] }
  0x6b   : > { %704 = vrot.lane.b32.xlu1 %v5488_v61, %s5064_s25  ;;  %v5510_v61 = vld [vmem:[#allocation2 + $0x92] sm:$0xff]  ;;  %7313 = vst [vmem:[#allocation21_spill] sm:$0xff] %v5512_v48 }
  0x6c   : > { %7312 = vst [vmem:[#allocation20_spill] sm:$0xff] %v5510_v61 }
  0x6e   : > { %706 = vrot.lane.b32.xlu0 %v5494_v33, %s5064_s25  ;;  %v5520_v33 = vld [vmem:[#allocation2 + $0xb2] sm:$0xff] }
  0x6f   : > { %708 = vrot.lane.b32.xlu1 %v5496_v23, %s5064_s25  ;;  %v5518_v23 = vld [vmem:[#allocation2 + $0xaa] sm:$0xff]  ;;  %7315 = vst [vmem:[#allocation23_spill] sm:$0xff] %v5520_v33 }
  0x70   : > { %7314 = vst [vmem:[#allocation22_spill] sm:$0xff] %v5518_v23 }
  0x72   : > { %710 = vrot.lane.b32.xlu0 %v5502_v47, %s5064_s25  ;;  %v5528_v47 = vld [vmem:[#allocation2 + $0xca] sm:$0xff] }
  0x73   : > { %712 = vrot.lane.b32.xlu1 %v5504_v45, %s5064_s25  ;;  %v5526_v45 = vld [vmem:[#allocation2 + $0xc2] sm:$0xff]  ;;  %7317 = vst [vmem:[#allocation25_spill] sm:$0xff] %v5528_v47 }
  0x74   : > { %7316 = vst [vmem:[#allocation24_spill] sm:$0xff] %v5526_v45 }
  0x76   : > { %714 = vrot.lane.b32.xlu0 %v5510_v61, %s5064_s25  ;;  %v5536_v61 = vld [vmem:[#allocation2 + $0xe2] sm:$0xff] }
  0x77   : > { %716 = vrot.lane.b32.xlu1 %v5512_v48, %s5064_s25  ;;  %v5534_v48 = vld [vmem:[#allocation2 + $0xda] sm:$0xff]  ;;  %7319 = vst [vmem:[#allocation27_spill] sm:$0xff] %v5536_v61 }
  0x78   : > { %7318 = vst [vmem:[#allocation26_spill] sm:$0xff] %v5534_v48 }
  0x7a   : > { %718 = vrot.lane.b32.xlu0 %v5518_v23, %s5064_s25  ;;  %v5544_v23 = vld [vmem:[#allocation2 + $0xfa] sm:$0xff] }
  0x7b   : > { %720 = vrot.lane.b32.xlu1 %v5520_v33, %s5064_s25  ;;  %v5542_v33 = vld [vmem:[#allocation2 + $0xf2] sm:$0xff]  ;;  %7321 = vst [vmem:[#allocation29_spill] sm:$0xff] %v5544_v23 }
  0x7c   : > { %7320 = vst [vmem:[#allocation28_spill] sm:$0xff] %v5542_v33 }
  0x7e   : > { %722 = vrot.lane.b32.xlu0 %v5526_v45, %s5064_s25  ;;  %v5552_v45 = vld [vmem:[#allocation2 + $0x112] sm:$0xff] }
  0x7f   : > { %724 = vrot.lane.b32.xlu1 %v5528_v47, %s5064_s25  ;;  %v5550_v47 = vld [vmem:[#allocation2 + $0x10a] sm:$0xff]  ;;  %7323 = vst [vmem:[#allocation31_spill] sm:$0xff] %v5552_v45 }
  0x80   : > { %7322 = vst [vmem:[#allocation30_spill] sm:$0xff] %v5550_v47 }
  0x82   : > { %726 = vrot.lane.b32.xlu0 %v5534_v48, %s5064_s25  ;;  %v5560_v48 = vld [vmem:[#allocation2 + $0x12a] sm:$0xff] }
  0x83   : > { %728 = vrot.lane.b32.xlu1 %v5536_v61, %s5064_s25  ;;  %v5558_v61 = vld [vmem:[#allocation2 + $0x122] sm:$0xff]  ;;  %7325 = vst [vmem:[#allocation33_spill] sm:$0xff] %v5560_v48 }
  0x84   : > { %7324 = vst [vmem:[#allocation32_spill] sm:$0xff] %v5558_v61 }
  0x86   : > { %730 = vrot.lane.b32.xlu0 %v5542_v33, %s5064_s25  ;;  %v5568_v33 = vld [vmem:[#allocation2 + $0x142] sm:$0xff] }
  0x87   : > { %732 = vrot.lane.b32.xlu1 %v5544_v23, %s5064_s25  ;;  %v5566_v23 = vld [vmem:[#allocation2 + $0x13a] sm:$0xff]  ;;  %7327 = vst [vmem:[#allocation35_spill] sm:$0xff] %v5568_v33 }
  0x88   : > { %7326 = vst [vmem:[#allocation34_spill] sm:$0xff] %v5566_v23 }
  0x8a   : > { %734 = vrot.lane.b32.xlu0 %v5550_v47, %s5064_s25 }
  0x8b   : > { %736 = vrot.lane.b32.xlu1 %v5552_v45, %s5064_s25 }
  0x8e   : > { %738 = vrot.lane.b32.xlu0 %v5558_v61, %s5064_s25  ;;  %v5576_v61 = vld [vmem:[#allocation2 + $0x152] sm:$0xff] }
  0x8f   : > { %740 = vrot.lane.b32.xlu1 %v5560_v48, %s5064_s25  ;;  %v5578_v48 = vld [vmem:[#allocation2 + $0x15a] sm:$0xff] }
  0x90   : > { %v498_v40 = vpop.permute.xlu0 %497 }
  0x91   : > { %v502_v47 = vpop.permute.xlu1 %501  ;;  %594 = vst.msk [vmem:[#allocation4] sm:$0xff] %vm593_vm2, %v498_v40  ;;  %v5586_v40 = vld [vmem:[#allocation2 + $0x16a] sm:$0xff] }
  0x92   : > { %596 = vst.msk [vmem:[#allocation4 + $0x10] sm:$0xff] %vm593_vm2, %v502_v47  ;;  %742 = vrot.lane.b32.xlu0 %v5566_v23, %s5064_s25  ;;  %v5588_v47 = vld [vmem:[#allocation2 + $0x172] sm:$0xff] }
  0x93   : > { %744 = vrot.lane.b32.xlu1 %v5568_v33, %s5064_s25 }
  0x94   : > { %v500_v45 = vpop.permute.xlu0 %499 }
  0x95   : > { %v504_v37 = vpop.permute.xlu1 %503  ;;  %595 = vst.msk [vmem:[#allocation4 + $0x8] sm:$0xff] %vm593_vm2, %v500_v45 }
  0x96   : > { %597 = vst.msk [vmem:[#allocation4 + $0x18] sm:$0xff] %vm593_vm2, %v504_v37  ;;  %746 = vrot.lane.b32.xlu0 %v5576_v61, %s5064_s25 }
  0x97   : > { %748 = vrot.lane.b32.xlu1 %v5578_v48, %s5064_s25 }
  0x98   : > { %v506_v33 = vpop.permute.xlu0 %505 }
  0x99   : > { %v508_v23 = vpop.permute.xlu1 %507  ;;  %598 = vst.msk [vmem:[#allocation4 + $0x20] sm:$0xff] %vm593_vm2, %v506_v33 }
  0x9a   : > { %599 = vst.msk [vmem:[#allocation4 + $0x28] sm:$0xff] %vm593_vm2, %v508_v23  ;;  %750 = vrot.lane.b32.xlu0 %v5586_v40, %s5064_s25 }
  0x9b   : > { %752 = vrot.lane.b32.xlu1 %v5588_v47, %s5064_s25 }
  0x9c   : > { %v510_v37 = vpop.permute.xlu0 %509 }
  0x9d   : > { %v512_v45 = vpop.permute.xlu1 %511  ;;  %600 = vst.msk [vmem:[#allocation4 + $0x30] sm:$0xff] %vm593_vm2, %v510_v37 }
  0x9e   : > { %601 = vst.msk [vmem:[#allocation4 + $0x38] sm:$0xff] %vm593_vm2, %v512_v45  ;;  %883 = vrot.lane.b32.xlu0 %v5290_v14, %s5065_s26 }
  0x9f   : > { %885 = vrot.lane.b32.xlu1 %v5258_v63, %s5065_s26 }
  0xa0   : > { %v514_v23 = vpop.permute.xlu0 %513 }
  0xa1   : > { %v516_v33 = vpop.permute.xlu1 %515  ;;  %602 = vst.msk [vmem:[#allocation4 + $0x40] sm:$0xff] %vm593_vm2, %v514_v23 }
  0xa2   : > { %603 = vst.msk [vmem:[#allocation4 + $0x48] sm:$0xff] %vm593_vm2, %v516_v33  ;;  %887 = vrot.lane.b32.xlu0 %v5317_v22, %s5065_s26 }
  0xa3   : > { %889 = vrot.lane.b32.xlu1 %v5263_v2, %s5065_s26 }
  0xa4   : > { %v518_v37 = vpop.permute.xlu0 %517 }
  0xa5   : > { %v520_v45 = vpop.permute.xlu1 %519  ;;  %604 = vst.msk [vmem:[#allocation4 + $0x50] sm:$0xff] %vm593_vm2, %v518_v37 }
  0xa6   : > { %605 = vst.msk [vmem:[#allocation4 + $0x58] sm:$0xff] %vm593_vm2, %v520_v45  ;;  %891 = vrot.lane.b32.xlu0 %v5339_v35, %s5065_s26 }
  0xa7   : > { %893 = vrot.lane.b32.xlu1 %v5275_v6, %s5065_s26 }
  0xa8   : > { %v522_v63 = vpop.permute.xlu0 %521 }
  0xa9   : > { %v524_v14 = vpop.permute.xlu1 %523  ;;  %606 = vst.msk [vmem:[#allocation4 + $0x60] sm:$0xff] %vm593_vm2, %v522_v63 }
  0xaa   : > { %607 = vst.msk [vmem:[#allocation4 + $0x68] sm:$0xff] %vm593_vm2, %v524_v14  ;;  %895 = vrot.lane.b32.xlu0 %v5341_v36, %s5065_s26 }
  0xab   : > { %897 = vrot.lane.b32.xlu1 %v5283_v9, %s5065_s26 }
  0xac   : > { %v526_v23 = vpop.permute.xlu0 %525 }
  0xad   : > { %v528_v33 = vpop.permute.xlu1 %527  ;;  %608 = vst.msk [vmem:[#allocation4 + $0x70] sm:$0xff] %vm593_vm2, %v526_v23 }
  0xae   : > { %609 = vst.msk [vmem:[#allocation4 + $0x78] sm:$0xff] %vm593_vm2, %v528_v33  ;;  %899 = vrot.lane.b32.xlu0 %v5350_v38, %s5065_s26 }
  0xaf   : > { %901 = vrot.lane.b32.xlu1 %v5288_v11, %s5065_s26 }
  0xb0   : > { %v530_v37 = vpop.permute.xlu0 %529 }
  0xb1   : > { %v532_v45 = vpop.permute.xlu1 %531  ;;  %610 = vst.msk [vmem:[#allocation4 + $0x80] sm:$0xff] %vm593_vm2, %v530_v37 }
  0xb2   : > { %611 = vst.msk [vmem:[#allocation4 + $0x88] sm:$0xff] %vm593_vm2, %v532_v45  ;;  %903 = vrot.lane.b32.xlu0 %v5357_v41, %s5065_s26 }
  0xb3   : > { %905 = vrot.lane.b32.xlu1 %v5295_v15, %s5065_s26 }
  0xb4   : > { %v534_v63 = vpop.permute.xlu0 %533 }
  0xb5   : > { %v536_v14 = vpop.permute.xlu1 %535  ;;  %612 = vst.msk [vmem:[#allocation4 + $0x90] sm:$0xff] %vm593_vm2, %v534_v63 }
  0xb6   : > { %613 = vst.msk [vmem:[#allocation4 + $0x98] sm:$0xff] %vm593_vm2, %v536_v14  ;;  %907 = vrot.lane.b32.xlu0 %v5375_v51, %s5065_s26 }
  0xb7   : > { %909 = vrot.lane.b32.xlu1 %v5308_v18, %s5065_s26 }
  0xb8   : > { %v538_v23 = vpop.permute.xlu0 %537 }
  0xb9   : > { %v540_v33 = vpop.permute.xlu1 %539  ;;  %614 = vst.msk [vmem:[#allocation4 + $0xa0] sm:$0xff] %vm593_vm2, %v538_v23 }
  0xba   : > { %615 = vst.msk [vmem:[#allocation4 + $0xa8] sm:$0xff] %vm593_vm2, %v540_v33  ;;  %911 = vrot.lane.b32.xlu0 %v5387_v56, %s5065_s26 }
  0xbb   : > { %913 = vrot.lane.b32.xlu1 %v5315_v21, %s5065_s26 }
  0xbc   : > { %v542_v37 = vpop.permute.xlu0 %541 }
  0xbd   : > { %v544_v45 = vpop.permute.xlu1 %543  ;;  %616 = vst.msk [vmem:[#allocation4 + $0xb0] sm:$0xff] %vm593_vm2, %v542_v37 }
  0xbe   : > { %617 = vst.msk [vmem:[#allocation4 + $0xb8] sm:$0xff] %vm593_vm2, %v544_v45  ;;  %915 = vrot.lane.b32.xlu0 %v5391_v57, %s5065_s26 }
  0xbf   : > { %917 = vrot.lane.b32.xlu1 %v5322_v24, %s5065_s26 }
  0xc0   : > { %v546_v63 = vpop.permute.xlu0 %545 }
  0xc1   : > { %v548_v14 = vpop.permute.xlu1 %547  ;;  %618 = vst.msk [vmem:[#allocation4 + $0xc0] sm:$0xff] %vm593_vm2, %v546_v63 }
  0xc2   : > { %619 = vst.msk [vmem:[#allocation4 + $0xc8] sm:$0xff] %vm593_vm2, %v548_v14  ;;  %919 = vrot.lane.b32.xlu0 %v5397_v60, %s5065_s26 }
  0xc3   : > { %921 = vrot.lane.b32.xlu1 %v5333_v34, %s5065_s26 }
  0xc4   : > { %v550_v23 = vpop.permute.xlu0 %549 }
  0xc5   : > { %v552_v33 = vpop.permute.xlu1 %551  ;;  %620 = vst.msk [vmem:[#allocation4 + $0xd0] sm:$0xff] %vm593_vm2, %v550_v23 }
  0xc6   : > { %621 = vst.msk [vmem:[#allocation4 + $0xd8] sm:$0xff] %vm593_vm2, %v552_v33  ;;  %923 = vrot.lane.b32.xlu0 %v5408_v0, %s5065_s26 }
  0xc7   : > { %925 = vrot.lane.b32.xlu1 %v5353_v39, %s5065_s26 }
  0xc8   : > { %v554_v37 = vpop.permute.xlu0 %553 }
  0xc9   : > { %v556_v45 = vpop.permute.xlu1 %555  ;;  %622 = vst.msk [vmem:[#allocation4 + $0xe0] sm:$0xff] %vm593_vm2, %v554_v37  ;;  %v349_v37 = vld [vmem:[#allocation2 + $0x18f] sm:$0x1] }
  0xca   : > { %623 = vst.msk [vmem:[#allocation4 + $0xe8] sm:$0xff] %vm593_vm2, %v556_v45  ;;  %927 = vrot.lane.b32.xlu0 %v5417_v5, %s5065_s26 }
  0xcb   : > { %929 = vrot.lane.b32.xlu1 %v5362_v42, %s5065_s26  ;;  %367 = vst.msk [vmem:[#allocation2 + $0x191] sm:$0x1] %vm314_vm1, %v349_v37 }
  0xcc   : > { %v558_v63 = vpop.permute.xlu0 %557 }
  0xcd   : > { %v560_v14 = vpop.permute.xlu1 %559  ;;  %624 = vst.msk [vmem:[#allocation4 + $0xf0] sm:$0xff] %vm593_vm2, %v558_v63 }
  0xce   : > { %625 = vst.msk [vmem:[#allocation4 + $0xf8] sm:$0xff] %vm593_vm2, %v560_v14  ;;  %931 = vrot.lane.b32.xlu0 %v5421_v7, %s5065_s26  ;;  %v849_v14 = vld [vmem:[#allocation2 + $0x180] sm:$0xff] }
  0xcf   : > { %933 = vrot.lane.b32.xlu1 %v5369_v46, %s5065_s26 }
  0xd0   : > { %v691_v23 = vpop.permute.xlu0 %690 }
  0xd1   : > { %v693_v33 = vpop.permute.xlu1 %692  ;;  %787 = vst.msk [vmem:[#allocation4] sm:$0xff] %vm786_vm3, %v691_v23  ;;  %v850_v23 = vld [vmem:[#allocation2 + $0x188] sm:$0xff] }
  0xd2   : > { %788 = vst.msk [vmem:[#allocation4 + $0x8] sm:$0xff] %vm786_vm3, %v693_v33  ;;  %935 = vrot.lane.b32.xlu0 %v5427_v12, %s5065_s26 }
  0xd3   : > { %937 = vrot.lane.b32.xlu1 %v5393_v58, %s5065_s26 }
  0xd4   : > { %v695_v45 = vpop.permute.xlu0 %694 }
  0xd5   : > { %v697_v63 = vpop.permute.xlu1 %696  ;;  %789 = vst.msk [vmem:[#allocation4 + $0x10] sm:$0xff] %vm786_vm3, %v695_v45 }
  0xd6   : > { %790 = vst.msk [vmem:[#allocation4 + $0x18] sm:$0xff] %vm786_vm3, %v697_v63  ;;  %939 = vrot.lane.b32.xlu0 %v5429_v13, %s5065_s26 }
  0xd7   : > { %941 = vrot.lane.b32.xlu1 %v5423_v10, %s5065_s26 }
  0xd8   : > { %v699_v33 = vpop.permute.xlu0 %698 }
  0xd9   : > { %v701_v12 = vpop.permute.xlu1 %700  ;;  %791 = vst.msk [vmem:[#allocation4 + $0x20] sm:$0xff] %vm786_vm3, %v699_v33  ;;  %v5781_v33 = vld [vmem:[#allocation2 + $0x181] sm:$0xff] }
  0xda   : > { %792 = vst.msk [vmem:[#allocation4 + $0x28] sm:$0xff] %vm786_vm3, %v701_v12  ;;  %943 = vrot.lane.b32.xlu0 %v849_v14, %s5065_s26 }
  0xdb   : > { %945 = vrot.lane.b32.xlu1 %v850_v23, %s5065_s26  ;;  %s5071_s26 = smov 40  }
  0xdc   : > { %v703_v37 = vpop.permute.xlu0 %702 }
  0xdd   : > { %v705_v45 = vpop.permute.xlu1 %704  ;;  %793 = vst.msk [vmem:[#allocation4 + $0x30] sm:$0xff] %vm786_vm3, %v703_v37  ;;  %v5783_v37 = vld [vmem:[#allocation2 + $0x189] sm:$0xff] }
  0xde   : > { %794 = vst.msk [vmem:[#allocation4 + $0x38] sm:$0xff] %vm786_vm3, %v705_v45  ;;  %1076 = vrot.lane.b32.xlu0 %v5170_v25, %s5066_s27 }
  0xdf   : > { %1078 = vrot.lane.b32.xlu1 %v5178_v27, %s5066_s27 }
  0xe0   : > { %v707_v10 = vpop.permute.xlu0 %706 }
  0xe1   : > { %v709_v13 = vpop.permute.xlu1 %708  ;;  %795 = vst.msk [vmem:[#allocation4 + $0x40] sm:$0xff] %vm786_vm3, %v707_v10 }
  0xe2   : > { %796 = vst.msk [vmem:[#allocation4 + $0x48] sm:$0xff] %vm786_vm3, %v709_v13  ;;  %1080 = vrot.lane.b32.xlu0 %v5183_v28, %s5066_s27 }
  0xe3   : > { %1082 = vrot.lane.b32.xlu1 %v5185_v29, %s5066_s27 }
  0xe4   : > { %v711_v12 = vpop.permute.xlu0 %710 }
  0xe5   : > { %v713_v63 = vpop.permute.xlu1 %712  ;;  %797 = vst.msk [vmem:[#allocation4 + $0x50] sm:$0xff] %vm786_vm3, %v711_v12 }
  0xe6   : > { %798 = vst.msk [vmem:[#allocation4 + $0x58] sm:$0xff] %vm786_vm3, %v713_v63  ;;  %1084 = vrot.lane.b32.xlu0 %v5187_v30, %s5066_s27  ;;  %v7332_v63 = vld [vmem:[#allocation10_spill] sm:$0xff] }
  0xe7   : > { %1086 = vrot.lane.b32.xlu1 %v5194_v32, %s5066_s27 }
  0xe8   : > { %v715_v25 = vpop.permute.xlu0 %714 }
  0xe9   : > { %v717_v27 = vpop.permute.xlu1 %716  ;;  %799 = vst.msk [vmem:[#allocation4 + $0x60] sm:$0xff] %vm786_vm3, %v715_v25  ;;  %v7333_v25 = vld [vmem:[#allocation11_spill] sm:$0xff] }
  0xea   : > { %800 = vst.msk [vmem:[#allocation4 + $0x68] sm:$0xff] %vm786_vm3, %v717_v27  ;;  %1088 = vrot.lane.b32.xlu0 %v5216_v43, %s5066_s27 }
  0xeb   : > { %1090 = vrot.lane.b32.xlu1 %v5218_v44, %s5066_s27 }
  0xec   : > { %v719_v28 = vpop.permute.xlu0 %718 }
  0xed   : > { %v721_v29 = vpop.permute.xlu1 %720  ;;  %801 = vst.msk [vmem:[#allocation4 + $0x70] sm:$0xff] %vm786_vm3, %v719_v28 }
  0xee   : > { %802 = vst.msk [vmem:[#allocation4 + $0x78] sm:$0xff] %vm786_vm3, %v721_v29  ;;  %1092 = vrot.lane.b32.xlu0 %v5230_v49, %s5066_s27  ;;  %v7334_v29 = vld [vmem:[#allocation12_spill] sm:$0xff] }
  0xef   : > { %1094 = vrot.lane.b32.xlu1 %v5232_v50, %s5066_s27 }
  0xf0   : > { %v723_v30 = vpop.permute.xlu0 %722 }
  0xf1   : > { %v725_v32 = vpop.permute.xlu1 %724  ;;  %803 = vst.msk [vmem:[#allocation4 + $0x80] sm:$0xff] %vm786_vm3, %v723_v30  ;;  %v7335_v30 = vld [vmem:[#allocation13_spill] sm:$0xff] }
  0xf2   : > { %804 = vst.msk [vmem:[#allocation4 + $0x88] sm:$0xff] %vm786_vm3, %v725_v32  ;;  %1096 = vrot.lane.b32.xlu0 %v5240_v53, %s5066_s27 }
  0xf3   : > { %1098 = vrot.lane.b32.xlu1 %v5242_v54, %s5066_s27 }
  0xf4   : > { %v727_v43 = vpop.permute.xlu0 %726 }
  0xf5   : > { %v729_v44 = vpop.permute.xlu1 %728  ;;  %805 = vst.msk [vmem:[#allocation4 + $0x90] sm:$0xff] %vm786_vm3, %v727_v43 }
  0xf6   : > { %806 = vst.msk [vmem:[#allocation4 + $0x98] sm:$0xff] %vm786_vm3, %v729_v44  ;;  %1100 = vrot.lane.b32.xlu0 %v5250_v59, %s5066_s27  ;;  %v7336_v44 = vld [vmem:[#allocation14_spill] sm:$0xff] }
  0xf7   : > { %1102 = vrot.lane.b32.xlu1 %v5254_v62, %s5066_s27 }
  0xf8   : > { %v731_v49 = vpop.permute.xlu0 %730 }
  0xf9   : > { %v733_v50 = vpop.permute.xlu1 %732  ;;  %807 = vst.msk [vmem:[#allocation4 + $0xa0] sm:$0xff] %vm786_vm3, %v731_v49  ;;  %v7337_v49 = vld [vmem:[#allocation15_spill] sm:$0xff] }
  0xfa   : > { %808 = vst.msk [vmem:[#allocation4 + $0xa8] sm:$0xff] %vm786_vm3, %v733_v50  ;;  %1104 = vrot.lane.b32.xlu0 %v5265_v3, %s5066_s27 }
  0xfb   : > { %1106 = vrot.lane.b32.xlu1 %v5277_v8, %s5066_s27 }
  0xfc   : > { %v735_v53 = vpop.permute.xlu0 %734 }
  0xfd   : > { %v737_v54 = vpop.permute.xlu1 %736  ;;  %809 = vst.msk [vmem:[#allocation4 + $0xb0] sm:$0xff] %vm786_vm3, %v735_v53 }
  0xfe   : > { %810 = vst.msk [vmem:[#allocation4 + $0xb8] sm:$0xff] %vm786_vm3, %v737_v54  ;;  %1108 = vrot.lane.b32.xlu0 %v5301_v16, %s5066_s27  ;;  %v7338_v54 = vld [vmem:[#allocation16_spill] sm:$0xff] }
  0xff   : > { %1110 = vrot.lane.b32.xlu1 %v5310_v19, %s5066_s27 }
 0x100   : > { %v739_v59 = vpop.permute.xlu0 %738 }
 0x101   : > { %v741_v62 = vpop.permute.xlu1 %740  ;;  %811 = vst.msk [vmem:[#allocation4 + $0xc0] sm:$0xff] %vm786_vm3, %v739_v59  ;;  %v7339_v59 = vld [vmem:[#allocation17_spill] sm:$0xff] }
 0x102   : > { %812 = vst.msk [vmem:[#allocation4 + $0xc8] sm:$0xff] %vm786_vm3, %v741_v62  ;;  %1112 = vrot.lane.b32.xlu0 %v5324_v26, %s5066_s27 }
 0x103   : > { %1114 = vrot.lane.b32.xlu1 %v5326_v31, %s5066_s27 }
 0x104   : > { %v743_v3 = vpop.permute.xlu0 %742 }
 0x105   : > { %v745_v8 = vpop.permute.xlu1 %744  ;;  %813 = vst.msk [vmem:[#allocation4 + $0xd0] sm:$0xff] %vm786_vm3, %v743_v3 }
 0x106   : > { %814 = vst.msk [vmem:[#allocation4 + $0xd8] sm:$0xff] %vm786_vm3, %v745_v8  ;;  %1116 = vrot.lane.b32.xlu0 %v5381_v52, %s5066_s27  ;;  %v7340_v8 = vld [vmem:[#allocation18_spill] sm:$0xff] }
 0x107   : > { %1118 = vrot.lane.b32.xlu1 %v5383_v55, %s5066_s27 }
 0x108   : > { %v747_v16 = vpop.permute.xlu0 %746 }
 0x109   : > { %v749_v19 = vpop.permute.xlu1 %748  ;;  %815 = vst.msk [vmem:[#allocation4 + $0xe0] sm:$0xff] %vm786_vm3, %v747_v16  ;;  %v7341_v16 = vld [vmem:[#allocation19_spill] sm:$0xff] }
 0x10a   : > { %816 = vst.msk [vmem:[#allocation4 + $0xe8] sm:$0xff] %vm786_vm3, %v749_v19  ;;  %1120 = vrot.lane.b32.xlu0 %v5411_v1, %s5066_s27  ;;  %v7328_v1 = vld [vmem:[#allocation6_spill] sm:$0xff] }
 0x10b   : > { %1122 = vrot.lane.b32.xlu1 %v5413_v4, %s5066_s27  ;;  %v7329_v4 = vld [vmem:[#allocation7_spill] sm:$0xff] }
 0x10c   : > { %v751_v26 = vpop.permute.xlu0 %750 }
 0x10d   : > { %v753_v31 = vpop.permute.xlu1 %752  ;;  %817 = vst.msk [vmem:[#allocation4 + $0xf0] sm:$0xff] %vm786_vm3, %v751_v26 }
 0x10e   : > { %818 = vst.msk [vmem:[#allocation4 + $0xf8] sm:$0xff] %vm786_vm3, %v753_v31  ;;  %1124 = vrot.lane.b32.xlu0 %v5441_v17, %s5066_s27  ;;  %v7330_v17 = vld [vmem:[#allocation8_spill] sm:$0xff] }
 0x10f   : > { %1126 = vrot.lane.b32.xlu1 %v5443_v20, %s5066_s27  ;;  %v7331_v20 = vld [vmem:[#allocation9_spill] sm:$0xff]  ;;  %v7342_v31 = vld [vmem:[#allocation20_spill] sm:$0xff] }
 0x110   : > { %v884_v52 = vpop.permute.xlu0 %883 }
 0x111   : > { %v886_v55 = vpop.permute.xlu1 %885  ;;  %980 = vst.msk [vmem:[#allocation4] sm:$0xff] %vm979_vm4, %v884_v52  ;;  %v7343_v52 = vld [vmem:[#allocation21_spill] sm:$0xff] }
 0x112   : > { %981 = vst.msk [vmem:[#allocation4 + $0x8] sm:$0xff] %vm979_vm4, %v886_v55  ;;  %1128 = vrot.lane.b32.xlu0 %v7328_v1, %s5066_s27 }
 0x113   : > { %1130 = vrot.lane.b32.xlu1 %v7329_v4, %s5066_s27  ;;  %v7344_v4 = vld [vmem:[#allocation22_spill] sm:$0xff] }
 0x114   : > { %v888_v14 = vpop.permute.xlu0 %887 }
 0x115   : > { %v890_v23 = vpop.permute.xlu1 %889  ;;  %982 = vst.msk [vmem:[#allocation4 + $0x10] sm:$0xff] %vm979_vm4, %v888_v14  ;;  %v7345_v14 = vld [vmem:[#allocation23_spill] sm:$0xff] }
 0x116   : > { %983 = vst.msk [vmem:[#allocation4 + $0x18] sm:$0xff] %vm979_vm4, %v890_v23  ;;  %1132 = vrot.lane.b32.xlu0 %v7330_v17, %s5066_s27 }
 0x117   : > { %1134 = vrot.lane.b32.xlu1 %v7331_v20, %s5066_s27  ;;  %v7346_v20 = vld [vmem:[#allocation24_spill] sm:$0xff] }
 0x118   : > { %v892_v45 = vpop.permute.xlu0 %891 }
 0x119   : > { %v894_v10 = vpop.permute.xlu1 %893  ;;  %984 = vst.msk [vmem:[#allocation4 + $0x20] sm:$0xff] %vm979_vm4, %v892_v45  ;;  %v7347_v45 = vld [vmem:[#allocation25_spill] sm:$0xff] }
 0x11a   : > { %985 = vst.msk [vmem:[#allocation4 + $0x28] sm:$0xff] %vm979_vm4, %v894_v10  ;;  %1136 = vrot.lane.b32.xlu0 %v5781_v33, %s5066_s27 }
 0x11b   : > { %1138 = vrot.lane.b32.xlu1 %v5783_v37, %s5066_s27 }
 0x11c   : > { %v896_v13 = vpop.permute.xlu0 %895 }
 0x11d   : > { %v898_v12 = vpop.permute.xlu1 %897  ;;  %986 = vst.msk [vmem:[#allocation4 + $0x30] sm:$0xff] %vm979_vm4, %v896_v13 }
 0x11e   : > { %987 = vst.msk [vmem:[#allocation4 + $0x38] sm:$0xff] %vm979_vm4, %v898_v12  ;;  %1269 = vrot.lane.b32.xlu0 %v7332_v63, %s5067_s28  ;;  %v7348_v12 = vld [vmem:[#allocation26_spill] sm:$0xff]  ;;  %v7349_v63 = vld [vmem:[#allocation27_spill] sm:$0xff] }
 0x11f   : > { %1271 = vrot.lane.b32.xlu1 %v7333_v25, %s5067_s28 }
 0x120   : > { %v900_v27 = vpop.permute.xlu0 %899 }
 0x121   : > { %v902_v28 = vpop.permute.xlu1 %901  ;;  %988 = vst.msk [vmem:[#allocation4 + $0x40] sm:$0xff] %vm979_vm4, %v900_v27 }
 0x122   : > { %989 = vst.msk [vmem:[#allocation4 + $0x48] sm:$0xff] %vm979_vm4, %v902_v28  ;;  %1273 = vrot.lane.b32.xlu0 %v7334_v29, %s5067_s28  ;;  %v7350_v28 = vld [vmem:[#allocation28_spill] sm:$0xff]  ;;  %v7351_v29 = vld [vmem:[#allocation29_spill] sm:$0xff] }
 0x123   : > { %1275 = vrot.lane.b32.xlu1 %v7335_v30, %s5067_s28 }
 0x124   : > { %v904_v32 = vpop.permute.xlu0 %903 }
 0x125   : > { %v906_v43 = vpop.permute.xlu1 %905  ;;  %990 = vst.msk [vmem:[#allocation4 + $0x50] sm:$0xff] %vm979_vm4, %v904_v32 }
 0x126   : > { %991 = vst.msk [vmem:[#allocation4 + $0x58] sm:$0xff] %vm979_vm4, %v906_v43  ;;  %1277 = vrot.lane.b32.xlu0 %v7336_v44, %s5067_s28  ;;  %v7352_v43 = vld [vmem:[#allocation30_spill] sm:$0xff]  ;;  %v7353_v44 = vld [vmem:[#allocation31_spill] sm:$0xff] }
 0x127   : > { %1279 = vrot.lane.b32.xlu1 %v7337_v49, %s5067_s28 }
 0x128   : > { %v908_v50 = vpop.permute.xlu0 %907 }
 0x129   : > { %v910_v53 = vpop.permute.xlu1 %909  ;;  %992 = vst.msk [vmem:[#allocation4 + $0x60] sm:$0xff] %vm979_vm4, %v908_v50 }
 0x12a   : > { %993 = vst.msk [vmem:[#allocation4 + $0x68] sm:$0xff] %vm979_vm4, %v910_v53  ;;  %1281 = vrot.lane.b32.xlu0 %v7338_v54, %s5067_s28  ;;  %v7354_v53 = vld [vmem:[#allocation32_spill] sm:$0xff]  ;;  %v7355_v54 = vld [vmem:[#allocation33_spill] sm:$0xff] }
 0x12b   : > { %1283 = vrot.lane.b32.xlu1 %v7339_v59, %s5067_s28 }
 0x12c   : > { %v912_v62 = vpop.permute.xlu0 %911 }
 0x12d   : > { %v914_v3 = vpop.permute.xlu1 %913  ;;  %994 = vst.msk [vmem:[#allocation4 + $0x70] sm:$0xff] %vm979_vm4, %v912_v62 }
 0x12e   : > { %995 = vst.msk [vmem:[#allocation4 + $0x78] sm:$0xff] %vm979_vm4, %v914_v3  ;;  %1285 = vrot.lane.b32.xlu0 %v7340_v8, %s5067_s28  ;;  %v7356_v3 = vld [vmem:[#allocation34_spill] sm:$0xff]  ;;  %v7357_v8 = vld [vmem:[#allocation35_spill] sm:$0xff] }
 0x12f   : > { %1287 = vrot.lane.b32.xlu1 %v7341_v16, %s5067_s28 }
 0x130   : > { %v916_v19 = vpop.permute.xlu0 %915 }
 0x131   : > { %v918_v26 = vpop.permute.xlu1 %917  ;;  %996 = vst.msk [vmem:[#allocation4 + $0x80] sm:$0xff] %vm979_vm4, %v916_v19 }
 0x132   : > { %997 = vst.msk [vmem:[#allocation4 + $0x88] sm:$0xff] %vm979_vm4, %v918_v26  ;;  %1289 = vrot.lane.b32.xlu0 %v7342_v31, %s5067_s28 }
 0x133   : > { %1291 = vrot.lane.b32.xlu1 %v7343_v52, %s5067_s28  ;;  %v5881_v52 = vld [vmem:[#allocation2 + $0x182] sm:$0xff] }
 0x134   : > { %v920_v55 = vpop.permute.xlu0 %919 }
 0x135   : > { %v922_v1 = vpop.permute.xlu1 %921  ;;  %998 = vst.msk [vmem:[#allocation4 + $0x90] sm:$0xff] %vm979_vm4, %v920_v55  ;;  %v5883_v55 = vld [vmem:[#allocation2 + $0x18a] sm:$0xff] }
 0x136   : > { %999 = vst.msk [vmem:[#allocation4 + $0x98] sm:$0xff] %vm979_vm4, %v922_v1  ;;  %1293 = vrot.lane.b32.xlu0 %v7344_v4, %s5067_s28 }
 0x137   : > { %1295 = vrot.lane.b32.xlu1 %v7345_v14, %s5067_s28 }
 0x138   : > { %v924_v23 = vpop.permute.xlu0 %923 }
 0x139   : > { %v926_v17 = vpop.permute.xlu1 %925  ;;  %1000 = vst.msk [vmem:[#allocation4 + $0xa0] sm:$0xff] %vm979_vm4, %v924_v23 }
 0x13a   : > { %1001 = vst.msk [vmem:[#allocation4 + $0xa8] sm:$0xff] %vm979_vm4, %v926_v17  ;;  %1297 = vrot.lane.b32.xlu0 %v7346_v20, %s5067_s28  ;;  %v2012_v20 = vld [vmem:[%s7261_s1 + $0x10] sm:$0xff] }
 0x13b   : > { %1299 = vrot.lane.b32.xlu1 %v7347_v45, %s5067_s28 }
 0x13c   : > { %v928_v10 = vpop.permute.xlu0 %927 }
 0x13d   : > { %v930_v13 = vpop.permute.xlu1 %929  ;;  %1002 = vst.msk [vmem:[#allocation4 + $0xb0] sm:$0xff] %vm979_vm4, %v928_v10 }
 0x13e   : > { %1003 = vst.msk [vmem:[#allocation4 + $0xb8] sm:$0xff] %vm979_vm4, %v930_v13  ;;  %1301 = vrot.lane.b32.xlu0 %v7348_v12, %s5067_s28  ;;  %v7358_v13 = vld [vmem:[#allocation5_spill] sm:$0xff] }
 0x13f   : > { %1303 = vrot.lane.b32.xlu1 %v7349_v63, %s5067_s28  ;;  %v1593_v12 = vld [vmem:[#allocation2 + $0x39] sm:$0xff] }
 0x140   : > { %v932_v25 = vpop.permute.xlu0 %931 }
 0x141   : > { %v934_v27 = vpop.permute.xlu1 %933  ;;  %1004 = vst.msk [vmem:[#allocation4 + $0xc0] sm:$0xff] %vm979_vm4, %v932_v25 }
 0x142   : > { %1005 = vst.msk [vmem:[#allocation4 + $0xc8] sm:$0xff] %vm979_vm4, %v934_v27  ;;  %1305 = vrot.lane.b32.xlu0 %v7350_v28, %s5067_s28  ;;  %v1786_v27 = vld [vmem:[#allocation2 + $0x3a] sm:$0xff] }
 0x143   : > { %1307 = vrot.lane.b32.xlu1 %v7351_v29, %s5067_s28 }
 0x144   : > { %v936_v30 = vpop.permute.xlu0 %935 }
 0x145   : > { %v938_v32 = vpop.permute.xlu1 %937  ;;  %1006 = vst.msk [vmem:[#allocation4 + $0xd0] sm:$0xff] %vm979_vm4, %v936_v30  ;;  %v1594_v30 = vld [vmem:[#allocation2 + $0x49] sm:$0xff] }
 0x146   : > { %1007 = vst.msk [vmem:[#allocation4 + $0xd8] sm:$0xff] %vm979_vm4, %v938_v32  ;;  %1309 = vrot.lane.b32.xlu0 %v7352_v43, %s5067_s28  ;;  %v1595_v32 = vld [vmem:[#allocation2 + $0x51] sm:$0xff] }
 0x147   : > { %1311 = vrot.lane.b32.xlu1 %v7353_v44, %s5067_s28 }
 0x148   : > { %v940_v49 = vpop.permute.xlu0 %939 }
 0x149   : > { %v942_v50 = vpop.permute.xlu1 %941  ;;  %1008 = vst.msk [vmem:[#allocation4 + $0xe0] sm:$0xff] %vm979_vm4, %v940_v49  ;;  %v1787_v49 = vld [vmem:[#allocation2 + $0x4a] sm:$0xff] }
 0x14a   : > { %1009 = vst.msk [vmem:[#allocation4 + $0xe8] sm:$0xff] %vm979_vm4, %v942_v50  ;;  %1313 = vrot.lane.b32.xlu0 %v7354_v53, %s5067_s28  ;;  %v1788_v50 = vld [vmem:[#allocation2 + $0x52] sm:$0xff] }
 0x14b   : > { %1315 = vrot.lane.b32.xlu1 %v7355_v54, %s5067_s28 }
 0x14c   : > { %v944_v59 = vpop.permute.xlu0 %943 }
 0x14d   : > { %v946_v62 = vpop.permute.xlu1 %945  ;;  %1010 = vst.msk [vmem:[#allocation4 + $0xf0] sm:$0xff] %vm979_vm4, %v944_v59  ;;  %v1596_v59 = vld [vmem:[#allocation2 + $0x61] sm:$0xff] }
 0x14e   : > { %1011 = vst.msk [vmem:[#allocation4 + $0xf8] sm:$0xff] %vm979_vm4, %v946_v62  ;;  %1317 = vrot.lane.b32.xlu0 %v7356_v3, %s5067_s28  ;;  %v1597_v62 = vld [vmem:[#allocation2 + $0x69] sm:$0xff] }
 0x14f   : > { %1319 = vrot.lane.b32.xlu1 %v7357_v8, %s5067_s28 }
 0x150   : > { %v1077_v16 = vpop.permute.xlu0 %1076 }
 0x151   : > { %v1079_v19 = vpop.permute.xlu1 %1078  ;;  %1173 = vst.msk [vmem:[#allocation4] sm:$0xff] %vm1172_vm5, %v1077_v16  ;;  %v1789_v16 = vld [vmem:[#allocation2 + $0x62] sm:$0xff] }
 0x152   : > { %1174 = vst.msk [vmem:[#allocation4 + $0x8] sm:$0xff] %vm1172_vm5, %v1079_v19  ;;  %1321 = vrot.lane.b32.xlu0 %v5576_v61, %s5067_s28  ;;  %v1790_v19 = vld [vmem:[#allocation2 + $0x6a] sm:$0xff] }
 0x153   : > { %1323 = vrot.lane.b32.xlu1 %v5578_v48, %s5067_s28 }
 0x154   : > { %v1081_v26 = vpop.permute.xlu0 %1080 }
 0x155   : > { %v1083_v31 = vpop.permute.xlu1 %1082  ;;  %1175 = vst.msk [vmem:[#allocation4 + $0x10] sm:$0xff] %vm1172_vm5, %v1081_v26 }
 0x156   : > { %1176 = vst.msk [vmem:[#allocation4 + $0x18] sm:$0xff] %vm1172_vm5, %v1083_v31  ;;  %1325 = vrot.lane.b32.xlu0 %v5586_v40, %s5067_s28 }
 0x157   : > { %1327 = vrot.lane.b32.xlu1 %v5588_v47, %s5067_s28 }
 0x158   : > { %v1085_v61 = vpop.permute.xlu0 %1084 }
 0x159   : > { %v1087_v1 = vpop.permute.xlu1 %1086  ;;  %1177 = vst.msk [vmem:[#allocation4 + $0x20] sm:$0xff] %vm1172_vm5, %v1085_v61  ;;  %v1598_v61 = vld [vmem:[#allocation2 + $0x79] sm:$0xff] }
 0x15a   : > { %1178 = vst.msk [vmem:[#allocation4 + $0x28] sm:$0xff] %vm1172_vm5, %v1087_v1  ;;  %1329 = vrot.lane.b32.xlu0 %v5881_v52, %s5067_s28  ;;  %v1599_v1 = vld [vmem:[#allocation2 + $0x81] sm:$0xff] }
 0x15b   : > { %1331 = vrot.lane.b32.xlu1 %v5883_v55, %s5067_s28  ;;  %s7103_s28 = scalar_lea.vmem %s7265_s5, %s4796_s20 }
 0x15c   : > { %v1089_v48 = vpop.permute.xlu0 %1088 }
 0x15d   : > { %v1091_v40 = vpop.permute.xlu1 %1090  ;;  %1179 = vst.msk [vmem:[#allocation4 + $0x30] sm:$0xff] %vm1172_vm5, %v1089_v48 }
 0x15e   : > { %1180 = vst.msk [vmem:[#allocation4 + $0x38] sm:$0xff] %vm1172_vm5, %v1091_v40  ;;  %1463 = vrot.lane.b32.xlu0 %v5317_v22, %s5068_s29 }
 0x15f   : > { %1465 = vrot.lane.b32.xlu1 %v5263_v2, %s5068_s29 }
 0x160   : > { %v1093_v47 = vpop.permute.xlu0 %1092 }
 0x161   : > { %v1095_v4 = vpop.permute.xlu1 %1094  ;;  %1181 = vst.msk [vmem:[#allocation4 + $0x40] sm:$0xff] %vm1172_vm5, %v1093_v47  ;;  %v1791_v47 = vld [vmem:[#allocation2 + $0x7a] sm:$0xff] }
 0x162   : > { %1182 = vst.msk [vmem:[#allocation4 + $0x48] sm:$0xff] %vm1172_vm5, %v1095_v4  ;;  %1467 = vrot.lane.b32.xlu0 %v5339_v35, %s5068_s29  ;;  %v1792_v4 = vld [vmem:[#allocation2 + $0x82] sm:$0xff] }
 0x163   : > { %1469 = vrot.lane.b32.xlu1 %v5275_v6, %s5068_s29 }
 0x164   : > { %v1097_v14 = vpop.permute.xlu0 %1096 }
 0x165   : > { %v1099_v23 = vpop.permute.xlu1 %1098  ;;  %1183 = vst.msk [vmem:[#allocation4 + $0x50] sm:$0xff] %vm1172_vm5, %v1097_v14 }
 0x166   : > { %1184 = vst.msk [vmem:[#allocation4 + $0x58] sm:$0xff] %vm1172_vm5, %v1099_v23  ;;  %1471 = vrot.lane.b32.xlu0 %v5341_v36, %s5068_s29 }
 0x167   : > { %1473 = vrot.lane.b32.xlu1 %v5283_v9, %s5068_s29 }
 0x168   : > { %v1101_v2 = vpop.permute.xlu0 %1100 }
 0x169   : > { %v1103_v22 = vpop.permute.xlu1 %1102  ;;  %1185 = vst.msk [vmem:[#allocation4 + $0x60] sm:$0xff] %vm1172_vm5, %v1101_v2  ;;  %v1600_v2 = vld [vmem:[#allocation2 + $0x91] sm:$0xff] }
 0x16a   : > { %1186 = vst.msk [vmem:[#allocation4 + $0x68] sm:$0xff] %vm1172_vm5, %v1103_v22  ;;  %1475 = vrot.lane.b32.xlu0 %v5350_v38, %s5068_s29  ;;  %v1601_v22 = vld [vmem:[#allocation2 + $0x99] sm:$0xff] }
 0x16b   : > { %1477 = vrot.lane.b32.xlu1 %v5288_v11, %s5068_s29 }
 0x16c   : > { %v1105_v6 = vpop.permute.xlu0 %1104 }
 0x16d   : > { %v1107_v35 = vpop.permute.xlu1 %1106  ;;  %1187 = vst.msk [vmem:[#allocation4 + $0x70] sm:$0xff] %vm1172_vm5, %v1105_v6 }
 0x16e   : > { %1188 = vst.msk [vmem:[#allocation4 + $0x78] sm:$0xff] %vm1172_vm5, %v1107_v35  ;;  %1479 = vrot.lane.b32.xlu0 %v5357_v41, %s5068_s29 }
 0x16f   : > { %1481 = vrot.lane.b32.xlu1 %v5295_v15, %s5068_s29 }
 0x170   : > { %v1109_v9 = vpop.permute.xlu0 %1108 }
 0x171   : > { %v1111_v36 = vpop.permute.xlu1 %1110  ;;  %1189 = vst.msk [vmem:[#allocation4 + $0x80] sm:$0xff] %vm1172_vm5, %v1109_v9  ;;  %v1793_v9 = vld [vmem:[#allocation2 + $0x92] sm:$0xff] }
 0x172   : > { %1190 = vst.msk [vmem:[#allocation4 + $0x88] sm:$0xff] %vm1172_vm5, %v1111_v36  ;;  %1483 = vrot.lane.b32.xlu0 %v5375_v51, %s5068_s29  ;;  %v1794_v36 = vld [vmem:[#allocation2 + $0x9a] sm:$0xff] }
 0x173   : > { %1485 = vrot.lane.b32.xlu1 %v5308_v18, %s5068_s29 }
 0x174   : > { %v1113_v11 = vpop.permute.xlu0 %1112 }
 0x175   : > { %v1115_v38 = vpop.permute.xlu1 %1114  ;;  %1191 = vst.msk [vmem:[#allocation4 + $0x90] sm:$0xff] %vm1172_vm5, %v1113_v11 }
 0x176   : > { %1192 = vst.msk [vmem:[#allocation4 + $0x98] sm:$0xff] %vm1172_vm5, %v1115_v38  ;;  %1487 = vrot.lane.b32.xlu0 %v5387_v56, %s5068_s29 }
 0x177   : > { %1489 = vrot.lane.b32.xlu1 %v5315_v21, %s5068_s29 }
 0x178   : > { %v1117_v15 = vpop.permute.xlu0 %1116 }
 0x179   : > { %v1119_v41 = vpop.permute.xlu1 %1118  ;;  %1193 = vst.msk [vmem:[#allocation4 + $0xa0] sm:$0xff] %vm1172_vm5, %v1117_v15  ;;  %v1602_v15 = vld [vmem:[#allocation2 + $0xa9] sm:$0xff] }
 0x17a   : > { %1194 = vst.msk [vmem:[#allocation4 + $0xa8] sm:$0xff] %vm1172_vm5, %v1119_v41  ;;  %1491 = vrot.lane.b32.xlu0 %v5391_v57, %s5068_s29  ;;  %v1603_v41 = vld [vmem:[#allocation2 + $0xb1] sm:$0xff] }
 0x17b   : > { %1493 = vrot.lane.b32.xlu1 %v5322_v24, %s5068_s29 }
 0x17c   : > { %v1121_v18 = vpop.permute.xlu0 %1120 }
 0x17d   : > { %v1123_v51 = vpop.permute.xlu1 %1122  ;;  %1195 = vst.msk [vmem:[#allocation4 + $0xb0] sm:$0xff] %vm1172_vm5, %v1121_v18 }
 0x17e   : > { %1196 = vst.msk [vmem:[#allocation4 + $0xb8] sm:$0xff] %vm1172_vm5, %v1123_v51  ;;  %1495 = vrot.lane.b32.xlu0 %v5397_v60, %s5068_s29  ;;  %v2011_v60 = vld [vmem:[%s7261_s1 + $0x8] sm:$0xff] }
 0x17f   : > { %1497 = vrot.lane.b32.xlu1 %v5333_v34, %s5068_s29  ;;  %v2010_v34 = vld [vmem:[%s7261_s1] sm:$0xff] }
 0x180   : > { %v1125_v21 = vpop.permute.xlu0 %1124 }
 0x181   : > { %v1127_v56 = vpop.permute.xlu1 %1126  ;;  %1197 = vst.msk [vmem:[#allocation4 + $0xc0] sm:$0xff] %vm1172_vm5, %v1125_v21  ;;  %v1795_v21 = vld [vmem:[#allocation2 + $0xaa] sm:$0xff] }
 0x182   : > { %1198 = vst.msk [vmem:[#allocation4 + $0xc8] sm:$0xff] %vm1172_vm5, %v1127_v56  ;;  %1499 = vrot.lane.b32.xlu0 %v5408_v0, %s5068_s29  ;;  %v1796_v56 = vld [vmem:[#allocation2 + $0xb2] sm:$0xff] }
 0x183   : > { %1501 = vrot.lane.b32.xlu1 %v5353_v39, %s5068_s29  ;;  %v5000_v39 = vpack.c.bf16 %v2011_v60, %v2010_v34  ;;  %v1604_v34 = vld [vmem:[#allocation2 + $0xc1] sm:$0xff]  ;;  %v1605_v60 = vld [vmem:[#allocation2 + $0xc9] sm:$0xff] }
 0x184   : > { %v1129_v24 = vpop.permute.xlu0 %1128 }
 0x185   : > { %v1131_v57 = vpop.permute.xlu1 %1130  ;;  %1199 = vst.msk [vmem:[#allocation4 + $0xd0] sm:$0xff] %vm1172_vm5, %v1129_v24  ;;  %5001 = vmatprep.subr.bf16.mxu0 %v5000_v39 }
 0x186   : > { %1200 = vst.msk [vmem:[#allocation4 + $0xd8] sm:$0xff] %vm1172_vm5, %v1131_v57  ;;  %1503 = vrot.lane.b32.xlu0 %v5417_v5, %s5068_s29  ;;  %5003 = vmatpush3.bf16.msra.mxu0 %v5000_v39  ;;  %v2013_v5 = vld [vmem:[%s7261_s1 + $0x18] sm:$0xff] }
 0x187   : > { %1505 = vrot.lane.b32.xlu1 %v5362_v42, %s5068_s29  ;;  %v5004_v42 = vpack.c.bf16 %v2013_v5, %v2012_v20  ;;  %v1798_v20 = vld [vmem:[#allocation2 + $0xca] sm:$0xff] }
 0x188   : > { %v1133_v0 = vpop.permute.xlu0 %1132 }
 0x189   : > { %v1135_v17 = vpop.permute.xlu1 %1134  ;;  %1201 = vst.msk [vmem:[#allocation4 + $0xe0] sm:$0xff] %vm1172_vm5, %v1133_v0  ;;  %5005 = vmatprep.subr.bf16.mxu0 %v5004_v42 }
 0x18a   : > { %1202 = vst.msk [vmem:[#allocation4 + $0xe8] sm:$0xff] %vm1172_vm5, %v1135_v17  ;;  %1507 = vrot.lane.b32.xlu0 %v5421_v7, %s5068_s29  ;;  %5007 = vmatpush3.bf16.msra.mxu0 %v5004_v42  ;;  %v1592_v7 = vld [vmem:[#allocation2 + $0x31] sm:$0xff]  ;;  %v1797_v17 = vld [vmem:[#allocation2 + $0xc2] sm:$0xff] }
 0x18b   : > { %1509 = vrot.lane.b32.xlu1 %v5369_v46, %s5068_s29  ;;  %v2014_v46 = vld [vmem:[%s7261_s1 + $0x20] sm:$0xf] }
 0x18c   : > { %v1137_v45 = vpop.permute.xlu0 %1136  ;;  %4884 = vmatprep.subr.msk.mxu0 %vm2119_vm7, %v2014_v46 }
 0x18d   : > { %v1139_v10 = vpop.permute.xlu1 %1138  ;;  %1203 = vst.msk [vmem:[#allocation4 + $0xf0] sm:$0xff] %vm1172_vm5, %v1137_v45  ;;  %v1606_v45 = vld [vmem:[#allocation2 + $0xd9] sm:$0xff] }
 0x18e   : > { %1204 = vst.msk [vmem:[#allocation4 + $0xf8] sm:$0xff] %vm1172_vm5, %v1139_v10  ;;  %1511 = vrot.lane.b32.xlu0 %v7358_v13, %s5068_s29  ;;  %4885 = vmatpush3.msk.msra.mxu0 %vm2119_vm7, %v2014_v46  ;;  %v1607_v10 = vld [vmem:[#allocation2 + $0xe1] sm:$0xff] }
 0x18f   : > { %1513 = vrot.lane.b32.xlu1 %v5393_v58, %s5068_s29  ;;  %v1785_v58 = vld [vmem:[#allocation2 + $0x32] sm:$0xff] }
 0x190   : > { %v1270_v63 = vpop.permute.xlu0 %1269 }
 0x191   : > { %v1272_v25 = vpop.permute.xlu1 %1271  ;;  %1366 = vst.msk [vmem:[#allocation4] sm:$0xff] %vm1365_vm6, %v1270_v63 }
 0x192   : > { %1367 = vst.msk [vmem:[#allocation4 + $0x8] sm:$0xff] %vm1365_vm6, %v1272_v25  ;;  %1656 = vrot.lane.b32.xlu0 %v1592_v7, %s5069_s15  ;;  %v1799_v7 = vld [vmem:[#allocation2 + $0xda] sm:$0xff] }
 0x193   : > { %1658 = vrot.lane.b32.xlu1 %v1593_v12, %s5069_s15  ;;  %v1800_v12 = vld [vmem:[#allocation2 + $0xe2] sm:$0xff] }
 0x194   : > { %v1274_v28 = vpop.permute.xlu0 %1273 }
 0x195   : > { %v1276_v29 = vpop.permute.xlu1 %1275  ;;  %1368 = vst.msk [vmem:[#allocation4 + $0x10] sm:$0xff] %vm1365_vm6, %v1274_v28 }
 0x196   : > { %1369 = vst.msk [vmem:[#allocation4 + $0x18] sm:$0xff] %vm1365_vm6, %v1276_v29  ;;  %1849 = vrot.lane.b32.xlu0 %v1785_v58, %s5070_s16  ;;  %v1608_v58 = vld [vmem:[#allocation2 + $0xf1] sm:$0xff] }
 0x197   : > { %1851 = vrot.lane.b32.xlu1 %v1786_v27, %s5070_s16  ;;  %v1609_v27 = vld [vmem:[#allocation2 + $0xf9] sm:$0xff] }
 0x198   : > { %v1278_v43 = vpop.permute.xlu0 %1277 }
 0x199   : > { %v1280_v44 = vpop.permute.xlu1 %1279  ;;  %1370 = vst.msk [vmem:[#allocation4 + $0x20] sm:$0xff] %vm1365_vm6, %v1278_v43 }
 0x19a   : > { %1371 = vst.msk [vmem:[#allocation4 + $0x28] sm:$0xff] %vm1365_vm6, %v1280_v44  ;;  %1660 = vrot.lane.b32.xlu0 %v1594_v30, %s5069_s15  ;;  %v1801_v30 = vld [vmem:[#allocation2 + $0xf2] sm:$0xff] }
 0x19b   : > { %1662 = vrot.lane.b32.xlu1 %v1595_v32, %s5069_s15  ;;  %v1802_v32 = vld [vmem:[#allocation2 + $0xfa] sm:$0xff] }
 0x19c   : > { %v1282_v53 = vpop.permute.xlu0 %1281 }
 0x19d   : > { %v1284_v54 = vpop.permute.xlu1 %1283  ;;  %1372 = vst.msk [vmem:[#allocation4 + $0x30] sm:$0xff] %vm1365_vm6, %v1282_v53 }
 0x19e   : > { %1373 = vst.msk [vmem:[#allocation4 + $0x38] sm:$0xff] %vm1365_vm6, %v1284_v54  ;;  %1853 = vrot.lane.b32.xlu0 %v1787_v49, %s5070_s16  ;;  %v1610_v49 = vld [vmem:[#allocation2 + $0x109] sm:$0xff] }
 0x19f   : > { %1855 = vrot.lane.b32.xlu1 %v1788_v50, %s5070_s16  ;;  %v1611_v50 = vld [vmem:[#allocation2 + $0x111] sm:$0xff] }
 0x1a0   : > { %v1286_v3 = vpop.permute.xlu0 %1285 }
 0x1a1   : > { %v1288_v8 = vpop.permute.xlu1 %1287  ;;  %1374 = vst.msk [vmem:[#allocation4 + $0x40] sm:$0xff] %vm1365_vm6, %v1286_v3 }
 0x1a2   : > { %1375 = vst.msk [vmem:[#allocation4 + $0x48] sm:$0xff] %vm1365_vm6, %v1288_v8  ;;  %1664 = vrot.lane.b32.xlu0 %v1596_v59, %s5069_s15  ;;  %v1803_v59 = vld [vmem:[#allocation2 + $0x10a] sm:$0xff] }
 0x1a3   : > { %1666 = vrot.lane.b32.xlu1 %v1597_v62, %s5069_s15  ;;  %v1804_v62 = vld [vmem:[#allocation2 + $0x112] sm:$0xff] }
 0x1a4   : > { %v1290_v26 = vpop.permute.xlu0 %1289 }
 0x1a5   : > { %v1292_v31 = vpop.permute.xlu1 %1291  ;;  %1376 = vst.msk [vmem:[#allocation4 + $0x50] sm:$0xff] %vm1365_vm6, %v1290_v26 }
 0x1a6   : > { %1377 = vst.msk [vmem:[#allocation4 + $0x58] sm:$0xff] %vm1365_vm6, %v1292_v31  ;;  %1857 = vrot.lane.b32.xlu0 %v1789_v16, %s5070_s16  ;;  %v1612_v16 = vld [vmem:[#allocation2 + $0x121] sm:$0xff] }
 0x1a7   : > { %1859 = vrot.lane.b32.xlu1 %v1790_v19, %s5070_s16  ;;  %v1613_v19 = vld [vmem:[#allocation2 + $0x129] sm:$0xff] }
 0x1a8   : > { %v1294_v48 = vpop.permute.xlu0 %1293 }
 0x1a9   : > { %v1296_v40 = vpop.permute.xlu1 %1295  ;;  %1378 = vst.msk [vmem:[#allocation4 + $0x60] sm:$0xff] %vm1365_vm6, %v1294_v48 }
 0x1aa   : > { %1379 = vst.msk [vmem:[#allocation4 + $0x68] sm:$0xff] %vm1365_vm6, %v1296_v40  ;;  %1668 = vrot.lane.b32.xlu0 %v1598_v61, %s5069_s15  ;;  %v1805_v61 = vld [vmem:[#allocation2 + $0x122] sm:$0xff] }
 0x1ab   : > { %1670 = vrot.lane.b32.xlu1 %v1599_v1, %s5069_s15  ;;  %v1806_v1 = vld [vmem:[#allocation2 + $0x12a] sm:$0xff] }
 0x1ac   : > { %v1298_v14 = vpop.permute.xlu0 %1297 }
 0x1ad   : > { %v1300_v23 = vpop.permute.xlu1 %1299  ;;  %1380 = vst.msk [vmem:[#allocation4 + $0x70] sm:$0xff] %vm1365_vm6, %v1298_v14 }
 0x1ae   : > { %1381 = vst.msk [vmem:[#allocation4 + $0x78] sm:$0xff] %vm1365_vm6, %v1300_v23  ;;  %1861 = vrot.lane.b32.xlu0 %v1791_v47, %s5070_s16  ;;  %v1614_v47 = vld [vmem:[#allocation2 + $0x139] sm:$0xff] }
 0x1af   : > { %1863 = vrot.lane.b32.xlu1 %v1792_v4, %s5070_s16  ;;  %v1615_v4 = vld [vmem:[#allocation2 + $0x141] sm:$0xff] }
 0x1b0   : > { %v1302_v6 = vpop.permute.xlu0 %1301 }
 0x1b1   : > { %v1304_v35 = vpop.permute.xlu1 %1303  ;;  %1382 = vst.msk [vmem:[#allocation4 + $0x80] sm:$0xff] %vm1365_vm6, %v1302_v6 }
 0x1b2   : > { %1383 = vst.msk [vmem:[#allocation4 + $0x88] sm:$0xff] %vm1365_vm6, %v1304_v35  ;;  %1672 = vrot.lane.b32.xlu0 %v1600_v2, %s5069_s15  ;;  %v1807_v2 = vld [vmem:[#allocation2 + $0x13a] sm:$0xff] }
 0x1b3   : > { %1674 = vrot.lane.b32.xlu1 %v1601_v22, %s5069_s15  ;;  %v1808_v22 = vld [vmem:[#allocation2 + $0x142] sm:$0xff] }
 0x1b4   : > { %v1306_v11 = vpop.permute.xlu0 %1305 }
 0x1b5   : > { %v1308_v38 = vpop.permute.xlu1 %1307  ;;  %1384 = vst.msk [vmem:[#allocation4 + $0x90] sm:$0xff] %vm1365_vm6, %v1306_v11 }
 0x1b6   : > { %1385 = vst.msk [vmem:[#allocation4 + $0x98] sm:$0xff] %vm1365_vm6, %v1308_v38  ;;  %1865 = vrot.lane.b32.xlu0 %v1793_v9, %s5070_s16  ;;  %v1616_v9 = vld [vmem:[#allocation2 + $0x151] sm:$0xff] }
 0x1b7   : > { %1867 = vrot.lane.b32.xlu1 %v1794_v36, %s5070_s16  ;;  %v1617_v36 = vld [vmem:[#allocation2 + $0x159] sm:$0xff] }
 0x1b8   : > { %v1310_v18 = vpop.permute.xlu0 %1309 }
 0x1b9   : > { %v1312_v51 = vpop.permute.xlu1 %1311  ;;  %1386 = vst.msk [vmem:[#allocation4 + $0xa0] sm:$0xff] %vm1365_vm6, %v1310_v18 }
 0x1ba   : > { %1387 = vst.msk [vmem:[#allocation4 + $0xa8] sm:$0xff] %vm1365_vm6, %v1312_v51  ;;  %1676 = vrot.lane.b32.xlu0 %v1602_v15, %s5069_s15  ;;  %v1809_v15 = vld [vmem:[#allocation2 + $0x152] sm:$0xff] }
 0x1bb   : > { %1678 = vrot.lane.b32.xlu1 %v1603_v41, %s5069_s15  ;;  %v1810_v41 = vld [vmem:[#allocation2 + $0x15a] sm:$0xff] }
 0x1bc   : > { %v1314_v24 = vpop.permute.xlu0 %1313 }
 0x1bd   : > { %v1316_v57 = vpop.permute.xlu1 %1315  ;;  %1388 = vst.msk [vmem:[#allocation4 + $0xb0] sm:$0xff] %vm1365_vm6, %v1314_v24 }
 0x1be   : > { %1389 = vst.msk [vmem:[#allocation4 + $0xb8] sm:$0xff] %vm1365_vm6, %v1316_v57  ;;  %1869 = vrot.lane.b32.xlu0 %v1795_v21, %s5070_s16  ;;  %v1425_v21 = vld [vmem:[#allocation2 + $0x168] sm:$0xff] }
 0x1bf   : > { %1871 = vrot.lane.b32.xlu1 %v1796_v56, %s5070_s16  ;;  %v1426_v56 = vld [vmem:[#allocation2 + $0x170] sm:$0xff] }
 0x1c0   : > { %v1318_v39 = vpop.permute.xlu0 %1317 }
 0x1c1   : > { %v1320_v0 = vpop.permute.xlu1 %1319  ;;  %1390 = vst.msk [vmem:[#allocation4 + $0xc0] sm:$0xff] %vm1365_vm6, %v1318_v39 }
 0x1c2   : > { %1391 = vst.msk [vmem:[#allocation4 + $0xc8] sm:$0xff] %vm1365_vm6, %v1320_v0  ;;  %1680 = vrot.lane.b32.xlu0 %v1604_v34, %s5069_s15  ;;  %v1618_v34 = vld [vmem:[#allocation2 + $0x169] sm:$0xff] }
 0x1c3   : > { %1682 = vrot.lane.b32.xlu1 %v1605_v60, %s5069_s15  ;;  %v1619_v60 = vld [vmem:[#allocation2 + $0x171] sm:$0xff] }
 0x1c4   : > { %v1322_v5 = vpop.permute.xlu0 %1321 }
 0x1c5   : > { %v1324_v42 = vpop.permute.xlu1 %1323  ;;  %1392 = vst.msk [vmem:[#allocation4 + $0xd0] sm:$0xff] %vm1365_vm6, %v1322_v5 }
 0x1c6   : > { %1393 = vst.msk [vmem:[#allocation4 + $0xd8] sm:$0xff] %vm1365_vm6, %v1324_v42  ;;  %1873 = vrot.lane.b32.xlu0 %v1797_v17, %s5070_s16  ;;  %v1811_v17 = vld [vmem:[#allocation2 + $0x16a] sm:$0xff] }
 0x1c7   : > { %1875 = vrot.lane.b32.xlu1 %v1798_v20, %s5070_s16  ;;  %v1812_v20 = vld [vmem:[#allocation2 + $0x172] sm:$0xff] }
 0x1c8   : > { %v1326_v13 = vpop.permute.xlu0 %1325 }
 0x1c9   : > { %v1328_v46 = vpop.permute.xlu1 %1327  ;;  %1394 = vst.msk [vmem:[#allocation4 + $0xe0] sm:$0xff] %vm1365_vm6, %v1326_v13 }
 0x1ca   : > { %1395 = vst.msk [vmem:[#allocation4 + $0xe8] sm:$0xff] %vm1365_vm6, %v1328_v46  ;;  %1684 = vrot.lane.b32.xlu0 %v1606_v45, %s5069_s15  ;;  %v1427_v45 = vld [vmem:[#allocation2 + $0x180] sm:$0xff] }
 0x1cb   : > { %1686 = vrot.lane.b32.xlu1 %v1607_v10, %s5069_s15  ;;  %v1428_v10 = vld [vmem:[#allocation2 + $0x188] sm:$0xff] }
 0x1cc   : > { %v1330_v63 = vpop.permute.xlu0 %1329 }
 0x1cd   : > { %v1332_v25 = vpop.permute.xlu1 %1331  ;;  %1396 = vst.msk [vmem:[#allocation4 + $0xf0] sm:$0xff] %vm1365_vm6, %v1330_v63 }
 0x1ce   : > { %1397 = vst.msk [vmem:[#allocation4 + $0xf8] sm:$0xff] %vm1365_vm6, %v1332_v25  ;;  %1877 = vrot.lane.b32.xlu0 %v1799_v7, %s5070_s16 }
 0x1cf   : > { %1879 = vrot.lane.b32.xlu1 %v1800_v12, %s5070_s16 }
 0x1d0   : > { %v1464_v28 = vpop.permute.xlu0 %1463 }
 0x1d1   : > { %v1466_v29 = vpop.permute.xlu1 %1465  ;;  %1560 = vst.msk [vmem:[#allocation4] sm:$0xff] %vm1559_vm8, %v1464_v28 }
 0x1d2   : > { %1561 = vst.msk [vmem:[#allocation4 + $0x8] sm:$0xff] %vm1559_vm8, %v1466_v29  ;;  %1688 = vrot.lane.b32.xlu0 %v1608_v58, %s5069_s15 }
 0x1d3   : > { %1690 = vrot.lane.b32.xlu1 %v1609_v27, %s5069_s15 }
 0x1d4   : > { %v1468_v43 = vpop.permute.xlu0 %1467 }
 0x1d5   : > { %v1470_v44 = vpop.permute.xlu1 %1469  ;;  %1562 = vst.msk [vmem:[#allocation4 + $0x10] sm:$0xff] %vm1559_vm8, %v1468_v43 }
 0x1d6   : > { %1563 = vst.msk [vmem:[#allocation4 + $0x18] sm:$0xff] %vm1559_vm8, %v1470_v44  ;;  %1881 = vrot.lane.b32.xlu0 %v1801_v30, %s5070_s16 }
 0x1d7   : > { %1883 = vrot.lane.b32.xlu1 %v1802_v32, %s5070_s16 }
 0x1d8   : > { %v1472_v53 = vpop.permute.xlu0 %1471 }
 0x1d9   : > { %v1474_v54 = vpop.permute.xlu1 %1473  ;;  %1564 = vst.msk [vmem:[#allocation4 + $0x20] sm:$0xff] %vm1559_vm8, %v1472_v53 }
 0x1da   : > { %1565 = vst.msk [vmem:[#allocation4 + $0x28] sm:$0xff] %vm1559_vm8, %v1474_v54  ;;  %1692 = vrot.lane.b32.xlu0 %v1610_v49, %s5069_s15 }
 0x1db   : > { %1694 = vrot.lane.b32.xlu1 %v1611_v50, %s5069_s15 }
 0x1dc   : > { %v1476_v3 = vpop.permute.xlu0 %1475 }
 0x1dd   : > { %v1478_v8 = vpop.permute.xlu1 %1477  ;;  %1566 = vst.msk [vmem:[#allocation4 + $0x30] sm:$0xff] %vm1559_vm8, %v1476_v3 }
 0x1de   : > { %1567 = vst.msk [vmem:[#allocation4 + $0x38] sm:$0xff] %vm1559_vm8, %v1478_v8  ;;  %1885 = vrot.lane.b32.xlu0 %v1803_v59, %s5070_s16 }
 0x1df   : > { %1887 = vrot.lane.b32.xlu1 %v1804_v62, %s5070_s16 }
 0x1e0   : > { %v1480_v26 = vpop.permute.xlu0 %1479 }
 0x1e1   : > { %v1482_v31 = vpop.permute.xlu1 %1481  ;;  %1568 = vst.msk [vmem:[#allocation4 + $0x40] sm:$0xff] %vm1559_vm8, %v1480_v26 }
 0x1e2   : > { %1569 = vst.msk [vmem:[#allocation4 + $0x48] sm:$0xff] %vm1559_vm8, %v1482_v31  ;;  %1696 = vrot.lane.b32.xlu0 %v1612_v16, %s5069_s15 }
 0x1e3   : > { %1698 = vrot.lane.b32.xlu1 %v1613_v19, %s5069_s15 }
 0x1e4   : > { %v1484_v48 = vpop.permute.xlu0 %1483 }
 0x1e5   : > { %v1486_v40 = vpop.permute.xlu1 %1485  ;;  %1570 = vst.msk [vmem:[#allocation4 + $0x50] sm:$0xff] %vm1559_vm8, %v1484_v48 }
 0x1e6   : > { %1571 = vst.msk [vmem:[#allocation4 + $0x58] sm:$0xff] %vm1559_vm8, %v1486_v40  ;;  %1889 = vrot.lane.b32.xlu0 %v1805_v61, %s5070_s16 }
 0x1e7   : > { %1891 = vrot.lane.b32.xlu1 %v1806_v1, %s5070_s16 }
 0x1e8   : > { %v1488_v14 = vpop.permute.xlu0 %1487 }
 0x1e9   : > { %v1490_v23 = vpop.permute.xlu1 %1489  ;;  %1572 = vst.msk [vmem:[#allocation4 + $0x60] sm:$0xff] %vm1559_vm8, %v1488_v14 }
 0x1ea   : > { %1573 = vst.msk [vmem:[#allocation4 + $0x68] sm:$0xff] %vm1559_vm8, %v1490_v23  ;;  %1700 = vrot.lane.b32.xlu0 %v1614_v47, %s5069_s15 }
 0x1eb   : > { %1702 = vrot.lane.b32.xlu1 %v1615_v4, %s5069_s15 }
 0x1ec   : > { %v1492_v6 = vpop.permute.xlu0 %1491 }
 0x1ed   : > { %v1494_v35 = vpop.permute.xlu1 %1493  ;;  %1574 = vst.msk [vmem:[#allocation4 + $0x70] sm:$0xff] %vm1559_vm8, %v1492_v6 }
 0x1ee   : > { %1575 = vst.msk [vmem:[#allocation4 + $0x78] sm:$0xff] %vm1559_vm8, %v1494_v35  ;;  %1893 = vrot.lane.b32.xlu0 %v1807_v2, %s5070_s16 }
 0x1ef   : > { %1895 = vrot.lane.b32.xlu1 %v1808_v22, %s5070_s16 }
 0x1f0   : > { %v1496_v11 = vpop.permute.xlu0 %1495 }
 0x1f1   : > { %v1498_v38 = vpop.permute.xlu1 %1497  ;;  %1576 = vst.msk [vmem:[#allocation4 + $0x80] sm:$0xff] %vm1559_vm8, %v1496_v11 }
 0x1f2   : > { %1577 = vst.msk [vmem:[#allocation4 + $0x88] sm:$0xff] %vm1559_vm8, %v1498_v38  ;;  %1704 = vrot.lane.b32.xlu0 %v1616_v9, %s5069_s15 }
 0x1f3   : > { %1706 = vrot.lane.b32.xlu1 %v1617_v36, %s5069_s15 }
 0x1f4   : > { %v1500_v18 = vpop.permute.xlu0 %1499 }
 0x1f5   : > { %v1502_v51 = vpop.permute.xlu1 %1501  ;;  %1578 = vst.msk [vmem:[#allocation4 + $0x90] sm:$0xff] %vm1559_vm8, %v1500_v18 }
 0x1f6   : > { %1579 = vst.msk [vmem:[#allocation4 + $0x98] sm:$0xff] %vm1559_vm8, %v1502_v51  ;;  %1897 = vrot.lane.b32.xlu0 %v1809_v15, %s5070_s16 }
 0x1f7   : > { %1899 = vrot.lane.b32.xlu1 %v1810_v41, %s5070_s16 }
 0x1f8   : > { %v1504_v24 = vpop.permute.xlu0 %1503 }
 0x1f9   : > { %v1506_v57 = vpop.permute.xlu1 %1505  ;;  %1580 = vst.msk [vmem:[#allocation4 + $0xa0] sm:$0xff] %vm1559_vm8, %v1504_v24 }
 0x1fa   : > { %1581 = vst.msk [vmem:[#allocation4 + $0xa8] sm:$0xff] %vm1559_vm8, %v1506_v57  ;;  %1515 = vrot.lane.b32.xlu0 %v1425_v21, %s5068_s29 }
 0x1fb   : > { %1517 = vrot.lane.b32.xlu1 %v1426_v56, %s5068_s29 }
 0x1fc   : > { %v1508_v39 = vpop.permute.xlu0 %1507 }
 0x1fd   : > { %v1510_v0 = vpop.permute.xlu1 %1509  ;;  %1582 = vst.msk [vmem:[#allocation4 + $0xb0] sm:$0xff] %vm1559_vm8, %v1508_v39 }
 0x1fe   : > { %1583 = vst.msk [vmem:[#allocation4 + $0xb8] sm:$0xff] %vm1559_vm8, %v1510_v0  ;;  %1708 = vrot.lane.b32.xlu0 %v1618_v34, %s5069_s15 }
 0x1ff   : > { %1710 = vrot.lane.b32.xlu1 %v1619_v60, %s5069_s15 }
 0x200   : > { %v1512_v5 = vpop.permute.xlu0 %1511 }
 0x201   : > { %v1514_v42 = vpop.permute.xlu1 %1513  ;;  %1584 = vst.msk [vmem:[#allocation4 + $0xc0] sm:$0xff] %vm1559_vm8, %v1512_v5 }
 0x202   : > { %1585 = vst.msk [vmem:[#allocation4 + $0xc8] sm:$0xff] %vm1559_vm8, %v1514_v42  ;;  %1901 = vrot.lane.b32.xlu0 %v1811_v17, %s5070_s16 }
 0x203   : > { %1903 = vrot.lane.b32.xlu1 %v1812_v20, %s5070_s16 }
 0x204   : > { %v1657_v13 = vpop.permute.xlu0 %1656 }
 0x205   : > { %v1659_v46 = vpop.permute.xlu1 %1658  ;;  %1753 = vst.msk [vmem:[#allocation4] sm:$0xff] %vm1752_vm9, %v1657_v13 }
 0x206   : > { %1754 = vst.msk [vmem:[#allocation4 + $0x8] sm:$0xff] %vm1752_vm9, %v1659_v46  ;;  %1519 = vrot.lane.b32.xlu0 %v1427_v45, %s5068_s29 }
 0x207   : > { %1521 = vrot.lane.b32.xlu1 %v1428_v10, %s5068_s29 }
 0x208   : > { %v1850_v7 = vpop.permute.xlu0 %1849 }
 0x209   : > { %v1852_v12 = vpop.permute.xlu1 %1851  ;;  %1946 = vst.msk [vmem:[#allocation4] sm:$0xff] %vm1945_vm10, %v1850_v7 }
 0x20a   : > { %1947 = vst.msk [vmem:[#allocation4 + $0x8] sm:$0xff] %vm1945_vm10, %v1852_v12  ;;  %1712 = vrot.lane.b32.xlu0 %v5781_v33, %s5069_s15 }
 0x20b   : > { %1714 = vrot.lane.b32.xlu1 %v5783_v37, %s5069_s15 }
 0x20c   : > { %v1661_v63 = vpop.permute.xlu0 %1660 }
 0x20d   : > { %v1663_v25 = vpop.permute.xlu1 %1662  ;;  %1755 = vst.msk [vmem:[#allocation4 + $0x10] sm:$0xff] %vm1752_vm9, %v1661_v63 }
 0x20e   : > { %1756 = vst.msk [vmem:[#allocation4 + $0x18] sm:$0xff] %vm1752_vm9, %v1663_v25  ;;  %1905 = vrot.lane.b32.xlu0 %v5881_v52, %s5070_s16 }
 0x20f   : > { %1907 = vrot.lane.b32.xlu1 %v5883_v55, %s5070_s16 }
 0x210   : > { %v1854_v58 = vpop.permute.xlu0 %1853  ;;  %v1978_v28 = vld [vmem:[#allocation4] sm:$0xff] }
 0x211   : > { %v1856_v27 = vpop.permute.xlu1 %1855  ;;  %v1979_v33 = vld [vmem:[#allocation4 + $0x8] sm:$0xff]  ;;  %1948 = vst.msk [vmem:[#allocation4 + $0x10] sm:$0xff] %vm1945_vm10, %v1854_v58  ;;  %4886 = vmatprep.mubr.msk.f32.mxu0 %vm2022_vm11, %v1978_v28  ;;  %v313_v28 = vld [vmem:[#allocation2 + $0x19a] sm:$0x1] }
 0x212   : > { %1949 = vst.msk [vmem:[#allocation4 + $0x18] sm:$0xff] %vm1945_vm10, %v1856_v27  ;;  %4887 = vmatmul.mubr.msk.f32.vlgmr.msra.gmra.mrb[0].mxu0 %vm2022_vm11, %v1979_v33 }
 0x213   : > { %332 = vst.msk [vmem:[#allocation2 + $0x198] sm:$0x1] %vm314_vm1, %v313_v28 }
 0x214   : > { %v1665_v37 = vpop.permute.xlu0 %1664 }
 0x215   : > { %v1667_v29 = vpop.permute.xlu1 %1666  ;;  %1757 = vst.msk [vmem:[#allocation4 + $0x20] sm:$0xff] %vm1752_vm9, %v1665_v37 }
 0x216   : > { %1758 = vst.msk [vmem:[#allocation4 + $0x28] sm:$0xff] %vm1752_vm9, %v1667_v29 }
 0x218   : > { %v1858_v52 = vpop.permute.xlu0 %1857  ;;  %v1980_v30 = vld [vmem:[#allocation4 + $0x10] sm:$0xff] }
 0x219   : > { %v1860_v55 = vpop.permute.xlu1 %1859  ;;  %v1981_v32 = vld [vmem:[#allocation4 + $0x18] sm:$0xff]  ;;  %1950 = vst.msk [vmem:[#allocation4 + $0x20] sm:$0xff] %vm1945_vm10, %v1858_v52  ;;  %4889 = vmatprep.mubr.msk.f32.mxu0 %vm2022_vm11, %v1980_v30  ;;  %v350_v30 = vld [vmem:[#allocation2 + $0x1a7] sm:$0x1] }
 0x21a   : > { %1951 = vst.msk [vmem:[#allocation4 + $0x28] sm:$0xff] %vm1945_vm10, %v1860_v55  ;;  %4890 = vmatmul.mubr.msk.f32.gmra.mrb[2].mxu0 %vm2022_vm11, %v1981_v32  ;;  %v1430_v55 = vld [vmem:[#allocation2 + $0x1a0] sm:$0xff] }
 0x21b   : > { %1525 = vrot.lane.b32.xlu1 %v1430_v55, %s5068_s29  ;;  %368 = vst.msk [vmem:[#allocation2 + $0x1a9] sm:$0x1] %vm314_vm1, %v350_v30 }
 0x21c   : > { %v1669_v43 = vpop.permute.xlu0 %1668 }
 0x21d   : > { %v1671_v44 = vpop.permute.xlu1 %1670  ;;  %1759 = vst.msk [vmem:[#allocation4 + $0x30] sm:$0xff] %vm1752_vm9, %v1669_v43 }
 0x21e   : > { %1760 = vst.msk [vmem:[#allocation4 + $0x38] sm:$0xff] %vm1752_vm9, %v1671_v44  ;;  %v1623_v44 = vld [vmem:[#allocation2 + $0x1a1] sm:$0xff] }
 0x21f   : > { %1718 = vrot.lane.b32.xlu1 %v1623_v44, %s5069_s15 }
 0x220   : > { %v1862_v49 = vpop.permute.xlu0 %1861  ;;  %v1982_v53 = vld [vmem:[#allocation4 + $0x20] sm:$0xff] }
 0x221   : > { %v1864_v50 = vpop.permute.xlu1 %1863  ;;  %v1983_v54 = vld [vmem:[#allocation4 + $0x28] sm:$0xff]  ;;  %1952 = vst.msk [vmem:[#allocation4 + $0x30] sm:$0xff] %vm1945_vm10, %v1862_v49  ;;  %4892 = vmatprep.mubr.msk.f32.mxu0 %vm2022_vm11, %v1982_v53  ;;  %v1429_v49 = vld [vmem:[#allocation2 + $0x198] sm:$0xff] }
 0x222   : > { %1953 = vst.msk [vmem:[#allocation4 + $0x38] sm:$0xff] %vm1945_vm10, %v1864_v50  ;;  %4893 = vmatmul.mubr.msk.f32.gmra.mrb[4].mxu0 %vm2022_vm11, %v1983_v54  ;;  %1523 = vrot.lane.b32.xlu0 %v1429_v49, %s5068_s29 }
 0x224   : > { %v1673_v59 = vpop.permute.xlu0 %1672 }
 0x225   : > { %v1675_v62 = vpop.permute.xlu1 %1674  ;;  %1761 = vst.msk [vmem:[#allocation4 + $0x40] sm:$0xff] %vm1752_vm9, %v1673_v59 }
 0x226   : > { %1762 = vst.msk [vmem:[#allocation4 + $0x48] sm:$0xff] %vm1752_vm9, %v1675_v62  ;;  %v1816_v62 = vld [vmem:[#allocation2 + $0x1a2] sm:$0xff] }
 0x227   : > { %1911 = vrot.lane.b32.xlu1 %v1816_v62, %s5070_s16 }
 0x228   : > { %v1866_v3 = vpop.permute.xlu0 %1865  ;;  %v1984_v16 = vld [vmem:[#allocation4 + $0x30] sm:$0xff] }
 0x229   : > { %v1868_v8 = vpop.permute.xlu1 %1867  ;;  %v1985_v19 = vld [vmem:[#allocation4 + $0x38] sm:$0xff]  ;;  %1954 = vst.msk [vmem:[#allocation4 + $0x40] sm:$0xff] %vm1945_vm10, %v1866_v3  ;;  %4895 = vmatprep.mubr.msk.f32.mxu0 %vm2022_vm11, %v1984_v16 }
 0x22a   : > { %1955 = vst.msk [vmem:[#allocation4 + $0x48] sm:$0xff] %vm1945_vm10, %v1868_v8  ;;  %4896 = vmatmul.mubr.msk.f32.gmra.mrb[6].mxu0 %vm2022_vm11, %v1985_v19  ;;  %v1622_v3 = vld [vmem:[#allocation2 + $0x199] sm:$0xff] }
 0x22b   : > { %1716 = vrot.lane.b32.xlu0 %v1622_v3, %s5069_s15  ;;  %v1815_v19 = vld [vmem:[#allocation2 + $0x19a] sm:$0xff] }
 0x22c   : > { %v1677_v26 = vpop.permute.xlu0 %1676 }
 0x22d   : > { %v1679_v31 = vpop.permute.xlu1 %1678  ;;  %1763 = vst.msk [vmem:[#allocation4 + $0x50] sm:$0xff] %vm1752_vm9, %v1677_v26 }
 0x22e   : > { %1764 = vst.msk [vmem:[#allocation4 + $0x58] sm:$0xff] %vm1752_vm9, %v1679_v31 }
 0x22f   : > { %1909 = vrot.lane.b32.xlu0 %v1815_v19, %s5070_s16 }
 0x230   : > { %v1870_v61 = vpop.permute.xlu0 %1869  ;;  %v1986_v48 = vld [vmem:[#allocation4 + $0x40] sm:$0xff] }
 0x231   : > { %v1872_v1 = vpop.permute.xlu1 %1871  ;;  %v1987_v40 = vld [vmem:[#allocation4 + $0x48] sm:$0xff]  ;;  %1956 = vst.msk [vmem:[#allocation4 + $0x50] sm:$0xff] %vm1945_vm10, %v1870_v61  ;;  %4898 = vmatprep.mubr.msk.f32.mxu0 %vm2022_vm11, %v1986_v48 }
 0x232   : > { %1957 = vst.msk [vmem:[#allocation4 + $0x58] sm:$0xff] %vm1945_vm10, %v1872_v1  ;;  %4899 = vmatmul.mubr.msk.f32.gmra.mrb[8].mxu0 %vm2022_vm11, %v1987_v40 }
 0x234   : > { %v1681_v47 = vpop.permute.xlu0 %1680 }
 0x235   : > { %v1683_v4 = vpop.permute.xlu1 %1682  ;;  %1765 = vst.msk [vmem:[#allocation4 + $0x60] sm:$0xff] %vm1752_vm9, %v1681_v47 }
 0x236   : > { %1766 = vst.msk [vmem:[#allocation4 + $0x68] sm:$0xff] %vm1752_vm9, %v1683_v4 }
 0x238   : > { %v1874_v14 = vpop.permute.xlu0 %1873  ;;  %v1988_v2 = vld [vmem:[#allocation4 + $0x50] sm:$0xff] }
 0x239   : > { %v1876_v23 = vpop.permute.xlu1 %1875  ;;  %v1989_v22 = vld [vmem:[#allocation4 + $0x58] sm:$0xff]  ;;  %1958 = vst.msk [vmem:[#allocation4 + $0x60] sm:$0xff] %vm1945_vm10, %v1874_v14  ;;  %4901 = vmatprep.mubr.msk.f32.mxu0 %vm2022_vm11, %v1988_v2 }
 0x23a   : > { %1959 = vst.msk [vmem:[#allocation4 + $0x68] sm:$0xff] %vm1945_vm10, %v1876_v23  ;;  %4902 = vmatmul.mubr.msk.f32.gmra.mrb[10].mxu0 %vm2022_vm11, %v1989_v22 }
 0x23c   : > { %v1685_v6 = vpop.permute.xlu0 %1684 }
 0x23d   : > { %v1687_v35 = vpop.permute.xlu1 %1686  ;;  %1767 = vst.msk [vmem:[#allocation4 + $0x70] sm:$0xff] %vm1752_vm9, %v1685_v6  ;;  %v6217_v6 = vld [vmem:[%s7262_s2] ss:$0 sm:$0xff] }
 0x23e   : > { %1768 = vst.msk [vmem:[#allocation4 + $0x78] sm:$0xff] %vm1752_vm9, %v1687_v35 }
 0x240   : > { %v1878_v9 = vpop.permute.xlu0 %1877  ;;  %v1990_v11 = vld [vmem:[#allocation4 + $0x60] sm:$0xff] }
 0x241   : > { %v1880_v36 = vpop.permute.xlu1 %1879  ;;  %v1991_v38 = vld [vmem:[#allocation4 + $0x68] sm:$0xff]  ;;  %1960 = vst.msk [vmem:[#allocation4 + $0x70] sm:$0xff] %vm1945_vm10, %v1878_v9  ;;  %4904 = vmatprep.mubr.msk.f32.mxu0 %vm2022_vm11, %v1990_v11 }
 0x242   : > { %1961 = vst.msk [vmem:[#allocation4 + $0x78] sm:$0xff] %vm1945_vm10, %v1880_v36  ;;  %4905 = vmatmul.mubr.msk.f32.gmra.mrb[12].mxu0 %vm2022_vm11, %v1991_v38 }
 0x244   : > { %v1689_v15 = vpop.permute.xlu0 %1688 }
 0x245   : > { %v1691_v41 = vpop.permute.xlu1 %1690  ;;  %1769 = vst.msk [vmem:[#allocation4 + $0x80] sm:$0xff] %vm1752_vm9, %v1689_v15 }
 0x246   : > { %1770 = vst.msk [vmem:[#allocation4 + $0x88] sm:$0xff] %vm1752_vm9, %v1691_v41 }
 0x248   : > { %v1882_v18 = vpop.permute.xlu0 %1881  ;;  %v1992_v21 = vld [vmem:[#allocation4 + $0x70] sm:$0xff] }
 0x249   : > { %v1884_v51 = vpop.permute.xlu1 %1883  ;;  %v1993_v56 = vld [vmem:[#allocation4 + $0x78] sm:$0xff]  ;;  %1962 = vst.msk [vmem:[#allocation4 + $0x80] sm:$0xff] %vm1945_vm10, %v1882_v18  ;;  %4907 = vmatprep.mubr.msk.f32.mxu0 %vm2022_vm11, %v1992_v21 }
 0x24a   : > { %1963 = vst.msk [vmem:[#allocation4 + $0x88] sm:$0xff] %vm1945_vm10, %v1884_v51  ;;  %4908 = vmatmul.mubr.msk.f32.gmra.mrb[14].mxu0 %vm2022_vm11, %v1993_v56 }
 0x24c   : > { %v1693_v24 = vpop.permute.xlu0 %1692 }
 0x24d   : > { %v1695_v57 = vpop.permute.xlu1 %1694  ;;  %1771 = vst.msk [vmem:[#allocation4 + $0x90] sm:$0xff] %vm1752_vm9, %v1693_v24 }
 0x24e   : > { %1772 = vst.msk [vmem:[#allocation4 + $0x98] sm:$0xff] %vm1752_vm9, %v1695_v57 }
 0x250   : > { %v1886_v34 = vpop.permute.xlu0 %1885  ;;  %v1994_v39 = vld [vmem:[#allocation4 + $0x80] sm:$0xff] }
 0x251   : > { %v1888_v60 = vpop.permute.xlu1 %1887  ;;  %v1995_v0 = vld [vmem:[#allocation4 + $0x88] sm:$0xff]  ;;  %1964 = vst.msk [vmem:[#allocation4 + $0x90] sm:$0xff] %vm1945_vm10, %v1886_v34  ;;  %4910 = vmatprep.mubr.msk.f32.mxu0 %vm2022_vm11, %v1994_v39 }
 0x252   : > { %1965 = vst.msk [vmem:[#allocation4 + $0x98] sm:$0xff] %vm1945_vm10, %v1888_v60  ;;  %4911 = vmatmul.mubr.msk.f32.gmra.mrb[16].mxu0 %vm2022_vm11, %v1995_v0 }
 0x254   : > { %v1697_v17 = vpop.permute.xlu0 %1696 }
 0x255   : > { %v1699_v20 = vpop.permute.xlu1 %1698  ;;  %1773 = vst.msk [vmem:[#allocation4 + $0xa0] sm:$0xff] %vm1752_vm9, %v1697_v17 }
 0x256   : > { %1774 = vst.msk [vmem:[#allocation4 + $0xa8] sm:$0xff] %vm1752_vm9, %v1699_v20 }
 0x258   : > { %v1890_v5 = vpop.permute.xlu0 %1889  ;;  %v1996_v45 = vld [vmem:[#allocation4 + $0x90] sm:$0xff] }
 0x259   : > { %v1892_v42 = vpop.permute.xlu1 %1891  ;;  %v1997_v10 = vld [vmem:[#allocation4 + $0x98] sm:$0xff]  ;;  %1966 = vst.msk [vmem:[#allocation4 + $0xa0] sm:$0xff] %vm1945_vm10, %v1890_v5  ;;  %4913 = vmatprep.mubr.msk.f32.mxu0 %vm2022_vm11, %v1996_v45 }
 0x25a   : > { %1967 = vst.msk [vmem:[#allocation4 + $0xa8] sm:$0xff] %vm1945_vm10, %v1892_v42  ;;  %4914 = vmatmul.mubr.msk.f32.gmra.mrb[18].mxu0 %vm2022_vm11, %v1997_v10 }
 0x25c   : > { %v1701_v13 = vpop.permute.xlu0 %1700 }
 0x25d   : > { %v1703_v46 = vpop.permute.xlu1 %1702  ;;  %1775 = vst.msk [vmem:[#allocation4 + $0xb0] sm:$0xff] %vm1752_vm9, %v1701_v13 }
 0x25e   : > { %1776 = vst.msk [vmem:[#allocation4 + $0xb8] sm:$0xff] %vm1752_vm9, %v1703_v46 }
 0x260   : > { %v1894_v7 = vpop.permute.xlu0 %1893  ;;  %v1998_v63 = vld [vmem:[#allocation4 + $0xa0] sm:$0xff] }
 0x261   : > { %v1896_v12 = vpop.permute.xlu1 %1895  ;;  %v1999_v25 = vld [vmem:[#allocation4 + $0xa8] sm:$0xff]  ;;  %1968 = vst.msk [vmem:[#allocation4 + $0xb0] sm:$0xff] %vm1945_vm10, %v1894_v7  ;;  %4916 = vmatprep.mubr.msk.f32.mxu0 %vm2022_vm11, %v1998_v63 }
 0x262   : > { %1969 = vst.msk [vmem:[#allocation4 + $0xb8] sm:$0xff] %vm1945_vm10, %v1896_v12  ;;  %4917 = vmatmul.mubr.msk.f32.gmra.mrb[20].mxu0 %vm2022_vm11, %v1999_v25 }
 0x264   : > { %v1705_v58 = vpop.permute.xlu0 %1704 }
 0x265   : > { %v1707_v27 = vpop.permute.xlu1 %1706  ;;  %1777 = vst.msk [vmem:[#allocation4 + $0xc0] sm:$0xff] %vm1752_vm9, %v1705_v58 }
 0x266   : > { %1778 = vst.msk [vmem:[#allocation4 + $0xc8] sm:$0xff] %vm1752_vm9, %v1707_v27 }
 0x268   : > { %v1898_v33 = vpop.permute.xlu0 %1897  ;;  %v2000_v29 = vld [vmem:[#allocation4 + $0xb0] sm:$0xff] }
 0x269   : > { %v1900_v37 = vpop.permute.xlu1 %1899  ;;  %v2001_v52 = vld [vmem:[#allocation4 + $0xb8] sm:$0xff]  ;;  %1970 = vst.msk [vmem:[#allocation4 + $0xc0] sm:$0xff] %vm1945_vm10, %v1898_v33  ;;  %4919 = vmatprep.mubr.msk.f32.mxu0 %vm2022_vm11, %v2000_v29 }
 0x26a   : > { %1971 = vst.msk [vmem:[#allocation4 + $0xc8] sm:$0xff] %vm1945_vm10, %v1900_v37  ;;  %4920 = vmatmul.mubr.msk.f32.gmra.mrb[22].mxu0 %vm2022_vm11, %v2001_v52 }
 0x26c   : > { %v1516_v32 = vpop.permute.xlu0 %1515 }
 0x26d   : > { %v1518_v43 = vpop.permute.xlu1 %1517  ;;  %1586 = vst.msk [vmem:[#allocation4 + $0xd0] sm:$0xff] %vm1559_vm8, %v1516_v32 }
 0x26e   : > { %1587 = vst.msk [vmem:[#allocation4 + $0xd8] sm:$0xff] %vm1559_vm8, %v1518_v43 }
 0x270   : > { %v1709_v50 = vpop.permute.xlu0 %1708  ;;  %v2002_v54 = vld [vmem:[#allocation4 + $0xc0] sm:$0xff] }
 0x271   : > { %v1711_v53 = vpop.permute.xlu1 %1710  ;;  %v2003_v59 = vld [vmem:[#allocation4 + $0xc8] sm:$0xff]  ;;  %1779 = vst.msk [vmem:[#allocation4 + $0xd0] sm:$0xff] %vm1752_vm9, %v1709_v50  ;;  %4922 = vmatprep.mubr.msk.f32.mxu0 %vm2022_vm11, %v2002_v54 }
 0x272   : > { %1780 = vst.msk [vmem:[#allocation4 + $0xd8] sm:$0xff] %vm1752_vm9, %v1711_v53  ;;  %4923 = vmatmul.mubr.msk.f32.gmra.mrb[24].mxu0 %vm2022_vm11, %v2003_v59 }
 0x274   : > { %v1902_v8 = vpop.permute.xlu0 %1901 }
 0x275   : > { %v1904_v16 = vpop.permute.xlu1 %1903  ;;  %1972 = vst.msk [vmem:[#allocation4 + $0xd0] sm:$0xff] %vm1945_vm10, %v1902_v8 }
 0x276   : > { %1973 = vst.msk [vmem:[#allocation4 + $0xd8] sm:$0xff] %vm1945_vm10, %v1904_v16 }
 0x278   : > { %v1520_v26 = vpop.permute.xlu0 %1519 }
 0x279   : > { %v1522_v31 = vpop.permute.xlu1 %1521  ;;  %1588 = vst.msk [vmem:[#allocation4 + $0xe0] sm:$0xff] %vm1559_vm8, %v1520_v26 }
 0x27a   : > { %1589 = vst.msk [vmem:[#allocation4 + $0xe8] sm:$0xff] %vm1559_vm8, %v1522_v31 }
 0x27c   : > { %v1713_v61 = vpop.permute.xlu0 %1712  ;;  %v2004_v48 = vld [vmem:[#allocation4 + $0xd0] sm:$0xff] }
 0x27d   : > { %v1715_v1 = vpop.permute.xlu1 %1714  ;;  %v2005_v40 = vld [vmem:[#allocation4 + $0xd8] sm:$0xff]  ;;  %1781 = vst.msk [vmem:[#allocation4 + $0xe0] sm:$0xff] %vm1752_vm9, %v1713_v61  ;;  %4925 = vmatprep.mubr.msk.f32.mxu0 %vm2022_vm11, %v2004_v48 }
 0x27e   : > { %1782 = vst.msk [vmem:[#allocation4 + $0xe8] sm:$0xff] %vm1752_vm9, %v1715_v1  ;;  %4926 = vmatmul.mubr.msk.f32.gmra.mrb[26].mxu0 %vm2022_vm11, %v2005_v40 }
 0x280   : > { %v1906_v47 = vpop.permute.xlu0 %1905 }
 0x281   : > { %v1908_v4 = vpop.permute.xlu1 %1907  ;;  %1974 = vst.msk [vmem:[#allocation4 + $0xe0] sm:$0xff] %vm1945_vm10, %v1906_v47 }
 0x282   : > { %1975 = vst.msk [vmem:[#allocation4 + $0xe8] sm:$0xff] %vm1945_vm10, %v1908_v4 }
 0x288   : > { %v2006_v14 = vld [vmem:[#allocation4 + $0xe0] sm:$0xff] }
 0x289   : > { %v2007_v23 = vld [vmem:[#allocation4 + $0xe8] sm:$0xff]  ;;  %4928 = vmatprep.mubr.msk.f32.mxu0 %vm2022_vm11, %v2006_v14 }
 0x28a   : > { %4929 = vmatmul.mubr.msk.f32.gmra.mrb[28].mxu0 %vm2022_vm11, %v2007_v23 }
 0x28d   : > { %v1526_v2 = vpop.permute.xlu1 %1525 }
 0x28e   : > { %1591 = vst.msk [vmem:[#allocation4 + $0xf8] sm:$0xff] %vm1559_vm8, %v1526_v2 }
 0x291   : > { %v1719_v22 = vpop.permute.xlu1 %1718 }
 0x292   : > { %1784 = vst.msk [vmem:[#allocation4 + $0xf8] sm:$0xff] %vm1752_vm9, %v1719_v22 }
 0x294   : > { %v1524_v35 = vpop.permute.xlu0 %1523 }
 0x295   : > { %1590 = vst.msk [vmem:[#allocation4 + $0xf0] sm:$0xff] %vm1559_vm8, %v1524_v35 }
 0x299   : > { %v1912_v9 = vpop.permute.xlu1 %1911 }
 0x29a   : > { %1977 = vst.msk [vmem:[#allocation4 + $0xf8] sm:$0xff] %vm1945_vm10, %v1912_v9 }
 0x29d   : > { %v1717_v41 = vpop.permute.xlu0 %1716 }
 0x29e   : > { %1783 = vst.msk [vmem:[#allocation4 + $0xf0] sm:$0xff] %vm1752_vm9, %v1717_v41 }
 0x2a1   : > { %v1910_v24 = vpop.permute.xlu0 %1909  ;;  %v2009_v58 = vld [vmem:[#allocation4 + $0xf8] sm:$0xff] }
 0x2a2   : > { %1976 = vst.msk [vmem:[#allocation4 + $0xf0] sm:$0xff] %vm1945_vm10, %v1910_v24 }
 0x2a9   : > { %v2008_v63 = vld [vmem:[#allocation4 + $0xf0] sm:$0xff] }
 0x2aa   : > { %4931 = vmatprep.mubr.msk.f32.mxu0 %vm2022_vm11, %v2008_v63 }
 0x2ab   : > { %4932 = vmatmul.mubr.msk.f32.gmra.mrb[30].mxu0 %vm2022_vm11, %v2009_v58 }
 0x2e5   : > { %v4888_v36 = vpop.f32.mrb[0].mxu0 }
 0x2e6   : > { %v2195_v11 = vadd.f32 %v4888_v36, %v6217_v6  ;;  %v2189_v38 = vpop.f32.mrb[1].mxu0 }
 0x2e7   : > { %v2190_v15 = vadd.f32 %v6217_v6, %v2189_v38 }
 0x2e8   : > { %vm2349_vm12 = vcmp.ge.f32.partialorder %v2195_v11, 0.0  ;;  %v2381_v18 = vmul.f32 0.01, %v2195_v11 }
 0x2e9   : > { %vm2348_vm14 = vcmp.ge.f32.partialorder %v2190_v15, 0.0  ;;  %v2380_v51 = vmul.f32 0.01, %v2190_v15 }
 0x2ea   : > { %v2413_v21 = vsel %vm2349_vm12, %v2195_v11, %v2381_v18 }
 0x2eb   : > { %2447 = vst.msk [vmem:[#allocation3 + $0x21] sm:$0xff] %vm2445_vm13, %v2413_v21  ;;  %v2412_v56 = vsel %vm2348_vm14, %v2190_v15, %v2380_v51 }
 0x2ec   : > { %2446 = vst.msk [vmem:[#allocation3 + $0x19] sm:$0xff] %vm2445_vm13, %v2412_v56 }
 0x2ed   : > { %v4891_v57 = vpop.f32.mrb[2].mxu0 }
 0x2ee   : > { %v2205_v34 = vadd.f32 %v4891_v57, %v6217_v6  ;;  %v2199_v60 = vpop.f32.mrb[3].mxu0 }
 0x2ef   : > { %v2200_v39 = vadd.f32 %v6217_v6, %v2199_v60 }
 0x2f0   : > { %vm2351_vm0 = vcmp.ge.f32.partialorder %v2205_v34, 0.0  ;;  %v2383_v0 = vmul.f32 0.01, %v2205_v34 }
 0x2f1   : > { %vm2350_vm1 = vcmp.ge.f32.partialorder %v2200_v39, 0.0  ;;  %v2382_v17 = vmul.f32 0.01, %v2200_v39 }
 0x2f2   : > { %v2415_v20 = vsel %vm2351_vm0, %v2205_v34, %v2383_v0  ;;  %v2521_v5 = vld [vmem:[#allocation3 + $0x27] sm:$0x1] }
 0x2f3   : > { %v2484_v42 = vld [vmem:[#allocation3 + $0x1a] sm:$0x1]  ;;  %2449 = vst.msk [vmem:[#allocation3 + $0x39] sm:$0xff] %vm2445_vm13, %v2415_v20  ;;  %2479 = vst.msk [vmem:[#allocation3 + $0x9] sm:$0xff] %vm2445_vm13, %v2415_v20  ;;  %v2414_v45 = vsel %vm2350_vm1, %v2200_v39, %v2382_v17  ;;  %v6231_v10 = vld [vmem:[#allocation3 + $0x20] sm:$0xff] }
 0x2f4   : > { %2539 = vst.msk [vmem:[#allocation3 + $0x29] sm:$0x1] %vm2501_vm15, %v2521_v5  ;;  %2503 = vst.msk [vmem:[#allocation3 + $0x18] sm:$0x1] %vm2501_vm15, %v2484_v42  ;;  %v2623_v54 = vld [vmem:[#allocation3 + $0x21] sm:$0xff]  ;;  %v2622_v3 = vld [vmem:[#allocation3 + $0x19] sm:$0xff] }
 0x2f5   : > { %2448 = vst.msk [vmem:[#allocation3 + $0x31] sm:$0xff] %vm2445_vm13, %v2414_v45  ;;  %2478 = vst.msk [vmem:[#allocation3 + $0x1] sm:$0xff] %vm2445_vm13, %v2414_v45  ;;  %v4894_v13 = vpop.f32.mrb[4].mxu0 }
 0x2f6   : > { %2591 = vst.msk [vmem:[#allocation4 + $0x18] sm:$0xff] %vm2445_vm13, %v6231_v10  ;;  %v2215_v46 = vadd.f32 %v4894_v13, %v6217_v6  ;;  %v2209_v7 = vpop.f32.mrb[5].mxu0 }
 0x2f7   : > { %v2210_v12 = vadd.f32 %v6217_v6, %v2209_v7 }
 0x2f8   : > { %vm2353_vm2 = vcmp.ge.f32.partialorder %v2215_v46, 0.0  ;;  %v2385_v25 = vmul.f32 0.01, %v2215_v46 }
 0x2f9   : > { %vm2352_vm3 = vcmp.ge.f32.partialorder %v2210_v12, 0.0  ;;  %v2384_v27 = vmul.f32 0.01, %v2210_v12 }
 0x2fa   : > { %v2417_v28 = vsel %vm2353_vm2, %v2215_v46, %v2385_v25  ;;  %v2621_v33 = vld [vmem:[#allocation3 + $0x9] sm:$0xff]  ;;  %v2522_v59 = vld [vmem:[#allocation3 + $0x3f] sm:$0x1] }
 0x2fb   : > { %v2520_v37 = vld [vmem:[#allocation3 + $0xf] sm:$0x1]  ;;  %2451 = vst.msk [vmem:[#allocation3 + $0x51] sm:$0xff] %vm2445_vm13, %v2417_v28  ;;  %v2416_v55 = vsel %vm2352_vm3, %v2210_v12, %v2384_v27  ;;  %2686 = vrot.lane.b32.xlu1 %v2621_v33, %s5064_s25  ;;  %v6251_v44 = vld [vmem:[#allocation3 + $0x18] sm:$0xff] }
 0x2fc   : > { %v2483_v29 = vld [vmem:[#allocation3 + $0x2] sm:$0x1]  ;;  %v2485_v52 = vld [vmem:[#allocation3 + $0x32] sm:$0x1]  ;;  %2538 = vst.msk [vmem:[#allocation3 + $0x11] sm:$0x1] %vm2501_vm15, %v2520_v37 }
 0x2fd   : > { %v2620_v30 = vld [vmem:[#allocation3 + $0x1] sm:$0xff]  ;;  %2502 = vst.msk [vmem:[#allocation3] sm:$0x1] %vm2501_vm15, %v2483_v29  ;;  %2504 = vst.msk [vmem:[#allocation3 + $0x30] sm:$0x1] %vm2501_vm15, %v2485_v52  ;;  %v4897_v43 = vpop.f32.mrb[6].mxu0 }
 0x2fe   : > { %2450 = vst.msk [vmem:[#allocation3 + $0x49] sm:$0xff] %vm2445_vm13, %v2416_v55  ;;  %2684 = vrot.lane.b32.xlu0 %v2620_v30, %s5064_s25  ;;  %v2557_v32 = vld [vmem:[#allocation3 + $0x8] sm:$0xff]  ;;  %v6253_v49 = vld [vmem:[#allocation3 + $0x38] sm:$0xff]  ;;  %v2225_v50 = vadd.f32 %v4897_v43, %v6217_v6  ;;  %v2219_v53 = vpop.f32.mrb[7].mxu0  ;;  %2590 = vst.msk [vmem:[#allocation4 + $0x10] sm:$0xff] %vm2445_vm13, %v6251_v44 }
 0x2ff   : > { %2589 = vst.msk [vmem:[#allocation4 + $0x8] sm:$0xff] %vm2445_vm13, %v2557_v32  ;;  %2593 = vst.msk [vmem:[#allocation4 + $0x28] sm:$0xff] %vm2445_vm13, %v6253_v49  ;;  %v2220_v62 = vadd.f32 %v6217_v6, %v2219_v53  ;;  %2690 = vrot.lane.b32.xlu1 %v2623_v54, %s5064_s25  ;;  %v6264_v26 = vld [vmem:[#allocation3 + $0x39] sm:$0xff]  ;;  %v6269_v48 = vld [vmem:[#allocation3 + $0x31] sm:$0xff] }
 0x300   : > { %2540 = vst.msk [vmem:[#allocation3 + $0x41] sm:$0x1] %vm2501_vm15, %v2522_v59  ;;  %vm2355_vm4 = vcmp.ge.f32.partialorder %v2225_v50, 0.0  ;;  %v2387_v8 = vmul.f32 0.01, %v2225_v50 }
 0x301   : > { %vm2354_vm5 = vcmp.ge.f32.partialorder %v2220_v62, 0.0  ;;  %v2386_v16 = vmul.f32 0.01, %v2220_v62 }
 0x302   : > { %2688 = vrot.lane.b32.xlu0 %v2622_v3, %s5064_s25  ;;  %v2419_v19 = vsel %vm2355_vm4, %v2225_v50, %v2387_v8  ;;  %v2523_v31 = vld [vmem:[#allocation3 + $0x57] sm:$0x1] }
 0x303   : > { %2453 = vst.msk [vmem:[#allocation3 + $0x69] sm:$0xff] %vm2445_vm13, %v2419_v19  ;;  %v2418_v1 = vsel %vm2354_vm5, %v2220_v62, %v2386_v16  ;;  %2694 = vrot.lane.b32.xlu1 %v6264_v26, %s5064_s25  ;;  %v6286_v22 = vld [vmem:[#allocation3 + $0x51] sm:$0xff] }
 0x304   : > { %v2556_v40 = vld [vmem:[#allocation3] sm:$0xff]  ;;  %2541 = vst.msk [vmem:[#allocation3 + $0x59] sm:$0x1] %vm2501_vm15, %v2523_v31  ;;  %v6277_v47 = vld [vmem:[#allocation3 + $0x30] sm:$0xff] }
 0x305   : > { %v2486_v61 = vld [vmem:[#allocation3 + $0x4a] sm:$0x1]  ;;  %2452 = vst.msk [vmem:[#allocation3 + $0x61] sm:$0xff] %vm2445_vm13, %v2418_v1  ;;  %2588 = vst.msk [vmem:[#allocation4] sm:$0xff] %vm2445_vm13, %v2556_v40  ;;  %v6279_v4 = vld [vmem:[#allocation3 + $0x50] sm:$0xff]  ;;  %v4900_v14 = vpop.f32.mrb[8].mxu0 }
 0x306   : > { %2505 = vst.msk [vmem:[#allocation3 + $0x48] sm:$0x1] %vm2501_vm15, %v2486_v61  ;;  %2692 = vrot.lane.b32.xlu0 %v6269_v48, %s5064_s25  ;;  %v2235_v23 = vadd.f32 %v4900_v14, %v6217_v6  ;;  %v2229_v2 = vpop.f32.mrb[9].mxu0  ;;  %v6291_v9 = vld [vmem:[#allocation3 + $0x49] sm:$0xff] }
 0x307   : > { %2592 = vst.msk [vmem:[#allocation4 + $0x20] sm:$0xff] %vm2445_vm13, %v6277_v47  ;;  %2595 = vst.msk [vmem:[#allocation4 + $0x38] sm:$0xff] %vm2445_vm13, %v6279_v4  ;;  %v2230_v35 = vadd.f32 %v6217_v6, %v2229_v2  ;;  %2698 = vrot.lane.b32.xlu1 %v6286_v22, %s5064_s25 }
 0x308   : > { %vm2357_vm6 = vcmp.ge.f32.partialorder %v2235_v23, 0.0  ;;  %v2389_v36 = vmul.f32 0.01, %v2235_v23 }
 0x309   : > { %vm2356_vm7 = vcmp.ge.f32.partialorder %v2230_v35, 0.0  ;;  %v2388_v11 = vmul.f32 0.01, %v2230_v35 }
 0x30a   : > { %2696 = vrot.lane.b32.xlu0 %v6291_v9, %s5064_s25  ;;  %v2421_v38 = vsel %vm2357_vm6, %v2235_v23, %v2389_v36  ;;  %v2629_v15 = vld [vmem:[#allocation3 + $0x69] sm:$0xff] }
 0x30b   : > { %v2524_v41 = vld [vmem:[#allocation3 + $0x6f] sm:$0x1]  ;;  %2455 = vst.msk [vmem:[#allocation3 + $0x81] sm:$0xff] %vm2445_vm13, %v2421_v38  ;;  %v2420_v51 = vsel %vm2356_vm7, %v2230_v35, %v2388_v11  ;;  %2702 = vrot.lane.b32.xlu1 %v2629_v15, %s5064_s25 }
 0x30c   : > { %v2487_v18 = vld [vmem:[#allocation3 + $0x62] sm:$0x1]  ;;  %2542 = vst.msk [vmem:[#allocation3 + $0x71] sm:$0x1] %vm2501_vm15, %v2524_v41  ;;  %v6305_v24 = vld [vmem:[#allocation3 + $0x68] sm:$0xff] }
 0x30d   : > { %v2628_v21 = vld [vmem:[#allocation3 + $0x61] sm:$0xff]  ;;  %2506 = vst.msk [vmem:[#allocation3 + $0x60] sm:$0x1] %vm2501_vm15, %v2487_v18  ;;  %v4903_v57 = vpop.f32.mrb[10].mxu0 }
 0x30e   : > { %v6297_v56 = vld [vmem:[#allocation3 + $0x48] sm:$0xff]  ;;  %2454 = vst.msk [vmem:[#allocation3 + $0x79] sm:$0xff] %vm2445_vm13, %v2420_v51  ;;  %2700 = vrot.lane.b32.xlu0 %v2628_v21, %s5064_s25  ;;  %2597 = vst.msk [vmem:[#allocation4 + $0x48] sm:$0xff] %vm2445_vm13, %v6305_v24  ;;  %v2245_v34 = vadd.f32 %v4903_v57, %v6217_v6  ;;  %v2239_v60 = vpop.f32.mrb[11].mxu0 }
 0x30f   : > { %2594 = vst.msk [vmem:[#allocation4 + $0x30] sm:$0xff] %vm2445_vm13, %v6297_v56  ;;  %v2240_v39 = vadd.f32 %v6217_v6, %v2239_v60 }
 0x310   : > { %vm2359_vm8 = vcmp.ge.f32.partialorder %v2245_v34, 0.0  ;;  %v2391_v0 = vmul.f32 0.01, %v2245_v34 }
 0x311   : > { %vm2358_vm9 = vcmp.ge.f32.partialorder %v2240_v39, 0.0  ;;  %v2390_v17 = vmul.f32 0.01, %v2240_v39 }
 0x312   : > { %v2423_v20 = vsel %vm2359_vm8, %v2245_v34, %v2391_v0  ;;  %v2631_v5 = vld [vmem:[#allocation3 + $0x81] sm:$0xff] }
 0x313   : > { %v2525_v42 = vld [vmem:[#allocation3 + $0x87] sm:$0x1]  ;;  %2457 = vst.msk [vmem:[#allocation3 + $0x99] sm:$0xff] %vm2445_vm13, %v2423_v20  ;;  %v2422_v13 = vsel %vm2358_vm9, %v2240_v39, %v2390_v17  ;;  %2706 = vrot.lane.b32.xlu1 %v2631_v5, %s5064_s25 }
 0x314   : > { %v6313_v7 = vld [vmem:[#allocation3 + $0x60] sm:$0xff]  ;;  %2543 = vst.msk [vmem:[#allocation3 + $0x89] sm:$0x1] %vm2501_vm15, %v2525_v42 }
 0x315   : > { %v2488_v45 = vld [vmem:[#allocation3 + $0x7a] sm:$0x1]  ;;  %2456 = vst.msk [vmem:[#allocation3 + $0x91] sm:$0xff] %vm2445_vm13, %v2422_v13  ;;  %2596 = vst.msk [vmem:[#allocation4 + $0x40] sm:$0xff] %vm2445_vm13, %v6313_v7  ;;  %v6321_v12 = vld [vmem:[#allocation3 + $0x80] sm:$0xff]  ;;  %v4906_v63 = vpop.f32.mrb[12].mxu0 }
 0x316   : > { %v2630_v46 = vld [vmem:[#allocation3 + $0x79] sm:$0xff]  ;;  %2507 = vst.msk [vmem:[#allocation3 + $0x78] sm:$0x1] %vm2501_vm15, %v2488_v45  ;;  %v2255_v25 = vadd.f32 %v4906_v63, %v6217_v6  ;;  %v2249_v58 = vpop.f32.mrb[13].mxu0 }
 0x317   : > { %2704 = vrot.lane.b32.xlu0 %v2630_v46, %s5064_s25  ;;  %2599 = vst.msk [vmem:[#allocation4 + $0x58] sm:$0xff] %vm2445_vm13, %v6321_v12  ;;  %v2250_v27 = vadd.f32 %v6217_v6, %v2249_v58 }
 0x318   : > { %vm2361_vm10 = vcmp.ge.f32.partialorder %v2255_v25, 0.0  ;;  %v2393_v28 = vmul.f32 0.01, %v2255_v25 }
 0x319   : > { %vm2360_vm11 = vcmp.ge.f32.partialorder %v2250_v27, 0.0  ;;  %v2392_v33 = vmul.f32 0.01, %v2250_v27 }
 0x31a   : > { %v2425_v37 = vsel %vm2361_vm10, %v2255_v25, %v2393_v28  ;;  %v2633_v29 = vld [vmem:[#allocation3 + $0x99] sm:$0xff] }
 0x31b   : > { %v2526_v52 = vld [vmem:[#allocation3 + $0x9f] sm:$0x1]  ;;  %2459 = vst.msk [vmem:[#allocation3 + $0xb1] sm:$0xff] %vm2445_vm13, %v2425_v37  ;;  %v2424_v30 = vsel %vm2360_vm11, %v2250_v27, %v2392_v33  ;;  %2710 = vrot.lane.b32.xlu1 %v2633_v29, %s5064_s25 }
 0x31c   : > { %v2489_v55 = vld [vmem:[#allocation3 + $0x92] sm:$0x1]  ;;  %2544 = vst.msk [vmem:[#allocation3 + $0xa1] sm:$0x1] %vm2501_vm15, %v2526_v52  ;;  %v6337_v50 = vld [vmem:[#allocation3 + $0x98] sm:$0xff] }
 0x31d   : > { %v2632_v32 = vld [vmem:[#allocation3 + $0x91] sm:$0xff]  ;;  %2508 = vst.msk [vmem:[#allocation3 + $0x90] sm:$0x1] %vm2501_vm15, %v2489_v55  ;;  %v4909_v53 = vpop.f32.mrb[14].mxu0 }
 0x31e   : > { %v6329_v43 = vld [vmem:[#allocation3 + $0x78] sm:$0xff]  ;;  %2458 = vst.msk [vmem:[#allocation3 + $0xa9] sm:$0xff] %vm2445_vm13, %v2424_v30  ;;  %2708 = vrot.lane.b32.xlu0 %v2632_v32, %s5064_s25  ;;  %2601 = vst.msk [vmem:[#allocation4 + $0x68] sm:$0xff] %vm2445_vm13, %v6337_v50  ;;  %v2265_v54 = vadd.f32 %v4909_v53, %v6217_v6  ;;  %v2259_v59 = vpop.f32.mrb[15].mxu0 }
 0x31f   : > { %2598 = vst.msk [vmem:[#allocation4 + $0x50] sm:$0xff] %vm2445_vm13, %v6329_v43  ;;  %v2260_v62 = vadd.f32 %v6217_v6, %v2259_v59 }
 0x320   : > { %vm2363_vm12 = vcmp.ge.f32.partialorder %v2265_v54, 0.0  ;;  %v2395_v3 = vmul.f32 0.01, %v2265_v54 }
 0x321   : > { %vm2362_vm14 = vcmp.ge.f32.partialorder %v2260_v62, 0.0  ;;  %v2394_v8 = vmul.f32 0.01, %v2260_v62 }
 0x322   : > { %v2427_v16 = vsel %vm2363_vm12, %v2265_v54, %v2395_v3  ;;  %v2635_v19 = vld [vmem:[#allocation3 + $0xb1] sm:$0xff] }
 0x323   : > { %v2527_v31 = vld [vmem:[#allocation3 + $0xb7] sm:$0x1]  ;;  %2461 = vst.msk [vmem:[#allocation3 + $0xc9] sm:$0xff] %vm2445_vm13, %v2427_v16  ;;  %v2426_v1 = vsel %vm2362_vm14, %v2260_v62, %v2394_v8  ;;  %2714 = vrot.lane.b32.xlu1 %v2635_v19, %s5064_s25 }
 0x324   : > { %2545 = vst.msk [vmem:[#allocation3 + $0xb9] sm:$0x1] %vm2501_vm15, %v2527_v31  ;;  %v6349_v14 = vld [vmem:[#allocation3 + $0x90] sm:$0xff] }
 0x325   : > { %v2490_v61 = vld [vmem:[#allocation3 + $0xaa] sm:$0x1]  ;;  %2460 = vst.msk [vmem:[#allocation3 + $0xc1] sm:$0xff] %vm2445_vm13, %v2426_v1  ;;  %v6351_v23 = vld [vmem:[#allocation3 + $0xb0] sm:$0xff]  ;;  %v4912_v2 = vpop.f32.mrb[16].mxu0  ;;  %2600 = vst.msk [vmem:[#allocation4 + $0x60] sm:$0xff] %vm2445_vm13, %v6349_v14 }
 0x326   : > { %v2634_v40 = vld [vmem:[#allocation3 + $0xa9] sm:$0xff]  ;;  %2509 = vst.msk [vmem:[#allocation3 + $0xa8] sm:$0x1] %vm2501_vm15, %v2490_v61  ;;  %v2275_v35 = vadd.f32 %v4912_v2, %v6217_v6  ;;  %v2269_v36 = vpop.f32.mrb[17].mxu0 }
 0x327   : > { %2712 = vrot.lane.b32.xlu0 %v2634_v40, %s5064_s25  ;;  %2603 = vst.msk [vmem:[#allocation4 + $0x78] sm:$0xff] %vm2445_vm13, %v6351_v23  ;;  %v2270_v11 = vadd.f32 %v6217_v6, %v2269_v36 }
 0x328   : > { %vm2365_vm0 = vcmp.ge.f32.partialorder %v2275_v35, 0.0  ;;  %v2397_v38 = vmul.f32 0.01, %v2275_v35 }
 0x329   : > { %vm2364_vm1 = vcmp.ge.f32.partialorder %v2270_v11, 0.0  ;;  %v2396_v15 = vmul.f32 0.01, %v2270_v11 }
 0x32a   : > { %v2429_v41 = vsel %vm2365_vm0, %v2275_v35, %v2397_v38  ;;  %v2637_v18 = vld [vmem:[#allocation3 + $0xc9] sm:$0xff]  ;;  %vm2780_vm0 = vcmask 130112  }
 0x32b   : > { %v2528_v51 = vld [vmem:[#allocation3 + $0xcf] sm:$0x1]  ;;  %2463 = vst.msk [vmem:[#allocation3 + $0xe1] sm:$0xff] %vm2445_vm13, %v2429_v41  ;;  %v2428_v57 = vsel %vm2364_vm1, %v2270_v11, %v2396_v15  ;;  %2718 = vrot.lane.b32.xlu1 %v2637_v18, %s5064_s25  ;;  %vm2973_vm1 = vcmask 195712  }
 0x32c   : > { %v2491_v21 = vld [vmem:[#allocation3 + $0xc2] sm:$0x1]  ;;  %2546 = vst.msk [vmem:[#allocation3 + $0xd1] sm:$0x1] %vm2501_vm15, %v2528_v51  ;;  %v6367_v39 = vld [vmem:[#allocation3 + $0xc8] sm:$0xff] }
 0x32d   : > { %v2636_v34 = vld [vmem:[#allocation3 + $0xc1] sm:$0xff]  ;;  %2510 = vst.msk [vmem:[#allocation3 + $0xc0] sm:$0x1] %vm2501_vm15, %v2491_v21  ;;  %v4915_v0 = vpop.f32.mrb[18].mxu0 }
 0x32e   : > { %2462 = vst.msk [vmem:[#allocation3 + $0xd9] sm:$0xff] %vm2445_vm13, %v2428_v57  ;;  %2716 = vrot.lane.b32.xlu0 %v2636_v34, %s5064_s25  ;;  %v6365_v60 = vld [vmem:[#allocation3 + $0xa8] sm:$0xff]  ;;  %2605 = vst.msk [vmem:[#allocation4 + $0x88] sm:$0xff] %vm2445_vm13, %v6367_v39  ;;  %v2285_v17 = vadd.f32 %v4915_v0, %v6217_v6  ;;  %v2279_v20 = vpop.f32.mrb[19].mxu0 }
 0x32f   : > { %2602 = vst.msk [vmem:[#allocation4 + $0x70] sm:$0xff] %vm2445_vm13, %v6365_v60  ;;  %v2280_v5 = vadd.f32 %v6217_v6, %v2279_v20 }
 0x330   : > { %vm2367_vm2 = vcmp.ge.f32.partialorder %v2285_v17, 0.0  ;;  %v2399_v42 = vmul.f32 0.01, %v2285_v17 }
 0x331   : > { %vm2366_vm3 = vcmp.ge.f32.partialorder %v2280_v5, 0.0  ;;  %v2398_v45 = vmul.f32 0.01, %v2280_v5 }
 0x332   : > { %v2431_v13 = vsel %vm2367_vm2, %v2285_v17, %v2399_v42  ;;  %v2639_v46 = vld [vmem:[#allocation3 + $0xe1] sm:$0xff] }
 0x333   : > { %v2529_v63 = vld [vmem:[#allocation3 + $0xe7] sm:$0x1]  ;;  %2465 = vst.msk [vmem:[#allocation3 + $0xf9] sm:$0xff] %vm2445_vm13, %v2431_v13  ;;  %v2430_v58 = vsel %vm2366_vm3, %v2280_v5, %v2398_v45  ;;  %2722 = vrot.lane.b32.xlu1 %v2639_v46, %s5064_s25 }
 0x334   : > { %2547 = vst.msk [vmem:[#allocation3 + $0xe9] sm:$0x1] %vm2501_vm15, %v2529_v63  ;;  %v6381_v28 = vld [vmem:[#allocation3 + $0xc0] sm:$0xff] }
 0x335   : > { %v2492_v25 = vld [vmem:[#allocation3 + $0xda] sm:$0x1]  ;;  %2464 = vst.msk [vmem:[#allocation3 + $0xf1] sm:$0xff] %vm2445_vm13, %v2430_v58  ;;  %v6383_v33 = vld [vmem:[#allocation3 + $0xe0] sm:$0xff]  ;;  %v4918_v37 = vpop.f32.mrb[20].mxu0  ;;  %2604 = vst.msk [vmem:[#allocation4 + $0x80] sm:$0xff] %vm2445_vm13, %v6381_v28 }
 0x336   : > { %v2638_v27 = vld [vmem:[#allocation3 + $0xd9] sm:$0xff]  ;;  %2511 = vst.msk [vmem:[#allocation3 + $0xd8] sm:$0x1] %vm2501_vm15, %v2492_v25  ;;  %v2295_v29 = vadd.f32 %v4918_v37, %v6217_v6  ;;  %v2289_v52 = vpop.f32.mrb[21].mxu0 }
 0x337   : > { %2720 = vrot.lane.b32.xlu0 %v2638_v27, %s5064_s25  ;;  %2607 = vst.msk [vmem:[#allocation4 + $0x98] sm:$0xff] %vm2445_vm13, %v6383_v33  ;;  %v2290_v55 = vadd.f32 %v6217_v6, %v2289_v52 }
 0x338   : > { %vm2369_vm4 = vcmp.ge.f32.partialorder %v2295_v29, 0.0  ;;  %v2401_v30 = vmul.f32 0.01, %v2295_v29 }
 0x339   : > { %vm2368_vm5 = vcmp.ge.f32.partialorder %v2290_v55, 0.0  ;;  %v2400_v32 = vmul.f32 0.01, %v2290_v55 }
 0x33a   : > { %v2433_v53 = vsel %vm2369_vm4, %v2295_v29, %v2401_v30  ;;  %v2641_v54 = vld [vmem:[#allocation3 + $0xf9] sm:$0xff]  ;;  %vm3359_vm4 = vcmask 326912  }
 0x33b   : > { %v2530_v59 = vld [vmem:[#allocation3 + $0xff] sm:$0x1]  ;;  %2467 = vst.msk [vmem:[#allocation3 + $0x111] sm:$0xff] %vm2445_vm13, %v2433_v53  ;;  %v2432_v3 = vsel %vm2368_vm5, %v2290_v55, %v2400_v32  ;;  %2726 = vrot.lane.b32.xlu1 %v2641_v54, %s5064_s25  ;;  %vm3552_vm5 = vcmask 392512  }
 0x33c   : > { %v2493_v62 = vld [vmem:[#allocation3 + $0xf2] sm:$0x1]  ;;  %2548 = vst.msk [vmem:[#allocation3 + $0x101] sm:$0x1] %vm2501_vm15, %v2530_v59  ;;  %v6399_v19 = vld [vmem:[#allocation3 + $0xf8] sm:$0xff] }
 0x33d   : > { %v2640_v8 = vld [vmem:[#allocation3 + $0xf1] sm:$0xff]  ;;  %2512 = vst.msk [vmem:[#allocation3 + $0xf0] sm:$0x1] %vm2501_vm15, %v2493_v62  ;;  %v4921_v31 = vpop.f32.mrb[22].mxu0 }
 0x33e   : > { %2466 = vst.msk [vmem:[#allocation3 + $0x109] sm:$0xff] %vm2445_vm13, %v2432_v3  ;;  %2724 = vrot.lane.b32.xlu0 %v2640_v8, %s5064_s25  ;;  %v6397_v16 = vld [vmem:[#allocation3 + $0xd8] sm:$0xff]  ;;  %2609 = vst.msk [vmem:[#allocation4 + $0xa8] sm:$0xff] %vm2445_vm13, %v6399_v19  ;;  %v2305_v61 = vadd.f32 %v4921_v31, %v6217_v6  ;;  %v2299_v1 = vpop.f32.mrb[23].mxu0 }
 0x33f   : > { %2606 = vst.msk [vmem:[#allocation4 + $0x90] sm:$0xff] %vm2445_vm13, %v6397_v16  ;;  %v2300_v40 = vadd.f32 %v6217_v6, %v2299_v1 }
 0x340   : > { %vm2371_vm6 = vcmp.ge.f32.partialorder %v2305_v61, 0.0  ;;  %v2403_v2 = vmul.f32 0.01, %v2305_v61 }
 0x341   : > { %vm2370_vm7 = vcmp.ge.f32.partialorder %v2300_v40, 0.0  ;;  %v2402_v35 = vmul.f32 0.01, %v2300_v40 }
 0x342   : > { %v2435_v36 = vsel %vm2371_vm6, %v2305_v61, %v2403_v2  ;;  %v2643_v11 = vld [vmem:[#allocation3 + $0x111] sm:$0xff]  ;;  %vm3746_vm6 = vcmask 458112  }
 0x343   : > { %v2531_v38 = vld [vmem:[#allocation3 + $0x117] sm:$0x1]  ;;  %2469 = vst.msk [vmem:[#allocation3 + $0x129] sm:$0xff] %vm2445_vm13, %v2435_v36  ;;  %v2434_v41 = vsel %vm2370_vm7, %v2300_v40, %v2402_v35  ;;  %2730 = vrot.lane.b32.xlu1 %v2643_v11, %s5064_s25  ;;  %vm3939_vm7 = vcmask 523712  }
 0x344   : > { %2549 = vst.msk [vmem:[#allocation3 + $0x119] sm:$0x1] %vm2501_vm15, %v2531_v38  ;;  %v6413_v51 = vld [vmem:[#allocation3 + $0xf0] sm:$0xff] }
 0x345   : > { %v2494_v15 = vld [vmem:[#allocation3 + $0x10a] sm:$0x1]  ;;  %2468 = vst.msk [vmem:[#allocation3 + $0x121] sm:$0xff] %vm2445_vm13, %v2434_v41  ;;  %v6415_v21 = vld [vmem:[#allocation3 + $0x110] sm:$0xff]  ;;  %v4924_v57 = vpop.f32.mrb[24].mxu0  ;;  %2608 = vst.msk [vmem:[#allocation4 + $0xa0] sm:$0xff] %vm2445_vm13, %v6413_v51 }
 0x346   : > { %v2642_v18 = vld [vmem:[#allocation3 + $0x109] sm:$0xff]  ;;  %2513 = vst.msk [vmem:[#allocation3 + $0x108] sm:$0x1] %vm2501_vm15, %v2494_v15  ;;  %v2315_v34 = vadd.f32 %v4924_v57, %v6217_v6  ;;  %v2309_v0 = vpop.f32.mrb[25].mxu0 }
 0x347   : > { %2728 = vrot.lane.b32.xlu0 %v2642_v18, %s5064_s25  ;;  %2611 = vst.msk [vmem:[#allocation4 + $0xb8] sm:$0xff] %vm2445_vm13, %v6415_v21  ;;  %v2310_v17 = vadd.f32 %v6217_v6, %v2309_v0 }
 0x348   : > { %vm2373_vm8 = vcmp.ge.f32.partialorder %v2315_v34, 0.0  ;;  %v2405_v20 = vmul.f32 0.01, %v2315_v34 }
 0x349   : > { %vm2372_vm9 = vcmp.ge.f32.partialorder %v2310_v17, 0.0  ;;  %v2404_v5 = vmul.f32 0.01, %v2310_v17 }
 0x34a   : > { %v2437_v42 = vsel %vm2373_vm8, %v2315_v34, %v2405_v20  ;;  %v2645_v45 = vld [vmem:[#allocation3 + $0x129] sm:$0xff]  ;;  %vm4132_vm8 = vcmask 589312  }
 0x34b   : > { %v2532_v13 = vld [vmem:[#allocation3 + $0x12f] sm:$0x1]  ;;  %2471 = vst.msk [vmem:[#allocation3 + $0x141] sm:$0xff] %vm2445_vm13, %v2437_v42  ;;  %v2436_v63 = vsel %vm2372_vm9, %v2310_v17, %v2404_v5  ;;  %2734 = vrot.lane.b32.xlu1 %v2645_v45, %s5064_s25  ;;  %vm4213_vm9 = vcmask 588800  }
 0x34c   : > { %v2495_v46 = vld [vmem:[#allocation3 + $0x122] sm:$0x1]  ;;  %2550 = vst.msk [vmem:[#allocation3 + $0x131] sm:$0x1] %vm2501_vm15, %v2532_v13  ;;  %v6431_v27 = vld [vmem:[#allocation3 + $0x128] sm:$0xff] }
 0x34d   : > { %v2644_v25 = vld [vmem:[#allocation3 + $0x121] sm:$0xff]  ;;  %2514 = vst.msk [vmem:[#allocation3 + $0x120] sm:$0x1] %vm2501_vm15, %v2495_v46 }
 0x34e   : > { %2470 = vst.msk [vmem:[#allocation3 + $0x139] sm:$0xff] %vm2445_vm13, %v2436_v63  ;;  %2732 = vrot.lane.b32.xlu0 %v2644_v25, %s5064_s25  ;;  %v6429_v58 = vld [vmem:[#allocation3 + $0x108] sm:$0xff]  ;;  %2613 = vst.msk [vmem:[#allocation4 + $0xc8] sm:$0xff] %vm2445_vm13, %v6431_v27 }
 0x34f   : > { %2610 = vst.msk [vmem:[#allocation4 + $0xb0] sm:$0xff] %vm2445_vm13, %v6429_v58 }
 0x351   : > { %v4927_v37 = vpop.f32.mrb[26].mxu0 }
 0x352   : > { %v2325_v29 = vadd.f32 %v4927_v37, %v6217_v6  ;;  %v2319_v52 = vpop.f32.mrb[27].mxu0  ;;  %v2647_v55 = vld [vmem:[#allocation3 + $0x141] sm:$0xff]  ;;  %v2814_v37 = vld [vmem:[#allocation3 + $0xa] sm:$0xff] }
 0x353   : > { %v2533_v30 = vld [vmem:[#allocation3 + $0x147] sm:$0x1]  ;;  %v2320_v53 = vadd.f32 %v6217_v6, %v2319_v52  ;;  %2738 = vrot.lane.b32.xlu1 %v2647_v55, %s5064_s25 }
 0x354   : > { %2551 = vst.msk [vmem:[#allocation3 + $0x149] sm:$0x1] %vm2501_vm15, %v2533_v30  ;;  %vm2375_vm10 = vcmp.ge.f32.partialorder %v2325_v29, 0.0  ;;  %v2407_v59 = vmul.f32 0.01, %v2325_v29  ;;  %v6443_v62 = vld [vmem:[#allocation3 + $0x120] sm:$0xff] }
 0x355   : > { %v2496_v32 = vld [vmem:[#allocation3 + $0x13a] sm:$0x1]  ;;  %v2583_v3 = vld [vmem:[#allocation3 + $0x140] sm:$0xff]  ;;  %vm2374_vm11 = vcmp.ge.f32.partialorder %v2320_v53, 0.0  ;;  %v2406_v8 = vmul.f32 0.01, %v2320_v53 }
 0x356   : > { %v2646_v54 = vld [vmem:[#allocation3 + $0x139] sm:$0xff]  ;;  %2515 = vst.msk [vmem:[#allocation3 + $0x138] sm:$0x1] %vm2501_vm15, %v2496_v32  ;;  %v2439_v31 = vsel %vm2375_vm10, %v2325_v29, %v2407_v59  ;;  %v2813_v29 = vld [vmem:[#allocation3 + $0x2] sm:$0xff] }
 0x357   : > { %2736 = vrot.lane.b32.xlu0 %v2646_v54, %s5064_s25  ;;  %2612 = vst.msk [vmem:[#allocation4 + $0xc0] sm:$0xff] %vm2445_vm13, %v6443_v62  ;;  %2615 = vst.msk [vmem:[#allocation4 + $0xd8] sm:$0xff] %vm2445_vm13, %v2583_v3  ;;  %v2438_v61 = vsel %vm2374_vm11, %v2320_v53, %v2406_v8  ;;  %v2816_v32 = vld [vmem:[#allocation3 + $0x22] sm:$0xff]  ;;  %v2815_v53 = vld [vmem:[#allocation3 + $0x1a] sm:$0xff] }
 0x358   : > { %2473 = vst.msk [vmem:[#allocation3 + $0x159] sm:$0xff] %vm2445_vm13, %v2439_v31  ;;  %2472 = vst.msk [vmem:[#allocation3 + $0x151] sm:$0xff] %vm2445_vm13, %v2438_v61  ;;  %v6480_v8 = vld [vmem:[#allocation3 + $0x3a] sm:$0xff]  ;;  %v6485_v31 = vld [vmem:[#allocation3 + $0x32] sm:$0xff] }
 0x35d   : > { %v2582_v1 = vld [vmem:[#allocation3 + $0x138] sm:$0xff]  ;;  %v4930_v40 = vpop.f32.mrb[28].mxu0 }
 0x35e   : > { %2614 = vst.msk [vmem:[#allocation4 + $0xd0] sm:$0xff] %vm2445_vm13, %v2582_v1  ;;  %v2335_v2 = vadd.f32 %v4930_v40, %v6217_v6  ;;  %v2329_v35 = vpop.f32.mrb[29].mxu0  ;;  %v6490_v40 = vld [vmem:[#allocation3 + $0x52] sm:$0xff] }
 0x35f   : > { %v2649_v36 = vld [vmem:[#allocation3 + $0x159] sm:$0xff]  ;;  %v2497_v38 = vld [vmem:[#allocation3 + $0x152] sm:$0x1]  ;;  %v2330_v15 = vadd.f32 %v6217_v6, %v2329_v35 }
 0x360   : > { %v2534_v11 = vld [vmem:[#allocation3 + $0x15f] sm:$0x1]  ;;  %2742 = vrot.lane.b32.xlu1 %v2649_v36, %s5064_s25  ;;  %v2648_v41 = vld [vmem:[#allocation3 + $0x151] sm:$0xff]  ;;  %2516 = vst.msk [vmem:[#allocation3 + $0x150] sm:$0x1] %vm2501_vm15, %v2497_v38  ;;  %vm2377_vm12 = vcmp.ge.f32.partialorder %v2335_v2, 0.0 }
 0x361   : > { %2552 = vst.msk [vmem:[#allocation3 + $0x161] sm:$0x1] %vm2501_vm15, %v2534_v11  ;;  %v2409_v18 = vmul.f32 0.01, %v2335_v2  ;;  %2740 = vrot.lane.b32.xlu0 %v2648_v41, %s5064_s25  ;;  %v2585_v57 = vld [vmem:[#allocation3 + $0x158] sm:$0xff]  ;;  %vm2376_vm14 = vcmp.ge.f32.partialorder %v2330_v15, 0.0 }
 0x362   : > { %v2408_v34 = vmul.f32 0.01, %v2330_v15  ;;  %2617 = vst.msk [vmem:[#allocation4 + $0xe8] sm:$0xff] %vm2445_vm13, %v2585_v57  ;;  %v6500_v11 = vld [vmem:[#allocation3 + $0x6a] sm:$0xff]  ;;  %v6505_v38 = vld [vmem:[#allocation3 + $0x62] sm:$0xff]  ;;  %v6513_v41 = vld [vmem:[#allocation3 + $0x7a] sm:$0xff] }
 0x363   : > { %v2441_v0 = vsel %vm2377_vm12, %v2335_v2, %v2409_v18  ;;  %v6495_v2 = vld [vmem:[#allocation3 + $0x4a] sm:$0xff] }
 0x364   : > { %2475 = vst.msk [vmem:[#allocation3 + $0x171] sm:$0xff] %vm2445_vm13, %v2441_v0  ;;  %2482 = vst.msk [vmem:[#allocation3 + $0x1a1] sm:$0xff] %vm2445_vm13, %v2441_v0  ;;  %v2440_v6 = vsel %vm2376_vm14, %v2330_v15, %v2408_v34  ;;  %v6509_v15 = vld [vmem:[#allocation3 + $0x82] sm:$0xff]  ;;  %v6518_v34 = vld [vmem:[#allocation3 + $0x9a] sm:$0xff] }
 0x365   : > { %2474 = vst.msk [vmem:[#allocation3 + $0x169] sm:$0xff] %vm2445_vm13, %v2440_v6  ;;  %2481 = vst.msk [vmem:[#allocation3 + $0x199] sm:$0xff] %vm2445_vm13, %v2440_v6  ;;  %v6523_v0 = vld [vmem:[#allocation3 + $0x92] sm:$0xff] }
 0x366   : > { %v6527_v6 = vld [vmem:[#allocation3 + $0xb2] sm:$0xff] }
 0x367   : > { %v2584_v17 = vld [vmem:[#allocation3 + $0x150] sm:$0xff] }
 0x368   : > { %2616 = vst.msk [vmem:[#allocation4 + $0xe0] sm:$0xff] %vm2445_vm13, %v2584_v17  ;;  %v6531_v17 = vld [vmem:[#allocation3 + $0xaa] sm:$0xff] }
 0x36b   : > { %v2651_v20 = vld [vmem:[#allocation3 + $0x171] sm:$0xff]  ;;  %v2537_v52 = vld [vmem:[#allocation3 + $0x1a7] sm:$0x1] }
 0x36c   : > { %v2535_v5 = vld [vmem:[#allocation3 + $0x177] sm:$0x1]  ;;  %v2498_v42 = vld [vmem:[#allocation3 + $0x16a] sm:$0x1]  ;;  %2746 = vrot.lane.b32.xlu1 %v2651_v20, %s5064_s25  ;;  %v2500_v63 = vld [vmem:[#allocation3 + $0x19a] sm:$0x1] }
 0x36d   : > { %v2650_v45 = vld [vmem:[#allocation3 + $0x169] sm:$0xff]  ;;  %2553 = vst.msk [vmem:[#allocation3 + $0x179] sm:$0x1] %vm2501_vm15, %v2535_v5  ;;  %2517 = vst.msk [vmem:[#allocation3 + $0x168] sm:$0x1] %vm2501_vm15, %v2498_v42  ;;  %v2687_v46 = vpop.permute.xlu1 %2686 }
 0x36e   : > { %2744 = vrot.lane.b32.xlu0 %v2650_v45, %s5064_s25  ;;  %v2587_v13 = vld [vmem:[#allocation3 + $0x170] sm:$0xff]  ;;  %2782 = vst.msk [vmem:[#allocation4 + $0x8] sm:$0xff] %vm2780_vm0, %v2687_v46  ;;  %v6541_v45 = vld [vmem:[#allocation3 + $0xc2] sm:$0xff]  ;;  %v6549_v46 = vld [vmem:[#allocation3 + $0xda] sm:$0xff] }
 0x36f   : > { %2619 = vst.msk [vmem:[#allocation4 + $0xf8] sm:$0xff] %vm2445_vm13, %v2587_v13  ;;  %v6536_v42 = vld [vmem:[#allocation3 + $0xca] sm:$0xff]  ;;  %v6545_v13 = vld [vmem:[#allocation3 + $0xe2] sm:$0xff] }
 0x370   : > { %v2685_v25 = vpop.permute.xlu0 %2684  ;;  %2519 = vst.msk [vmem:[#allocation3 + $0x198] sm:$0x1] %vm2501_vm15, %v2500_v63  ;;  %2879 = vrot.lane.b32.xlu1 %v2814_v37, %s5066_s27  ;;  %2555 = vst.msk [vmem:[#allocation3 + $0x1a9] sm:$0x1] %vm2501_vm15, %v2537_v52  ;;  %v2834_v37 = vld [vmem:[#allocation3 + $0xfa] sm:$0xff]  ;;  %v2836_v52 = vld [vmem:[#allocation3 + $0x112] sm:$0xff] }
 0x371   : > { %2781 = vst.msk [vmem:[#allocation4] sm:$0xff] %vm2780_vm0, %v2685_v25  ;;  %v2691_v55 = vpop.permute.xlu1 %2690 }
 0x372   : > { %2877 = vrot.lane.b32.xlu0 %v2813_v29, %s5066_s27  ;;  %2784 = vst.msk [vmem:[#allocation4 + $0x18] sm:$0xff] %vm2780_vm0, %v2691_v55  ;;  %v6556_v29 = vld [vmem:[#allocation3 + $0xf2] sm:$0xff]  ;;  %v2835_v55 = vld [vmem:[#allocation3 + $0x10a] sm:$0xff] }
 0x374   : > { %v2689_v30 = vpop.permute.xlu0 %2688  ;;  %2883 = vrot.lane.b32.xlu1 %v2816_v32, %s5066_s27  ;;  %v2586_v54 = vld [vmem:[#allocation3 + $0x168] sm:$0xff] }
 0x375   : > { %2783 = vst.msk [vmem:[#allocation4 + $0x10] sm:$0xff] %vm2780_vm0, %v2689_v30  ;;  %v2695_v59 = vpop.permute.xlu1 %2694 }
 0x376   : > { %2881 = vrot.lane.b32.xlu0 %v2815_v53, %s5066_s27  ;;  %2618 = vst.msk [vmem:[#allocation4 + $0xf0] sm:$0xff] %vm2445_vm13, %v2586_v54  ;;  %v2838_v53 = vld [vmem:[#allocation3 + $0x12a] sm:$0xff]  ;;  %v2837_v54 = vld [vmem:[#allocation3 + $0x122] sm:$0xff] }
 0x377   : > { %2786 = vst.msk [vmem:[#allocation4 + $0x28] sm:$0xff] %vm2780_vm0, %v2695_v59  ;;  %v2840_v59 = vld [vmem:[#allocation3 + $0x142] sm:$0xff] }
 0x378   : > { %v2693_v3 = vpop.permute.xlu0 %2692  ;;  %2887 = vrot.lane.b32.xlu1 %v6480_v8, %s5066_s27 }
 0x379   : > { %2785 = vst.msk [vmem:[#allocation4 + $0x20] sm:$0xff] %vm2780_vm0, %v2693_v3  ;;  %v2699_v61 = vpop.permute.xlu1 %2698  ;;  %v2839_v3 = vld [vmem:[#allocation3 + $0x13a] sm:$0xff] }
 0x37a   : > { %2885 = vrot.lane.b32.xlu0 %v6485_v31, %s5066_s27  ;;  %2788 = vst.msk [vmem:[#allocation4 + $0x38] sm:$0xff] %vm2780_vm0, %v2699_v61 }
 0x37c   : > { %v2697_v1 = vpop.permute.xlu0 %2696  ;;  %2891 = vrot.lane.b32.xlu1 %v6490_v40, %s5066_s27 }
 0x37d   : > { %2787 = vst.msk [vmem:[#allocation4 + $0x30] sm:$0xff] %vm2780_vm0, %v2697_v1  ;;  %v2703_v35 = vpop.permute.xlu1 %2702 }
 0x37e   : > { %2889 = vrot.lane.b32.xlu0 %v6495_v2, %s5066_s27  ;;  %2790 = vst.msk [vmem:[#allocation4 + $0x48] sm:$0xff] %vm2780_vm0, %v2703_v35  ;;  %v2842_v35 = vld [vmem:[#allocation3 + $0x15a] sm:$0xff] }
 0x380   : > { %v2701_v36 = vpop.permute.xlu0 %2700  ;;  %2895 = vrot.lane.b32.xlu1 %v6500_v11, %s5066_s27 }
 0x381   : > { %2789 = vst.msk [vmem:[#allocation4 + $0x40] sm:$0xff] %vm2780_vm0, %v2701_v36  ;;  %v2841_v36 = vld [vmem:[#allocation3 + $0x152] sm:$0xff] }
 0x382   : > { %2893 = vrot.lane.b32.xlu0 %v6505_v38, %s5066_s27 }
 0x384   : > { %2899 = vrot.lane.b32.xlu1 %v6509_v15, %s5066_s27 }
 0x385   : > { %v2707_v18 = vpop.permute.xlu1 %2706 }
 0x386   : > { %2897 = vrot.lane.b32.xlu0 %v6513_v41, %s5066_s27  ;;  %2792 = vst.msk [vmem:[#allocation4 + $0x58] sm:$0xff] %vm2780_vm0, %v2707_v18  ;;  %v2844_v18 = vld [vmem:[#allocation3 + $0x172] sm:$0xff] }
 0x388   : > { %2903 = vrot.lane.b32.xlu1 %v6518_v34, %s5066_s27 }
 0x389   : > { %v2705_v57 = vpop.permute.xlu0 %2704 }
 0x38a   : > { %2791 = vst.msk [vmem:[#allocation4 + $0x50] sm:$0xff] %vm2780_vm0, %v2705_v57  ;;  %2901 = vrot.lane.b32.xlu0 %v6523_v0, %s5066_s27  ;;  %v2843_v57 = vld [vmem:[#allocation3 + $0x16a] sm:$0xff] }
 0x38c   : > { %2907 = vrot.lane.b32.xlu1 %v6527_v6, %s5066_s27 }
 0x38d   : > { %v2711_v20 = vpop.permute.xlu1 %2710 }
 0x38e   : > { %2905 = vrot.lane.b32.xlu0 %v6531_v17, %s5066_s27  ;;  %2794 = vst.msk [vmem:[#allocation4 + $0x68] sm:$0xff] %vm2780_vm0, %v2711_v20 }
 0x390   : > { %v2709_v5 = vpop.permute.xlu0 %2708  ;;  %2911 = vrot.lane.b32.xlu1 %v6536_v42, %s5066_s27 }
 0x391   : > { %2793 = vst.msk [vmem:[#allocation4 + $0x60] sm:$0xff] %vm2780_vm0, %v2709_v5 }
 0x392   : > { %2909 = vrot.lane.b32.xlu0 %v6541_v45, %s5066_s27 }
 0x394   : > { %2915 = vrot.lane.b32.xlu1 %v6545_v13, %s5066_s27 }
 0x395   : > { %v2715_v63 = vpop.permute.xlu1 %2714 }
 0x396   : > { %2913 = vrot.lane.b32.xlu0 %v6549_v46, %s5066_s27  ;;  %2796 = vst.msk [vmem:[#allocation4 + $0x78] sm:$0xff] %vm2780_vm0, %v2715_v63 }
 0x398   : > { %2919 = vrot.lane.b32.xlu1 %v2834_v37, %s5066_s27 }
 0x399   : > { %v2713_v25 = vpop.permute.xlu0 %2712 }
 0x39a   : > { %2795 = vst.msk [vmem:[#allocation4 + $0x70] sm:$0xff] %vm2780_vm0, %v2713_v25  ;;  %2917 = vrot.lane.b32.xlu0 %v6556_v29, %s5066_s27 }
 0x39c   : > { %2923 = vrot.lane.b32.xlu1 %v2836_v52, %s5066_s27 }
 0x39d   : > { %v2719_v30 = vpop.permute.xlu1 %2718 }
 0x39e   : > { %2921 = vrot.lane.b32.xlu0 %v2835_v55, %s5066_s27  ;;  %2798 = vst.msk [vmem:[#allocation4 + $0x88] sm:$0xff] %vm2780_vm0, %v2719_v30  ;;  %v4197_v55 = vld [vmem:[%s7263_s3] sm:$0xff]  ;;  %v4198_v30 = vld [vmem:[%s7263_s3 + $0x8] sm:$0xff] }
 0x3a0   : > { %v2717_v32 = vpop.permute.xlu0 %2716  ;;  %2927 = vrot.lane.b32.xlu1 %v2838_v53, %s5066_s27 }
 0x3a1   : > { %2797 = vst.msk [vmem:[#allocation4 + $0x80] sm:$0xff] %vm2780_vm0, %v2717_v32  ;;  %v5008_v32 = vpack.c.bf16 %v4198_v30, %v4197_v55 }
 0x3a2   : > { %2925 = vrot.lane.b32.xlu0 %v2837_v54, %s5066_s27 }
 0x3a3   : > { %5024 = vmatprep.subr.bf16.mxu1 %v5008_v32  ;;  %5009 = vmatprep.subr.bf16.mxu0 %v5008_v32 }
 0x3a4   : > { %2931 = vrot.lane.b32.xlu1 %v2840_v59, %s5066_s27  ;;  %5029 = vmatpush3.bf16.msra.mxu1 %v5008_v32 }
 0x3a5   : > { %v2723_v61 = vpop.permute.xlu1 %2722  ;;  %5011 = vmatpush3.bf16.msra.mxu0 %v5008_v32 }
 0x3a6   : > { %2929 = vrot.lane.b32.xlu0 %v2839_v3, %s5066_s27  ;;  %2800 = vst.msk [vmem:[#allocation4 + $0x98] sm:$0xff] %vm2780_vm0, %v2723_v61 }
 0x3a8   : > { %2935 = vrot.lane.b32.xlu1 %v2842_v35, %s5066_s27 }
 0x3a9   : > { %v2721_v1 = vpop.permute.xlu0 %2720 }
 0x3aa   : > { %2799 = vst.msk [vmem:[#allocation4 + $0x90] sm:$0xff] %vm2780_vm0, %v2721_v1  ;;  %2933 = vrot.lane.b32.xlu0 %v2841_v36, %s5066_s27  ;;  %v4204_v1 = vld [vmem:[%s7263_s3 + $0x38] sm:$0xff] }
 0x3ac   : > { %2939 = vrot.lane.b32.xlu1 %v2844_v18, %s5066_s27 }
 0x3ad   : > { %v2727_v20 = vpop.permute.xlu1 %2726 }
 0x3ae   : > { %2937 = vrot.lane.b32.xlu0 %v2843_v57, %s5066_s27  ;;  %2802 = vst.msk [vmem:[#allocation4 + $0xa8] sm:$0xff] %vm2780_vm0, %v2727_v20 }
 0x3b0   : > { %v2725_v5 = vpop.permute.xlu0 %2724  ;;  %3072 = vrot.lane.b32.xlu1 %v6231_v10, %s5068_s29 }
 0x3b1   : > { %2801 = vst.msk [vmem:[#allocation4 + $0xa0] sm:$0xff] %vm2780_vm0, %v2725_v5  ;;  %v3204_v5 = vld [vmem:[#allocation3 + $0x51] sm:$0xff] }
 0x3b2   : > { %3070 = vrot.lane.b32.xlu0 %v6251_v44, %s5068_s29 }
 0x3b4   : > { %3076 = vrot.lane.b32.xlu1 %v6253_v49, %s5068_s29 }
 0x3b5   : > { %v2731_v63 = vpop.permute.xlu1 %2730 }
 0x3b6   : > { %3074 = vrot.lane.b32.xlu0 %v6277_v47, %s5068_s29  ;;  %2804 = vst.msk [vmem:[#allocation4 + $0xb8] sm:$0xff] %vm2780_vm0, %v2731_v63 }
 0x3b8   : > { %3080 = vrot.lane.b32.xlu1 %v6279_v4, %s5068_s29 }
 0x3b9   : > { %v2729_v25 = vpop.permute.xlu0 %2728 }
 0x3ba   : > { %2803 = vst.msk [vmem:[#allocation4 + $0xb0] sm:$0xff] %vm2780_vm0, %v2729_v25  ;;  %3078 = vrot.lane.b32.xlu0 %v6297_v56, %s5068_s29  ;;  %v4933_v25 = vpop.f32.mrb[30].mxu0 }
 0x3bc   : > { %3084 = vrot.lane.b32.xlu1 %v6305_v24, %s5068_s29 }
 0x3bd   : > { %v2735_v10 = vpop.permute.xlu1 %2734 }
 0x3be   : > { %3082 = vrot.lane.b32.xlu0 %v6313_v7, %s5068_s29  ;;  %2806 = vst.msk [vmem:[#allocation4 + $0xc8] sm:$0xff] %vm2780_vm0, %v2735_v10 }
 0x3c0   : > { %v2733_v44 = vpop.permute.xlu0 %2732  ;;  %3088 = vrot.lane.b32.xlu1 %v6321_v12, %s5068_s29 }
 0x3c1   : > { %2805 = vst.msk [vmem:[#allocation4 + $0xc0] sm:$0xff] %vm2780_vm0, %v2733_v44  ;;  %v2339_v44 = vpop.f32.mrb[31].mxu0 }
 0x3c2   : > { %3086 = vrot.lane.b32.xlu0 %v6329_v43, %s5068_s29 }
 0x3c4   : > { %3092 = vrot.lane.b32.xlu1 %v6337_v50, %s5068_s29 }
 0x3c5   : > { %v2739_v49 = vpop.permute.xlu1 %2738 }
 0x3c6   : > { %3090 = vrot.lane.b32.xlu0 %v6349_v14, %s5068_s29  ;;  %2808 = vst.msk [vmem:[#allocation4 + $0xd8] sm:$0xff] %vm2780_vm0, %v2739_v49 }
 0x3c8   : > { %3096 = vrot.lane.b32.xlu1 %v6351_v23, %s5068_s29 }
 0x3c9   : > { %v2737_v47 = vpop.permute.xlu0 %2736 }
 0x3ca   : > { %2807 = vst.msk [vmem:[#allocation4 + $0xd0] sm:$0xff] %vm2780_vm0, %v2737_v47  ;;  %3094 = vrot.lane.b32.xlu0 %v6365_v60, %s5068_s29 }
 0x3cc   : > { %3100 = vrot.lane.b32.xlu1 %v6367_v39, %s5068_s29 }
 0x3ce   : > { %3098 = vrot.lane.b32.xlu0 %v6381_v28, %s5068_s29 }
 0x3d0   : > { %3104 = vrot.lane.b32.xlu1 %v6383_v33, %s5068_s29 }
 0x3d2   : > { %3102 = vrot.lane.b32.xlu0 %v6397_v16, %s5068_s29  ;;  %v2743_v37 = vpop.permute.xlu1 %2742 }
 0x3d3   : > { %2810 = vst.msk [vmem:[#allocation4 + $0xe8] sm:$0xff] %vm2780_vm0, %v2743_v37  ;;  %v2741_v52 = vpop.permute.xlu0 %2740 }
 0x3d4   : > { %2809 = vst.msk [vmem:[#allocation4 + $0xe0] sm:$0xff] %vm2780_vm0, %v2741_v52  ;;  %3108 = vrot.lane.b32.xlu1 %v6399_v19, %s5068_s29 }
 0x3d6   : > { %3106 = vrot.lane.b32.xlu0 %v6413_v51, %s5068_s29 }
 0x3d8   : > { %3269 = vrot.lane.b32.xlu1 %v6264_v26, %s5070_s16  ;;  %v4199_v26 = vld [vmem:[%s7263_s3 + $0x10] sm:$0xff] }
 0x3da   : > { %3267 = vrot.lane.b32.xlu0 %v6269_v48, %s5070_s16  ;;  %v4200_v48 = vld [vmem:[%s7263_s3 + $0x18] sm:$0xff] }
 0x3db   : > { %v5012_v54 = vpack.c.bf16 %v4200_v48, %v4199_v26  ;;  %v3205_v48 = vld [vmem:[#allocation3 + $0x61] sm:$0xff] }
 0x3dc   : > { %3462 = vrot.lane.b32.xlu1 %v6480_v8, %s5071_s26  ;;  %v4201_v8 = vld [vmem:[%s7263_s3 + $0x20] sm:$0xff] }
 0x3dd   : > { %5025 = vmatprep.subr.bf16.mxu1 %v5012_v54  ;;  %5013 = vmatprep.subr.bf16.mxu0 %v5012_v54 }
 0x3de   : > { %3460 = vrot.lane.b32.xlu0 %v6485_v31, %s5071_s26  ;;  %v2747_v53 = vpop.permute.xlu1 %2746  ;;  %5030 = vmatpush3.bf16.msra.mxu1 %v5012_v54  ;;  %v4202_v31 = vld [vmem:[%s7263_s3 + $0x28] sm:$0xff] }
 0x3df   : > { %2812 = vst.msk [vmem:[#allocation4 + $0xf8] sm:$0xff] %vm2780_vm0, %v2747_v53  ;;  %v5016_v61 = vpack.c.bf16 %v4202_v31, %v4201_v8  ;;  %5015 = vmatpush3.bf16.msra.mxu0 %v5012_v54  ;;  %v3784_v53 = vld [vmem:[#allocation3 + $0x69] sm:$0xff] }
 0x3e0   : > { %v2745_v59 = vpop.permute.xlu0 %2744  ;;  %3656 = vrot.lane.b32.xlu1 %v6279_v4, %s5072_s7 }
 0x3e1   : > { %2811 = vst.msk [vmem:[#allocation4 + $0xf0] sm:$0xff] %vm2780_vm0, %v2745_v59  ;;  %5026 = vmatprep.subr.bf16.mxu1 %v5016_v61  ;;  %5017 = vmatprep.subr.bf16.mxu0 %v5016_v61 }
 0x3e2   : > { %3654 = vrot.lane.b32.xlu0 %v6297_v56, %s5072_s7  ;;  %v2880_v3 = vpop.permute.xlu1 %2879  ;;  %5031 = vmatpush3.bf16.msra.mxu1 %v5016_v61  ;;  %v4203_v56 = vld [vmem:[%s7263_s3 + $0x30] sm:$0xff] }
 0x3e3   : > { %2975 = vst.msk [vmem:[#allocation4 + $0x8] sm:$0xff] %vm2973_vm1, %v2880_v3  ;;  %v5020_v36 = vpack.c.bf16 %v4204_v1, %v4203_v56  ;;  %5019 = vmatpush3.bf16.msra.mxu0 %v5016_v61 }
 0x3e4   : > { %v2878_v4 = vpop.permute.xlu0 %2877  ;;  %3271 = vrot.lane.b32.xlu1 %v6291_v9, %s5070_s16 }
 0x3e5   : > { %2974 = vst.msk [vmem:[#allocation4] sm:$0xff] %vm2973_vm1, %v2878_v4  ;;  %5027 = vmatprep.subr.bf16.mxu1 %v5020_v36  ;;  %5021 = vmatprep.subr.bf16.mxu0 %v5020_v36 }
 0x3e6   : > { %3847 = vrot.lane.b32.xlu0 %v6291_v9, %s5073_s12  ;;  %v2884_v35 = vpop.permute.xlu1 %2883  ;;  %5032 = vmatpush3.bf16.msra.mxu1 %v5020_v36  ;;  %v4205_v9 = vld [vmem:[%s7263_s3 + $0x40] sm:$0xff] }
 0x3e7   : > { %2977 = vst.msk [vmem:[#allocation4 + $0x18] sm:$0xff] %vm2973_vm1, %v2884_v35  ;;  %5028 = vmatprep.subr.mxu1 %v4205_v9  ;;  %5023 = vmatpush3.bf16.msra.mxu0 %v5020_v36  ;;  %v3207_v35 = vld [vmem:[#allocation3 + $0x79] sm:$0xff] }
 0x3e8   : > { %v2882_v18 = vpop.permute.xlu0 %2881  ;;  %4040 = vrot.lane.b32.xlu1 %v6495_v2, %s5074_s21  ;;  %4950 = vmatprep.subr.mxu0 %v4205_v9 }
 0x3e9   : > { %2976 = vst.msk [vmem:[#allocation4 + $0x10] sm:$0xff] %vm2973_vm1, %v2882_v18 }
 0x3ea   : > { %3849 = vrot.lane.b32.xlu0 %v6286_v22, %s5073_s12  ;;  %v2888_v57 = vpop.permute.xlu1 %2887  ;;  %5033 = vmatpush3.msra.mxu1 %v4205_v9 }
 0x3eb   : > { %2979 = vst.msk [vmem:[#allocation4 + $0x28] sm:$0xff] %vm2973_vm1, %v2888_v57  ;;  %4951 = vmatpush3.msra.mxu0 %v4205_v9 }
 0x3ec   : > { %v2886_v20 = vpop.permute.xlu0 %2885  ;;  %3464 = vrot.lane.b32.xlu1 %v6495_v2, %s5071_s26  ;;  %v5054_v2 = vld [vmem:[%s7262_s2] ss:$0 sm:$0xff] }
 0x3ed   : > { %2978 = vst.msk [vmem:[#allocation4 + $0x20] sm:$0xff] %vm2973_vm1, %v2886_v20  ;;  %v2345_v10 = vadd.f32 %v5054_v2, %v4933_v25  ;;  %v2340_v47 = vadd.f32 %v5054_v2, %v2339_v44 }
 0x3ee   : > { %3273 = vrot.lane.b32.xlu0 %v3204_v5, %s5070_s16  ;;  %v2892_v22 = vpop.permute.xlu1 %2891 }
 0x3ef   : > { %2981 = vst.msk [vmem:[#allocation4 + $0x38] sm:$0xff] %vm2973_vm1, %v2892_v22  ;;  %vm2379_vm2 = vcmp.ge.f32.partialorder %v2345_v10, 0.0  ;;  %v2411_v52 = vmul.f32 0.01, %v2345_v10  ;;  %vm2378_vm3 = vcmp.ge.f32.partialorder %v2340_v47, 0.0 }
 0x3f0   : > { %v2890_v63 = vpop.permute.xlu0 %2889  ;;  %3466 = vrot.lane.b32.xlu1 %v6490_v40, %s5071_s26 }
 0x3f1   : > { %2980 = vst.msk [vmem:[#allocation4 + $0x30] sm:$0xff] %vm2973_vm1, %v2890_v63  ;;  %v2443_v55 = vsel %vm2379_vm2, %v2345_v10, %v2411_v52  ;;  %v3209_v63 = vld [vmem:[#allocation3 + $0x91] sm:$0xff]  ;;  %v3211_v52 = vld [vmem:[#allocation3 + $0xa9] sm:$0xff] }
 0x3f2   : > { %4042 = vrot.lane.b32.xlu0 %v6490_v40, %s5074_s21  ;;  %v2896_v49 = vpop.permute.xlu1 %2895  ;;  %v2410_v40 = vmul.f32 0.01, %v2340_v47  ;;  %2477 = vst.msk [vmem:[#allocation3 + $0x189] sm:$0xff] %vm2445_vm13, %v2443_v55 }
 0x3f3   : > { %2983 = vst.msk [vmem:[#allocation4 + $0x48] sm:$0xff] %vm2973_vm1, %v2896_v49 }
 0x3f4   : > { %v2894_v37 = vpop.permute.xlu0 %2893  ;;  %3660 = vrot.lane.b32.xlu1 %v6305_v24, %s5072_s7  ;;  %v2442_v32 = vsel %vm2378_vm3, %v2340_v47, %v2410_v40 }
 0x3f5   : > { %2982 = vst.msk [vmem:[#allocation4 + $0x40] sm:$0xff] %vm2973_vm1, %v2894_v37 }
 0x3f6   : > { %3658 = vrot.lane.b32.xlu0 %v6313_v7, %s5072_s7  ;;  %v2900_v30 = vpop.permute.xlu1 %2899  ;;  %2476 = vst.msk [vmem:[#allocation3 + $0x181] sm:$0xff] %vm2445_vm13, %v2442_v32 }
 0x3f7   : > { %2985 = vst.msk [vmem:[#allocation4 + $0x58] sm:$0xff] %vm2973_vm1, %v2900_v30 }
 0x3f8   : > { %v2898_v26 = vpop.permute.xlu0 %2897  ;;  %3275 = vrot.lane.b32.xlu1 %v3205_v48, %s5070_s16 }
 0x3f9   : > { %2984 = vst.msk [vmem:[#allocation4 + $0x50] sm:$0xff] %vm2973_vm1, %v2898_v26  ;;  %v2536_v3 = vld [vmem:[#allocation3 + $0x18f] sm:$0x1] }
 0x3fa   : > { %3851 = vrot.lane.b32.xlu0 %v3205_v48, %s5073_s12  ;;  %v2904_v24 = vpop.permute.xlu1 %2903  ;;  %2554 = vst.msk [vmem:[#allocation3 + $0x191] sm:$0x1] %vm2501_vm15, %v2536_v3 }
 0x3fb   : > { %2987 = vst.msk [vmem:[#allocation4 + $0x68] sm:$0xff] %vm2973_vm1, %v2904_v24 }
 0x3fc   : > { %v2902_v7 = vpop.permute.xlu0 %2901  ;;  %4044 = vrot.lane.b32.xlu1 %v6505_v38, %s5074_s21 }
 0x3fd   : > { %2986 = vst.msk [vmem:[#allocation4 + $0x60] sm:$0xff] %vm2973_vm1, %v2902_v7  ;;  %v2499_v31 = vld [vmem:[#allocation3 + $0x182] sm:$0x1] }
 0x3fe   : > { %3853 = vrot.lane.b32.xlu0 %v3784_v53, %s5073_s12  ;;  %v2908_v54 = vpop.permute.xlu1 %2907  ;;  %2518 = vst.msk [vmem:[#allocation3 + $0x180] sm:$0x1] %vm2501_vm15, %v2499_v31  ;;  %vm3166_vm15 = vcmask 261312   ;;  %v3213_v7 = vld [vmem:[#allocation3 + $0xc1] sm:$0xff] }
 0x3ff   : > { %2989 = vst.msk [vmem:[#allocation4 + $0x78] sm:$0xff] %vm2973_vm1, %v2908_v54 }
 0x400   : > { %v2906_v59 = vpop.permute.xlu0 %2905  ;;  %3468 = vrot.lane.b32.xlu1 %v6505_v38, %s5071_s26 }
 0x401   : > { %2988 = vst.msk [vmem:[#allocation4 + $0x70] sm:$0xff] %vm2973_vm1, %v2906_v59 }
 0x402   : > { %3277 = vrot.lane.b32.xlu0 %v3784_v53, %s5070_s16  ;;  %v2912_v8 = vpop.permute.xlu1 %2911 }
 0x403   : > { %2991 = vst.msk [vmem:[#allocation4 + $0x88] sm:$0xff] %vm2973_vm1, %v2912_v8 }
 0x404   : > { %v2910_v61 = vpop.permute.xlu0 %2909  ;;  %3470 = vrot.lane.b32.xlu1 %v6500_v11, %s5071_s26 }
 0x405   : > { %2990 = vst.msk [vmem:[#allocation4 + $0x80] sm:$0xff] %vm2973_vm1, %v2910_v61 }
 0x406   : > { %4046 = vrot.lane.b32.xlu0 %v6500_v11, %s5074_s21  ;;  %v2916_v38 = vpop.permute.xlu1 %2915 }
 0x407   : > { %2993 = vst.msk [vmem:[#allocation4 + $0x98] sm:$0xff] %vm2973_vm1, %v2916_v38  ;;  %v3215_v38 = vld [vmem:[#allocation3 + $0xd9] sm:$0xff] }
 0x408   : > { %v2914_v4 = vpop.permute.xlu0 %2913  ;;  %3664 = vrot.lane.b32.xlu1 %v6321_v12, %s5072_s7  ;;  %v3786_v12 = vld [vmem:[#allocation3 + $0x81] sm:$0xff] }
 0x409   : > { %2992 = vst.msk [vmem:[#allocation4 + $0x90] sm:$0xff] %vm2973_vm1, %v2914_v4 }
 0x40a   : > { %3662 = vrot.lane.b32.xlu0 %v6329_v43, %s5072_s7  ;;  %v2920_v56 = vpop.permute.xlu1 %2919 }
 0x40b   : > { %2995 = vst.msk [vmem:[#allocation4 + $0xa8] sm:$0xff] %vm2973_vm1, %v2920_v56 }
 0x40c   : > { %v2918_v1 = vpop.permute.xlu0 %2917  ;;  %3279 = vrot.lane.b32.xlu1 %v3207_v35, %s5070_s16 }
 0x40d   : > { %2994 = vst.msk [vmem:[#allocation4 + $0xa0] sm:$0xff] %vm2973_vm1, %v2918_v1 }
 0x40e   : > { %3855 = vrot.lane.b32.xlu0 %v3207_v35, %s5073_s12  ;;  %v2924_v11 = vpop.permute.xlu1 %2923 }
 0x40f   : > { %2997 = vst.msk [vmem:[#allocation4 + $0xb8] sm:$0xff] %vm2973_vm1, %v2924_v11 }
 0x410   : > { %v2922_v36 = vpop.permute.xlu0 %2921  ;;  %4048 = vrot.lane.b32.xlu1 %v6513_v41, %s5074_s21 }
 0x411   : > { %2996 = vst.msk [vmem:[#allocation4 + $0xb0] sm:$0xff] %vm2973_vm1, %v2922_v36 }
 0x412   : > { %3857 = vrot.lane.b32.xlu0 %v3786_v12, %s5073_s12  ;;  %v2928_v43 = vpop.permute.xlu1 %2927 }
 0x413   : > { %2999 = vst.msk [vmem:[#allocation4 + $0xc8] sm:$0xff] %vm2973_vm1, %v2928_v43 }
 0x414   : > { %v2926_v18 = vpop.permute.xlu0 %2925  ;;  %3472 = vrot.lane.b32.xlu1 %v6513_v41, %s5071_s26 }
 0x415   : > { %2998 = vst.msk [vmem:[#allocation4 + $0xc0] sm:$0xff] %vm2973_vm1, %v2926_v18 }
 0x416   : > { %3281 = vrot.lane.b32.xlu0 %v3786_v12, %s5070_s16  ;;  %v2932_v9 = vpop.permute.xlu1 %2931 }
 0x417   : > { %3001 = vst.msk [vmem:[#allocation4 + $0xd8] sm:$0xff] %vm2973_vm1, %v2932_v9 }
 0x418   : > { %v2930_v57 = vpop.permute.xlu0 %2929  ;;  %3474 = vrot.lane.b32.xlu1 %v6509_v15, %s5071_s26 }
 0x419   : > { %3000 = vst.msk [vmem:[#allocation4 + $0xd0] sm:$0xff] %vm2973_vm1, %v2930_v57 }
 0x41a   : > { %4050 = vrot.lane.b32.xlu0 %v6509_v15, %s5074_s21  ;;  %v2936_v20 = vpop.permute.xlu1 %2935 }
 0x41b   : > { %3003 = vst.msk [vmem:[#allocation4 + $0xe8] sm:$0xff] %vm2973_vm1, %v2936_v20 }
 0x41c   : > { %v2934_v5 = vpop.permute.xlu0 %2933  ;;  %3668 = vrot.lane.b32.xlu1 %v6337_v50, %s5072_s7  ;;  %v3788_v50 = vld [vmem:[#allocation3 + $0x99] sm:$0xff] }
 0x41d   : > { %3002 = vst.msk [vmem:[#allocation4 + $0xe0] sm:$0xff] %vm2973_vm1, %v2934_v5 }
 0x41e   : > { %3666 = vrot.lane.b32.xlu0 %v6349_v14, %s5072_s7  ;;  %v2940_v41 = vpop.permute.xlu1 %2939 }
 0x41f   : > { %3005 = vst.msk [vmem:[#allocation4 + $0xf8] sm:$0xff] %vm2973_vm1, %v2940_v41 }
 0x420   : > { %v2938_v22 = vpop.permute.xlu0 %2937  ;;  %3283 = vrot.lane.b32.xlu1 %v3209_v63, %s5070_s16 }
 0x421   : > { %3004 = vst.msk [vmem:[#allocation4 + $0xf0] sm:$0xff] %vm2973_vm1, %v2938_v22 }
 0x422   : > { %3859 = vrot.lane.b32.xlu0 %v3209_v63, %s5073_s12  ;;  %v3073_v15 = vpop.permute.xlu1 %3072  ;;  %v3411_v63 = vld [vmem:[#allocation3 + $0xfa] sm:$0xff] }
 0x423   : > { %3168 = vst.msk [vmem:[#allocation4 + $0x8] sm:$0xff] %vm3166_vm15, %v3073_v15 }
 0x424   : > { %v3071_v25 = vpop.permute.xlu0 %3070  ;;  %4052 = vrot.lane.b32.xlu1 %v6523_v0, %s5074_s21 }
 0x425   : > { %3167 = vst.msk [vmem:[#allocation4] sm:$0xff] %vm3166_vm15, %v3071_v25 }
 0x426   : > { %3861 = vrot.lane.b32.xlu0 %v3788_v50, %s5073_s12  ;;  %v3077_v14 = vpop.permute.xlu1 %3076 }
 0x427   : > { %3170 = vst.msk [vmem:[#allocation4 + $0x18] sm:$0xff] %vm3166_vm15, %v3077_v14 }
 0x428   : > { %v3075_v2 = vpop.permute.xlu0 %3074  ;;  %3476 = vrot.lane.b32.xlu1 %v6523_v0, %s5071_s26 }
 0x429   : > { %3169 = vst.msk [vmem:[#allocation4 + $0x10] sm:$0xff] %vm3166_vm15, %v3075_v2  ;;  %v3797_v2 = vld [vmem:[#allocation3 + $0x109] sm:$0xff] }
 0x42a   : > { %3285 = vrot.lane.b32.xlu0 %v3788_v50, %s5070_s16  ;;  %v3081_v10 = vpop.permute.xlu1 %3080 }
 0x42b   : > { %3172 = vst.msk [vmem:[#allocation4 + $0x28] sm:$0xff] %vm3166_vm15, %v3081_v10 }
 0x42c   : > { %v3079_v44 = vpop.permute.xlu0 %3078  ;;  %3478 = vrot.lane.b32.xlu1 %v6518_v34, %s5071_s26 }
 0x42d   : > { %3171 = vst.msk [vmem:[#allocation4 + $0x20] sm:$0xff] %vm3166_vm15, %v3079_v44 }
 0x42e   : > { %4054 = vrot.lane.b32.xlu0 %v6518_v34, %s5074_s21  ;;  %v3085_v49 = vpop.permute.xlu1 %3084 }
 0x42f   : > { %3174 = vst.msk [vmem:[#allocation4 + $0x38] sm:$0xff] %vm3166_vm15, %v3085_v49 }
 0x430   : > { %v3083_v47 = vpop.permute.xlu0 %3082  ;;  %3672 = vrot.lane.b32.xlu1 %v6351_v23, %s5072_s7  ;;  %v3790_v23 = vld [vmem:[#allocation3 + $0xb1] sm:$0xff] }
 0x431   : > { %3173 = vst.msk [vmem:[#allocation4 + $0x30] sm:$0xff] %vm3166_vm15, %v3083_v47 }
 0x432   : > { %3670 = vrot.lane.b32.xlu0 %v6365_v60, %s5072_s7  ;;  %v3089_v0 = vpop.permute.xlu1 %3088 }
 0x433   : > { %3176 = vst.msk [vmem:[#allocation4 + $0x48] sm:$0xff] %vm3166_vm15, %v3089_v0  ;;  %v3990_v0 = vld [vmem:[#allocation3 + $0x10a] sm:$0xff] }
 0x434   : > { %v3087_v37 = vpop.permute.xlu0 %3086  ;;  %3287 = vrot.lane.b32.xlu1 %v3211_v52, %s5070_s16 }
 0x435   : > { %3175 = vst.msk [vmem:[#allocation4 + $0x40] sm:$0xff] %vm3166_vm15, %v3087_v37  ;;  %v3798_v37 = vld [vmem:[#allocation3 + $0x111] sm:$0xff] }
 0x436   : > { %3863 = vrot.lane.b32.xlu0 %v3211_v52, %s5073_s12  ;;  %v3093_v34 = vpop.permute.xlu1 %3092 }
 0x437   : > { %3178 = vst.msk [vmem:[#allocation4 + $0x58] sm:$0xff] %vm3166_vm15, %v3093_v34 }
 0x438   : > { %v3091_v40 = vpop.permute.xlu0 %3090  ;;  %4056 = vrot.lane.b32.xlu1 %v6531_v17, %s5074_s21 }
 0x439   : > { %3177 = vst.msk [vmem:[#allocation4 + $0x50] sm:$0xff] %vm3166_vm15, %v3091_v40 }
 0x43a   : > { %3865 = vrot.lane.b32.xlu0 %v3790_v23, %s5073_s12  ;;  %v3097_v60 = vpop.permute.xlu1 %3096 }
 0x43b   : > { %3180 = vst.msk [vmem:[#allocation4 + $0x68] sm:$0xff] %vm3166_vm15, %v3097_v60 }
 0x43c   : > { %v3095_v55 = vpop.permute.xlu0 %3094  ;;  %3480 = vrot.lane.b32.xlu1 %v6531_v17, %s5071_s26 }
 0x43d   : > { %3179 = vst.msk [vmem:[#allocation4 + $0x60] sm:$0xff] %vm3166_vm15, %v3095_v55 }
 0x43e   : > { %3289 = vrot.lane.b32.xlu0 %v3790_v23, %s5070_s16  ;;  %v3101_v30 = vpop.permute.xlu1 %3100  ;;  %v3413_v23 = vld [vmem:[#allocation3 + $0x112] sm:$0xff] }
 0x43f   : > { %3182 = vst.msk [vmem:[#allocation4 + $0x78] sm:$0xff] %vm3166_vm15, %v3101_v30 }
 0x440   : > { %v3099_v32 = vpop.permute.xlu0 %3098  ;;  %3482 = vrot.lane.b32.xlu1 %v6527_v6, %s5071_s26 }
 0x441   : > { %3181 = vst.msk [vmem:[#allocation4 + $0x70] sm:$0xff] %vm3166_vm15, %v3099_v32 }
 0x442   : > { %4058 = vrot.lane.b32.xlu0 %v6527_v6, %s5074_s21  ;;  %v3105_v26 = vpop.permute.xlu1 %3104 }
 0x443   : > { %3184 = vst.msk [vmem:[#allocation4 + $0x88] sm:$0xff] %vm3166_vm15, %v3105_v26 }
 0x444   : > { %v3103_v48 = vpop.permute.xlu0 %3102  ;;  %3676 = vrot.lane.b32.xlu1 %v6367_v39, %s5072_s7  ;;  %v3792_v39 = vld [vmem:[#allocation3 + $0xc9] sm:$0xff] }
 0x445   : > { %3183 = vst.msk [vmem:[#allocation4 + $0x80] sm:$0xff] %vm3166_vm15, %v3103_v48  ;;  %v3799_v48 = vld [vmem:[#allocation3 + $0x121] sm:$0xff] }
 0x446   : > { %3674 = vrot.lane.b32.xlu0 %v6381_v28, %s5072_s7  ;;  %v3109_v17 = vpop.permute.xlu1 %3108 }
 0x447   : > { %3186 = vst.msk [vmem:[#allocation4 + $0x98] sm:$0xff] %vm3166_vm15, %v3109_v17 }
 0x448   : > { %v3107_v24 = vpop.permute.xlu0 %3106  ;;  %3291 = vrot.lane.b32.xlu1 %v3213_v7, %s5070_s16 }
 0x449   : > { %3185 = vst.msk [vmem:[#allocation4 + $0x90] sm:$0xff] %vm3166_vm15, %v3107_v24 }
 0x44a   : > { %3867 = vrot.lane.b32.xlu0 %v3213_v7, %s5073_s12  ;;  %v3270_v6 = vpop.permute.xlu1 %3269 }
 0x44b   : > { %3363 = vst.msk [vmem:[#allocation4 + $0x18] sm:$0xff] %vm3359_vm4, %v3270_v6 }
 0x44c   : > { %v3268_v53 = vpop.permute.xlu0 %3267  ;;  %4060 = vrot.lane.b32.xlu1 %v6541_v45, %s5074_s21 }
 0x44d   : > { %3362 = vst.msk [vmem:[#allocation4 + $0x10] sm:$0xff] %vm3359_vm4, %v3268_v53  ;;  %v3992_v53 = vld [vmem:[#allocation3 + $0x122] sm:$0xff] }
 0x44e   : > { %3869 = vrot.lane.b32.xlu0 %v3792_v39, %s5073_s12  ;;  %v3463_v28 = vpop.permute.xlu1 %3462 }
 0x44f   : > { %3556 = vst.msk [vmem:[#allocation4 + $0x18] sm:$0xff] %vm3552_vm5, %v3463_v28 }
 0x450   : > { %v3461_v54 = vpop.permute.xlu0 %3460  ;;  %3484 = vrot.lane.b32.xlu1 %v6541_v45, %s5071_s26 }
 0x451   : > { %3555 = vst.msk [vmem:[#allocation4 + $0x10] sm:$0xff] %vm3552_vm5, %v3461_v54 }
 0x452   : > { %3293 = vrot.lane.b32.xlu0 %v3792_v39, %s5070_s16  ;;  %v3657_v59 = vpop.permute.xlu1 %3656  ;;  %v3800_v39 = vld [vmem:[#allocation3 + $0x129] sm:$0xff] }
 0x453   : > { %3750 = vst.msk [vmem:[#allocation4 + $0x18] sm:$0xff] %vm3746_vm6, %v3657_v59 }
 0x454   : > { %v3655_v8 = vpop.permute.xlu0 %3654  ;;  %3486 = vrot.lane.b32.xlu1 %v6536_v42, %s5071_s26 }
 0x455   : > { %3749 = vst.msk [vmem:[#allocation4 + $0x10] sm:$0xff] %vm3746_vm6, %v3655_v8 }
 0x456   : > { %4062 = vrot.lane.b32.xlu0 %v6536_v42, %s5074_s21  ;;  %v3272_v31 = vpop.permute.xlu1 %3271 }
 0x457   : > { %3364 = vst.msk [vmem:[#allocation4 + $0x20] sm:$0xff] %vm3359_vm4, %v3272_v31  ;;  %v3415_v31 = vld [vmem:[#allocation3 + $0x12a] sm:$0xff] }
 0x458   : > { %v3848_v45 = vpop.permute.xlu0 %3847  ;;  %3680 = vrot.lane.b32.xlu1 %v6383_v33, %s5072_s7  ;;  %v3794_v33 = vld [vmem:[#allocation3 + $0xe1] sm:$0xff] }
 0x459   : > { %3942 = vst.msk [vmem:[#allocation4 + $0x10] sm:$0xff] %vm3939_vm7, %v3848_v45 }
 0x45a   : > { %3678 = vrot.lane.b32.xlu0 %v6397_v16, %s5072_s7  ;;  %v4041_v3 = vpop.permute.xlu1 %4040 }
 0x45b   : > { %4135 = vst.msk [vmem:[#allocation4 + $0x10] sm:$0xff] %vm4132_vm8, %v4041_v3 }
 0x45c   : > { %v3850_v61 = vpop.permute.xlu0 %3849  ;;  %3295 = vrot.lane.b32.xlu1 %v3215_v38, %s5070_s16 }
 0x45d   : > { %3943 = vst.msk [vmem:[#allocation4 + $0x18] sm:$0xff] %vm3939_vm7, %v3850_v61  ;;  %v3030_v61 = vld [vmem:[#allocation3 + $0x138] sm:$0xff] }
 0x45e   : > { %3871 = vrot.lane.b32.xlu0 %v3215_v38, %s5073_s12  ;;  %v3465_v42 = vpop.permute.xlu1 %3464 }
 0x45f   : > { %3557 = vst.msk [vmem:[#allocation4 + $0x20] sm:$0xff] %vm3552_vm5, %v3465_v42 }
 0x460   : > { %v3274_v4 = vpop.permute.xlu0 %3273  ;;  %4064 = vrot.lane.b32.xlu1 %v6549_v46, %s5074_s21 }
 0x461   : > { %3365 = vst.msk [vmem:[#allocation4 + $0x28] sm:$0xff] %vm3359_vm4, %v3274_v4 }
 0x462   : > { %3873 = vrot.lane.b32.xlu0 %v3794_v33, %s5073_s12  ;;  %v3467_v16 = vpop.permute.xlu1 %3466  ;;  %v4167_v56 = vld [vmem:[#allocation4 + $0x10] sm:$0xff] }
 0x463   : > { %3558 = vst.msk [vmem:[#allocation4 + $0x28] sm:$0xff] %vm3552_vm5, %v3467_v16  ;;  %4955 = vmatprep.mubr.msk.f32.mxu1 %vm4213_vm9, %v4167_v56  ;;  %v3609_v16 = vld [vmem:[#allocation3 + $0x140] sm:$0xff] }
 0x464   : > { %v4043_v1 = vpop.permute.xlu0 %4042  ;;  %3488 = vrot.lane.b32.xlu1 %v6549_v46, %s5071_s26 }
 0x465   : > { %4136 = vst.msk [vmem:[#allocation4 + $0x18] sm:$0xff] %vm4132_vm8, %v4043_v1 }
 0x466   : > { %3297 = vrot.lane.b32.xlu0 %v3794_v33, %s5070_s16  ;;  %v3661_v35 = vpop.permute.xlu1 %3660  ;;  %v3801_v33 = vld [vmem:[#allocation3 + $0x139] sm:$0xff] }
 0x467   : > { %3752 = vst.msk [vmem:[#allocation4 + $0x28] sm:$0xff] %vm3746_vm6, %v3661_v35 }
 0x468   : > { %v3659_v11 = vpop.permute.xlu0 %3658  ;;  %3490 = vrot.lane.b32.xlu1 %v6545_v13, %s5071_s26 }
 0x469   : > { %3751 = vst.msk [vmem:[#allocation4 + $0x20] sm:$0xff] %vm3746_vm6, %v3659_v11 }
 0x46a   : > { %4066 = vrot.lane.b32.xlu0 %v6545_v13, %s5074_s21  ;;  %v3276_v36 = vpop.permute.xlu1 %3275  ;;  %v3217_v13 = vld [vmem:[#allocation3 + $0xf1] sm:$0xff] }
 0x46b   : > { %3366 = vst.msk [vmem:[#allocation4 + $0x30] sm:$0xff] %vm3359_vm4, %v3276_v36  ;;  %v3994_v36 = vld [vmem:[#allocation3 + $0x13a] sm:$0xff] }
 0x46c   : > { %v3852_v12 = vpop.permute.xlu0 %3851  ;;  %v4168_v43 = vld [vmem:[#allocation4 + $0x18] sm:$0xff]  ;;  %3684 = vrot.lane.b32.xlu1 %v6399_v19, %s5072_s7 }
 0x46d   : > { %3944 = vst.msk [vmem:[#allocation4 + $0x20] sm:$0xff] %vm3939_vm7, %v3852_v12  ;;  %4956 = vmatmul.mubr.msk.f32.vlgmr.msra.gmra.mrb[0].mxu1 %vm4213_vm9, %v4168_v43  ;;  %v3802_v43 = vld [vmem:[#allocation3 + $0x141] sm:$0xff] }
 0x46e   : > { %3682 = vrot.lane.b32.xlu0 %v6413_v51, %s5072_s7  ;;  %v4045_v46 = vpop.permute.xlu1 %4044  ;;  %v3796_v51 = vld [vmem:[#allocation3 + $0xf9] sm:$0xff] }
 0x46f   : > { %4137 = vst.msk [vmem:[#allocation4 + $0x20] sm:$0xff] %vm4132_vm8, %v4045_v46 }
 0x470   : > { %v3854_v18 = vpop.permute.xlu0 %3853  ;;  %3299 = vrot.lane.b32.xlu1 %v3217_v13, %s5070_s16 }
 0x471   : > { %3945 = vst.msk [vmem:[#allocation4 + $0x28] sm:$0xff] %vm3939_vm7, %v3854_v18 }
 0x472   : > { %3875 = vrot.lane.b32.xlu0 %v3217_v13, %s5073_s12  ;;  %v3469_v9 = vpop.permute.xlu1 %3468 }
 0x473   : > { %3559 = vst.msk [vmem:[#allocation4 + $0x30] sm:$0xff] %vm3552_vm5, %v3469_v9 }
 0x474   : > { %v3278_v19 = vpop.permute.xlu0 %3277  ;;  %4068 = vrot.lane.b32.xlu1 %v6556_v29, %s5074_s21 }
 0x475   : > { %3367 = vst.msk [vmem:[#allocation4 + $0x38] sm:$0xff] %vm3359_vm4, %v3278_v19  ;;  %v3417_v19 = vld [vmem:[#allocation3 + $0x142] sm:$0xff] }
 0x476   : > { %3877 = vrot.lane.b32.xlu0 %v3796_v51, %s5073_s12  ;;  %v3471_v57 = vpop.permute.xlu1 %3470  ;;  %v4169_v20 = vld [vmem:[#allocation4 + $0x20] sm:$0xff] }
 0x477   : > { %3560 = vst.msk [vmem:[#allocation4 + $0x38] sm:$0xff] %vm3552_vm5, %v3471_v57  ;;  %4958 = vmatprep.mubr.msk.f32.mxu1 %vm4213_vm9, %v4169_v20 }
 0x478   : > { %v4047_v5 = vpop.permute.xlu0 %4046  ;;  %3492 = vrot.lane.b32.xlu1 %v6556_v29, %s5071_s26 }
 0x479   : > { %4138 = vst.msk [vmem:[#allocation4 + $0x28] sm:$0xff] %vm4132_vm8, %v4047_v5  ;;  %v3032_v5 = vld [vmem:[#allocation3 + $0x150] sm:$0xff] }
 0x47a   : > { %3301 = vrot.lane.b32.xlu0 %v3796_v51, %s5070_s16  ;;  %v3665_v41 = vpop.permute.xlu1 %3664 }
 0x47b   : > { %3754 = vst.msk [vmem:[#allocation4 + $0x38] sm:$0xff] %vm3746_vm6, %v3665_v41 }
 0x47c   : > { %v3663_v22 = vpop.permute.xlu0 %3662  ;;  %3494 = vrot.lane.b32.xlu1 %v3411_v63, %s5071_s26 }
 0x47d   : > { %3753 = vst.msk [vmem:[#allocation4 + $0x30] sm:$0xff] %vm3746_vm6, %v3663_v22 }
 0x47e   : > { %4070 = vrot.lane.b32.xlu0 %v3411_v63, %s5074_s21  ;;  %v3280_v15 = vpop.permute.xlu1 %3279  ;;  %v3803_v63 = vld [vmem:[#allocation3 + $0x151] sm:$0xff] }
 0x47f   : > { %3368 = vst.msk [vmem:[#allocation4 + $0x40] sm:$0xff] %vm3359_vm4, %v3280_v15  ;;  %v3611_v15 = vld [vmem:[#allocation3 + $0x158] sm:$0xff] }
 0x480   : > { %v3856_v25 = vpop.permute.xlu0 %3855  ;;  %v4170_v50 = vld [vmem:[#allocation4 + $0x28] sm:$0xff]  ;;  %3110 = vrot.lane.b32.xlu1 %v6429_v58, %s5068_s29 }
 0x481   : > { %3946 = vst.msk [vmem:[#allocation4 + $0x30] sm:$0xff] %vm3939_vm7, %v3856_v25  ;;  %4959 = vmatmul.mubr.msk.f32.gmra.mrb[2].mxu1 %vm4213_vm9, %v4170_v50 }
 0x482   : > { %3686 = vrot.lane.b32.xlu0 %v6429_v58, %s5072_s7  ;;  %v4049_v29 = vpop.permute.xlu1 %4048 }
 0x483   : > { %4139 = vst.msk [vmem:[#allocation4 + $0x30] sm:$0xff] %vm4132_vm8, %v4049_v29 }
 0x484   : > { %v3858_v14 = vpop.permute.xlu0 %3857  ;;  %3879 = vrot.lane.b32.xlu1 %v3797_v2, %s5073_s12 }
 0x485   : > { %3947 = vst.msk [vmem:[#allocation4 + $0x38] sm:$0xff] %vm3939_vm7, %v3858_v14 }
 0x486   : > { %3688 = vrot.lane.b32.xlu0 %v6415_v21, %s5072_s7  ;;  %v3473_v10 = vpop.permute.xlu1 %3472 }
 0x487   : > { %3561 = vst.msk [vmem:[#allocation4 + $0x40] sm:$0xff] %vm3552_vm5, %v3473_v10  ;;  %v3996_v10 = vld [vmem:[#allocation3 + $0x152] sm:$0xff] }
 0x488   : > { %v3282_v44 = vpop.permute.xlu0 %3281  ;;  %3303 = vrot.lane.b32.xlu1 %v3797_v2, %s5070_s16 }
 0x489   : > { %3369 = vst.msk [vmem:[#allocation4 + $0x48] sm:$0xff] %vm3359_vm4, %v3282_v44  ;;  %v3804_v44 = vld [vmem:[#allocation3 + $0x159] sm:$0xff] }
 0x48a   : > { %3112 = vrot.lane.b32.xlu0 %v6415_v21, %s5068_s29  ;;  %v3475_v58 = vpop.permute.xlu1 %3474  ;;  %v4171_v49 = vld [vmem:[#allocation4 + $0x30] sm:$0xff] }
 0x48b   : > { %3562 = vst.msk [vmem:[#allocation4 + $0x48] sm:$0xff] %vm3552_vm5, %v3475_v58  ;;  %4961 = vmatprep.mubr.msk.f32.mxu1 %vm4213_vm9, %v4171_v49 }
 0x48c   : > { %v4051_v47 = vpop.permute.xlu0 %4050  ;;  %4072 = vrot.lane.b32.xlu1 %v3990_v0, %s5074_s21 }
 0x48d   : > { %4140 = vst.msk [vmem:[#allocation4 + $0x38] sm:$0xff] %vm4132_vm8, %v4051_v47 }
 0x48e   : > { %3881 = vrot.lane.b32.xlu0 %v3798_v37, %s5073_s12  ;;  %v3669_v52 = vpop.permute.xlu1 %3668 }
 0x48f   : > { %3756 = vst.msk [vmem:[#allocation4 + $0x48] sm:$0xff] %vm3746_vm6, %v3669_v52  ;;  %v3419_v52 = vld [vmem:[#allocation3 + $0x15a] sm:$0xff] }
 0x490   : > { %v3667_v34 = vpop.permute.xlu0 %3666  ;;  %3496 = vrot.lane.b32.xlu1 %v3990_v0, %s5071_s26 }
 0x491   : > { %3755 = vst.msk [vmem:[#allocation4 + $0x40] sm:$0xff] %vm3746_vm6, %v3667_v34 }
 0x492   : > { %3305 = vrot.lane.b32.xlu0 %v3798_v37, %s5070_s16  ;;  %v3284_v21 = vpop.permute.xlu1 %3283 }
 0x493   : > { %3370 = vst.msk [vmem:[#allocation4 + $0x50] sm:$0xff] %vm3359_vm4, %v3284_v21 }
 0x494   : > { %v3860_v40 = vpop.permute.xlu0 %3859  ;;  %v4172_v60 = vld [vmem:[#allocation4 + $0x38] sm:$0xff]  ;;  %3498 = vrot.lane.b32.xlu1 %v3413_v23, %s5071_s26 }
 0x495   : > { %3948 = vst.msk [vmem:[#allocation4 + $0x40] sm:$0xff] %vm3939_vm7, %v3860_v40  ;;  %4962 = vmatmul.mubr.msk.f32.gmra.mrb[4].mxu1 %vm4213_vm9, %v4172_v60  ;;  %v3034_v40 = vld [vmem:[#allocation3 + $0x168] sm:$0xff] }
 0x496   : > { %4074 = vrot.lane.b32.xlu0 %v3413_v23, %s5074_s21  ;;  %v4053_v55 = vpop.permute.xlu1 %4052 }
 0x497   : > { %4141 = vst.msk [vmem:[#allocation4 + $0x40] sm:$0xff] %vm4132_vm8, %v4053_v55  ;;  %v3805_v55 = vld [vmem:[#allocation3 + $0x169] sm:$0xff] }
 0x498   : > { %v3862_v30 = vpop.permute.xlu0 %3861  ;;  %3114 = vrot.lane.b32.xlu1 %v6443_v62, %s5068_s29 }
 0x499   : > { %3949 = vst.msk [vmem:[#allocation4 + $0x48] sm:$0xff] %vm3939_vm7, %v3862_v30 }
 0x49a   : > { %3690 = vrot.lane.b32.xlu0 %v6443_v62, %s5072_s7  ;;  %v3477_v32 = vpop.permute.xlu1 %3476 }
 0x49b   : > { %3563 = vst.msk [vmem:[#allocation4 + $0x50] sm:$0xff] %vm3552_vm5, %v3477_v32  ;;  %v3613_v32 = vld [vmem:[#allocation3 + $0x170] sm:$0xff] }
 0x49c   : > { %v3286_v26 = vpop.permute.xlu0 %3285  ;;  %3883 = vrot.lane.b32.xlu1 %v3799_v48, %s5073_s12 }
 0x49d   : > { %3371 = vst.msk [vmem:[#allocation4 + $0x58] sm:$0xff] %vm3359_vm4, %v3286_v26 }
 0x49e   : > { %3692 = vrot.lane.b32.xlu0 %v6431_v27, %s5072_s7  ;;  %v3479_v17 = vpop.permute.xlu1 %3478  ;;  %v4173_v24 = vld [vmem:[#allocation4 + $0x40] sm:$0xff] }
 0x49f   : > { %3564 = vst.msk [vmem:[#allocation4 + $0x58] sm:$0xff] %vm3552_vm5, %v3479_v17  ;;  %4964 = vmatprep.mubr.msk.f32.mxu1 %vm4213_vm9, %v4173_v24 }
 0x4a0   : > { %v4055_v7 = vpop.permute.xlu0 %4054  ;;  %3307 = vrot.lane.b32.xlu1 %v3799_v48, %s5070_s16 }
 0x4a1   : > { %4142 = vst.msk [vmem:[#allocation4 + $0x48] sm:$0xff] %vm4132_vm8, %v4055_v7  ;;  %v3998_v7 = vld [vmem:[#allocation3 + $0x16a] sm:$0xff] }
 0x4a2   : > { %3116 = vrot.lane.b32.xlu0 %v6431_v27, %s5068_s29  ;;  %v3673_v62 = vpop.permute.xlu1 %3672 }
 0x4a3   : > { %3758 = vst.msk [vmem:[#allocation4 + $0x58] sm:$0xff] %vm3746_vm6, %v3673_v62  ;;  %v3806_v62 = vld [vmem:[#allocation3 + $0x171] sm:$0xff] }
 0x4a4   : > { %v3671_v6 = vpop.permute.xlu0 %3670  ;;  %4076 = vrot.lane.b32.xlu1 %v3992_v53, %s5074_s21 }
 0x4a5   : > { %3757 = vst.msk [vmem:[#allocation4 + $0x50] sm:$0xff] %vm3746_vm6, %v3671_v6 }
 0x4a6   : > { %3885 = vrot.lane.b32.xlu0 %v3800_v39, %s5073_s12  ;;  %v3288_v28 = vpop.permute.xlu1 %3287 }
 0x4a7   : > { %3372 = vst.msk [vmem:[#allocation4 + $0x60] sm:$0xff] %vm3359_vm4, %v3288_v28 }
 0x4a8   : > { %v3864_v54 = vpop.permute.xlu0 %3863  ;;  %v4174_v59 = vld [vmem:[#allocation4 + $0x48] sm:$0xff]  ;;  %3500 = vrot.lane.b32.xlu1 %v3992_v53, %s5071_s26 }
 0x4a9   : > { %3950 = vst.msk [vmem:[#allocation4 + $0x50] sm:$0xff] %vm3939_vm7, %v3864_v54  ;;  %4965 = vmatmul.mubr.msk.f32.gmra.mrb[6].mxu1 %vm4213_vm9, %v4174_v59  ;;  %v3421_v59 = vld [vmem:[#allocation3 + $0x172] sm:$0xff] }
 0x4aa   : > { %3309 = vrot.lane.b32.xlu0 %v3800_v39, %s5070_s16  ;;  %v4057_v27 = vpop.permute.xlu1 %4056 }
 0x4ab   : > { %4143 = vst.msk [vmem:[#allocation4 + $0x50] sm:$0xff] %vm4132_vm8, %v4057_v27 }
 0x4ac   : > { %v3866_v8 = vpop.permute.xlu0 %3865  ;;  %3502 = vrot.lane.b32.xlu1 %v3415_v31, %s5071_s26 }
 0x4ad   : > { %3951 = vst.msk [vmem:[#allocation4 + $0x58] sm:$0xff] %vm3939_vm7, %v3866_v8 }
 0x4ae   : > { %4078 = vrot.lane.b32.xlu0 %v3415_v31, %s5074_s21  ;;  %v3481_v45 = vpop.permute.xlu1 %3480  ;;  %v3036_v31 = vld [vmem:[#allocation3 + $0x180] sm:$0xff] }
 0x4af   : > { %3565 = vst.msk [vmem:[#allocation4 + $0x60] sm:$0xff] %vm3552_vm5, %v3481_v45 }
 0x4b0   : > { %v3290_v3 = vpop.permute.xlu0 %3289  ;;  %3118 = vrot.lane.b32.xlu1 %v3030_v61, %s5068_s29 }
 0x4b1   : > { %3373 = vst.msk [vmem:[#allocation4 + $0x68] sm:$0xff] %vm3359_vm4, %v3290_v3 }
 0x4b2   : > { %3694 = vrot.lane.b32.xlu0 %v3030_v61, %s5072_s7  ;;  %v3483_v38 = vpop.permute.xlu1 %3482  ;;  %v4175_v42 = vld [vmem:[#allocation4 + $0x50] sm:$0xff] }
 0x4b3   : > { %3566 = vst.msk [vmem:[#allocation4 + $0x68] sm:$0xff] %vm3552_vm5, %v3483_v38  ;;  %4967 = vmatprep.mubr.msk.f32.mxu1 %vm4213_vm9, %v4175_v42  ;;  %v3807_v38 = vld [vmem:[#allocation3 + $0x181] sm:$0xff] }
 0x4b4   : > { %v4059_v4 = vpop.permute.xlu0 %4058  ;;  %3887 = vrot.lane.b32.xlu1 %v3801_v33, %s5073_s12  ;;  %v3615_v42 = vld [vmem:[#allocation3 + $0x188] sm:$0xff] }
 0x4b5   : > { %4144 = vst.msk [vmem:[#allocation4 + $0x58] sm:$0xff] %vm4132_vm8, %v4059_v4 }
 0x4b6   : > { %3696 = vrot.lane.b32.xlu0 %v3609_v16, %s5072_s7  ;;  %v3677_v56 = vpop.permute.xlu1 %3676 }
 0x4b7   : > { %3760 = vst.msk [vmem:[#allocation4 + $0x68] sm:$0xff] %vm3746_vm6, %v3677_v56 }
 0x4b8   : > { %v3675_v1 = vpop.permute.xlu0 %3674  ;;  %3311 = vrot.lane.b32.xlu1 %v3801_v33, %s5070_s16 }
 0x4b9   : > { %3759 = vst.msk [vmem:[#allocation4 + $0x60] sm:$0xff] %vm3746_vm6, %v3675_v1 }
 0x4ba   : > { %3120 = vrot.lane.b32.xlu0 %v3609_v16, %s5068_s29  ;;  %v3292_v35 = vpop.permute.xlu1 %3291  ;;  %v3199_v16 = vld [vmem:[#allocation3 + $0x19] sm:$0xff] }
 0x4bb   : > { %3374 = vst.msk [vmem:[#allocation4 + $0x70] sm:$0xff] %vm3359_vm4, %v3292_v35  ;;  %v3808_v35 = vld [vmem:[#allocation3 + $0x189] sm:$0xff] }
 0x4bc   : > { %v3868_v11 = vpop.permute.xlu0 %3867  ;;  %v4176_v12 = vld [vmem:[#allocation4 + $0x58] sm:$0xff]  ;;  %4080 = vrot.lane.b32.xlu1 %v3994_v36, %s5074_s21 }
 0x4bd   : > { %3952 = vst.msk [vmem:[#allocation4 + $0x60] sm:$0xff] %vm3939_vm7, %v3868_v11  ;;  %4968 = vmatmul.mubr.msk.f32.gmra.mrb[8].mxu1 %vm4213_vm9, %v4176_v12 }
 0x4be   : > { %3889 = vrot.lane.b32.xlu0 %v3802_v43, %s5073_s12  ;;  %v4061_v46 = vpop.permute.xlu1 %4060 }
 0x4bf   : > { %4145 = vst.msk [vmem:[#allocation4 + $0x60] sm:$0xff] %vm4132_vm8, %v4061_v46  ;;  %v4000_v46 = vld [vmem:[#allocation3 + $0x182] sm:$0xff] }
 0x4c0   : > { %v3870_v18 = vpop.permute.xlu0 %3869  ;;  %3504 = vrot.lane.b32.xlu1 %v3994_v36, %s5071_s26 }
 0x4c1   : > { %3953 = vst.msk [vmem:[#allocation4 + $0x68] sm:$0xff] %vm3939_vm7, %v3870_v18 }
 0x4c2   : > { %3313 = vrot.lane.b32.xlu0 %v3802_v43, %s5070_s16  ;;  %v3485_v13 = vpop.permute.xlu1 %3484  ;;  %v3200_v43 = vld [vmem:[#allocation3 + $0x21] sm:$0xff] }
 0x4c3   : > { %3567 = vst.msk [vmem:[#allocation4 + $0x70] sm:$0xff] %vm3552_vm5, %v3485_v13 }
 0x4c4   : > { %v3294_v9 = vpop.permute.xlu0 %3293  ;;  %3506 = vrot.lane.b32.xlu1 %v3417_v19, %s5071_s26 }
 0x4c5   : > { %3375 = vst.msk [vmem:[#allocation4 + $0x78] sm:$0xff] %vm3359_vm4, %v3294_v9  ;;  %v3392_v9 = vld [vmem:[#allocation3 + $0x1a] sm:$0xff] }
 0x4c6   : > { %4082 = vrot.lane.b32.xlu0 %v3417_v19, %s5074_s21  ;;  %v3487_v51 = vpop.permute.xlu1 %3486  ;;  %v4177_v57 = vld [vmem:[#allocation4 + $0x60] sm:$0xff] }
 0x4c7   : > { %3568 = vst.msk [vmem:[#allocation4 + $0x78] sm:$0xff] %vm3552_vm5, %v3487_v51  ;;  %4970 = vmatprep.mubr.msk.f32.mxu1 %vm4213_vm9, %v4177_v57  ;;  %v4001_v57 = vld [vmem:[#allocation3 + $0x18a] sm:$0xff] }
 0x4c8   : > { %v4063_v20 = vpop.permute.xlu0 %4062  ;;  %3122 = vrot.lane.b32.xlu1 %v3032_v5, %s5068_s29 }
 0x4c9   : > { %4146 = vst.msk [vmem:[#allocation4 + $0x68] sm:$0xff] %vm4132_vm8, %v4063_v20 }
 0x4ca   : > { %3698 = vrot.lane.b32.xlu0 %v3032_v5, %s5072_s7  ;;  %v3681_v41 = vpop.permute.xlu1 %3680 }
 0x4cb   : > { %3762 = vst.msk [vmem:[#allocation4 + $0x78] sm:$0xff] %vm3746_vm6, %v3681_v41 }
 0x4cc   : > { %v3679_v22 = vpop.permute.xlu0 %3678  ;;  %3891 = vrot.lane.b32.xlu1 %v3803_v63, %s5073_s12 }
 0x4cd   : > { %3761 = vst.msk [vmem:[#allocation4 + $0x70] sm:$0xff] %vm3746_vm6, %v3679_v22  ;;  %v3393_v22 = vld [vmem:[#allocation3 + $0x22] sm:$0xff] }
 0x4ce   : > { %3700 = vrot.lane.b32.xlu0 %v3611_v15, %s5072_s7  ;;  %v3296_v25 = vpop.permute.xlu1 %3295 }
 0x4cf   : > { %3376 = vst.msk [vmem:[#allocation4 + $0x80] sm:$0xff] %vm3359_vm4, %v3296_v25  ;;  %v3616_v25 = vld [vmem:[#allocation3 + $0x198] sm:$0xff] }
 0x4d0   : > { %v3872_v50 = vpop.permute.xlu0 %3871  ;;  %v4178_v29 = vld [vmem:[#allocation4 + $0x68] sm:$0xff]  ;;  %3315 = vrot.lane.b32.xlu1 %v3803_v63, %s5070_s16 }
 0x4d1   : > { %3954 = vst.msk [vmem:[#allocation4 + $0x70] sm:$0xff] %vm3939_vm7, %v3872_v50  ;;  %4971 = vmatmul.mubr.msk.f32.gmra.mrb[10].mxu1 %vm4213_vm9, %v4178_v29  ;;  %v3586_v50 = vld [vmem:[#allocation3 + $0x30] sm:$0xff] }
 0x4d2   : > { %3124 = vrot.lane.b32.xlu0 %v3611_v15, %s5068_s29  ;;  %v4065_v14 = vpop.permute.xlu1 %4064 }
 0x4d3   : > { %4147 = vst.msk [vmem:[#allocation4 + $0x70] sm:$0xff] %vm4132_vm8, %v4065_v14 }
 0x4d4   : > { %v3874_v2 = vpop.permute.xlu0 %3873  ;;  %4084 = vrot.lane.b32.xlu1 %v3996_v10, %s5074_s21 }
 0x4d5   : > { %3955 = vst.msk [vmem:[#allocation4 + $0x78] sm:$0xff] %vm3939_vm7, %v3874_v2  ;;  %v3617_v2 = vld [vmem:[#allocation3 + $0x1a0] sm:$0xff] }
 0x4d6   : > { %3893 = vrot.lane.b32.xlu0 %v3804_v44, %s5073_s12  ;;  %v3489_v58 = vpop.permute.xlu1 %3488 }
 0x4d7   : > { %3569 = vst.msk [vmem:[#allocation4 + $0x80] sm:$0xff] %vm3552_vm5, %v3489_v58 }
 0x4d8   : > { %v3298_v49 = vpop.permute.xlu0 %3297  ;;  %3508 = vrot.lane.b32.xlu1 %v3996_v10, %s5071_s26  ;;  %v3587_v10 = vld [vmem:[#allocation3 + $0x38] sm:$0xff] }
 0x4d9   : > { %3377 = vst.msk [vmem:[#allocation4 + $0x88] sm:$0xff] %vm3359_vm4, %v3298_v49 }
 0x4da   : > { %3317 = vrot.lane.b32.xlu0 %v3804_v44, %s5070_s16  ;;  %v3491_v47 = vpop.permute.xlu1 %3490  ;;  %v4179_v0 = vld [vmem:[#allocation4 + $0x70] sm:$0xff] }
 0x4db   : > { %3570 = vst.msk [vmem:[#allocation4 + $0x88] sm:$0xff] %vm3552_vm5, %v3491_v47  ;;  %4973 = vmatprep.mubr.msk.f32.mxu1 %vm4213_vm9, %v4179_v0  ;;  %v3809_v47 = vld [vmem:[#allocation3 + $0x199] sm:$0xff]  ;;  %v3779_v0 = vld [vmem:[#allocation3 + $0x31] sm:$0xff] }
 0x4dc   : > { %v4067_v37 = vpop.permute.xlu0 %4066  ;;  %3510 = vrot.lane.b32.xlu1 %v3419_v52, %s5071_s26 }
 0x4dd   : > { %4148 = vst.msk [vmem:[#allocation4 + $0x78] sm:$0xff] %vm4132_vm8, %v4067_v37 }
 0x4de   : > { %4086 = vrot.lane.b32.xlu0 %v3419_v52, %s5074_s21  ;;  %v3685_v34 = vpop.permute.xlu1 %3684 }
 0x4df   : > { %3764 = vst.msk [vmem:[#allocation4 + $0x88] sm:$0xff] %vm3746_vm6, %v3685_v34  ;;  %v3810_v34 = vld [vmem:[#allocation3 + $0x1a1] sm:$0xff] }
 0x4e0   : > { %v3683_v21 = vpop.permute.xlu0 %3682  ;;  %3126 = vrot.lane.b32.xlu1 %v3034_v40, %s5068_s29 }
 0x4e1   : > { %3763 = vst.msk [vmem:[#allocation4 + $0x80] sm:$0xff] %vm3746_vm6, %v3683_v21  ;;  %v3780_v21 = vld [vmem:[#allocation3 + $0x39] sm:$0xff] }
 0x4e2   : > { %3702 = vrot.lane.b32.xlu0 %v3034_v40, %s5072_s7  ;;  %v3300_v23 = vpop.permute.xlu1 %3299 }
 0x4e3   : > { %3378 = vst.msk [vmem:[#allocation4 + $0x90] sm:$0xff] %vm3359_vm4, %v3300_v23 }
 0x4e4   : > { %v3876_v60 = vpop.permute.xlu0 %3875  ;;  %v4180_v30 = vld [vmem:[#allocation4 + $0x78] sm:$0xff]  ;;  %3895 = vrot.lane.b32.xlu1 %v3805_v55, %s5073_s12 }
 0x4e5   : > { %3956 = vst.msk [vmem:[#allocation4 + $0x80] sm:$0xff] %vm3939_vm7, %v3876_v60  ;;  %4974 = vmatmul.mubr.msk.f32.gmra.mrb[12].mxu1 %vm4213_vm9, %v4180_v30  ;;  %v4002_v60 = vld [vmem:[#allocation3 + $0x19a] sm:$0xff]  ;;  %v3972_v30 = vld [vmem:[#allocation3 + $0x32] sm:$0xff] }
 0x4e6   : > { %3704 = vrot.lane.b32.xlu0 %v3613_v32, %s5072_s7  ;;  %v4069_v26 = vpop.permute.xlu1 %4068 }
 0x4e7   : > { %4149 = vst.msk [vmem:[#allocation4 + $0x80] sm:$0xff] %vm4132_vm8, %v4069_v26 }
 0x4e8   : > { %v3878_v48 = vpop.permute.xlu0 %3877  ;;  %3319 = vrot.lane.b32.xlu1 %v3805_v55, %s5070_s16 }
 0x4e9   : > { %3957 = vst.msk [vmem:[#allocation4 + $0x88] sm:$0xff] %vm3939_vm7, %v3878_v48  ;;  %v4003_v48 = vld [vmem:[#allocation3 + $0x1a2] sm:$0xff] }
 0x4ea   : > { %3128 = vrot.lane.b32.xlu0 %v3613_v32, %s5068_s29  ;;  %v3493_v17 = vpop.permute.xlu1 %3492 }
 0x4eb   : > { %3571 = vst.msk [vmem:[#allocation4 + $0x90] sm:$0xff] %vm3552_vm5, %v3493_v17  ;;  %v3973_v17 = vld [vmem:[#allocation3 + $0x3a] sm:$0xff] }
 0x4ec   : > { %v3302_v24 = vpop.permute.xlu0 %3301  ;;  %4088 = vrot.lane.b32.xlu1 %v3998_v7, %s5074_s21 }
 0x4ed   : > { %3379 = vst.msk [vmem:[#allocation4 + $0x98] sm:$0xff] %vm3359_vm4, %v3302_v24 }
 0x4ee   : > { %3897 = vrot.lane.b32.xlu0 %v3806_v62, %s5073_s12  ;;  %v3495_v6 = vpop.permute.xlu1 %3494  ;;  %v4181_v53 = vld [vmem:[#allocation4 + $0x80] sm:$0xff] }
 0x4ef   : > { %3572 = vst.msk [vmem:[#allocation4 + $0x98] sm:$0xff] %vm3552_vm5, %v3495_v6  ;;  %4976 = vmatprep.mubr.msk.f32.mxu1 %vm4213_vm9, %v4181_v53 }
 0x4f0   : > { %v4071_v39 = vpop.permute.xlu0 %4070  ;;  %3512 = vrot.lane.b32.xlu1 %v3998_v7, %s5071_s26 }
 0x4f1   : > { %4150 = vst.msk [vmem:[#allocation4 + $0x88] sm:$0xff] %vm4132_vm8, %v4071_v39 }
 0x4f2   : > { %3321 = vrot.lane.b32.xlu0 %v3806_v62, %s5070_s16  ;;  %v3111_v28 = vpop.permute.xlu1 %3110 }
 0x4f3   : > { %3187 = vst.msk [vmem:[#allocation4 + $0xa0] sm:$0xff] %vm3166_vm15, %v3111_v28 }
 0x4f4   : > { %v3687_v54 = vpop.permute.xlu0 %3686  ;;  %3514 = vrot.lane.b32.xlu1 %v3421_v59, %s5071_s26 }
 0x4f5   : > { %3765 = vst.msk [vmem:[#allocation4 + $0x90] sm:$0xff] %vm3746_vm6, %v3687_v54 }
 0x4f6   : > { %4090 = vrot.lane.b32.xlu0 %v3421_v59, %s5074_s21  ;;  %v3880_v27 = vpop.permute.xlu1 %3879 }
 0x4f7   : > { %3958 = vst.msk [vmem:[#allocation4 + $0x90] sm:$0xff] %vm3939_vm7, %v3880_v27  ;;  %v7091_v27 = vld [vmem:[%s7264_s4] ss:$0 sm:$0xff] }
 0x4f8   : > { %v3689_v8 = vpop.permute.xlu0 %3688  ;;  %v4182_v45 = vld [vmem:[#allocation4 + $0x88] sm:$0xff]  ;;  %3130 = vrot.lane.b32.xlu1 %v3036_v31, %s5068_s29 }
 0x4f9   : > { %3766 = vst.msk [vmem:[#allocation4 + $0x98] sm:$0xff] %vm3746_vm6, %v3689_v8  ;;  %4977 = vmatmul.mubr.msk.f32.gmra.mrb[14].mxu1 %vm4213_vm9, %v4182_v45 }
 0x4fa   : > { %3706 = vrot.lane.b32.xlu0 %v3036_v31, %s5072_s7  ;;  %v3304_v3 = vpop.permute.xlu1 %3303 }
 0x4fb   : > { %3380 = vst.msk [vmem:[#allocation4 + $0xa0] sm:$0xff] %vm3359_vm4, %v3304_v3 }
 0x4fc   : > { %v3113_v61 = vpop.permute.xlu0 %3112  ;;  %3899 = vrot.lane.b32.xlu1 %v3807_v38, %s5073_s12 }
 0x4fd   : > { %3188 = vst.msk [vmem:[#allocation4 + $0xa8] sm:$0xff] %vm3166_vm15, %v3113_v61 }
 0x4fe   : > { %3708 = vrot.lane.b32.xlu0 %v3615_v42, %s5072_s7  ;;  %v4073_v4 = vpop.permute.xlu1 %4072 }
 0x4ff   : > { %4151 = vst.msk [vmem:[#allocation4 + $0x90] sm:$0xff] %vm4132_vm8, %v4073_v4 }
 0x500   : > { %v3882_v33 = vpop.permute.xlu0 %3881  ;;  %3263 = vrot.lane.b32.xlu1 %v3199_v16, %s5070_s16 }
 0x501   : > { %3959 = vst.msk [vmem:[#allocation4 + $0x98] sm:$0xff] %vm3939_vm7, %v3882_v33 }
 0x502   : > { %3132 = vrot.lane.b32.xlu0 %v3615_v42, %s5068_s29  ;;  %v3497_v56 = vpop.permute.xlu1 %3496 }
 0x503   : > { %3573 = vst.msk [vmem:[#allocation4 + $0xa0] sm:$0xff] %vm3552_vm5, %v3497_v56 }
 0x504   : > { %v3306_v1 = vpop.permute.xlu0 %3305  ;;  %3901 = vrot.lane.b32.xlu1 %v3808_v35, %s5073_s12 }
 0x505   : > { %3381 = vst.msk [vmem:[#allocation4 + $0xa8] sm:$0xff] %vm3359_vm4, %v3306_v1 }
 0x506   : > { %3323 = vrot.lane.b32.xlu0 %v3807_v38, %s5070_s16  ;;  %v3499_v11 = vpop.permute.xlu1 %3498  ;;  %v4183_v36 = vld [vmem:[#allocation4 + $0x90] sm:$0xff] }
 0x507   : > { %3574 = vst.msk [vmem:[#allocation4 + $0xa8] sm:$0xff] %vm3552_vm5, %v3499_v11  ;;  %4979 = vmatprep.mubr.msk.f32.mxu1 %vm4213_vm9, %v4183_v36 }
 0x508   : > { %v4075_v12 = vpop.permute.xlu0 %4074  ;;  %3265 = vrot.lane.b32.xlu1 %v3200_v43, %s5070_s16 }
 0x509   : > { %4152 = vst.msk [vmem:[#allocation4 + $0x98] sm:$0xff] %vm4132_vm8, %v4075_v12 }
 0x50a   : > { %4092 = vrot.lane.b32.xlu0 %v4000_v46, %s5074_s21  ;;  %v3115_v18 = vpop.permute.xlu1 %3114 }
 0x50b   : > { %3189 = vst.msk [vmem:[#allocation4 + $0xb0] sm:$0xff] %vm3166_vm15, %v3115_v18 }
 0x50c   : > { %v3691_v13 = vpop.permute.xlu0 %3690  ;;  %3456 = vrot.lane.b32.xlu1 %v3392_v9, %s5071_s26 }
 0x50d   : > { %3767 = vst.msk [vmem:[#allocation4 + $0xa0] sm:$0xff] %vm3746_vm6, %v3691_v13 }
 0x50e   : > { %3325 = vrot.lane.b32.xlu0 %v3808_v35, %s5070_s16  ;;  %v3884_v19 = vpop.permute.xlu1 %3883 }
 0x50f   : > { %3960 = vst.msk [vmem:[#allocation4 + $0xa0] sm:$0xff] %vm3939_vm7, %v3884_v19 }
 0x510   : > { %v3693_v51 = vpop.permute.xlu0 %3692  ;;  %v4184_v20 = vld [vmem:[#allocation4 + $0x98] sm:$0xff]  ;;  %4094 = vrot.lane.b32.xlu1 %v4001_v57, %s5074_s21 }
 0x511   : > { %3768 = vst.msk [vmem:[#allocation4 + $0xa8] sm:$0xff] %vm3746_vm6, %v3693_v51  ;;  %4980 = vmatmul.mubr.msk.f32.gmra.mrb[16].mxu1 %vm4213_vm9, %v4184_v20 }
 0x512   : > { %3516 = vrot.lane.b32.xlu0 %v4000_v46, %s5071_s26  ;;  %v3308_v5 = vpop.permute.xlu1 %3307 }
 0x513   : > { %3382 = vst.msk [vmem:[#allocation4 + $0xb0] sm:$0xff] %vm3359_vm4, %v3308_v5 }
 0x514   : > { %v3117_v41 = vpop.permute.xlu0 %3116  ;;  %3518 = vrot.lane.b32.xlu1 %v4001_v57, %s5071_s26 }
 0x515   : > { %3190 = vst.msk [vmem:[#allocation4 + $0xb8] sm:$0xff] %vm3166_vm15, %v3117_v41 }
 0x516   : > { %3458 = vrot.lane.b32.xlu0 %v3393_v22, %s5071_s26  ;;  %v4077_v63 = vpop.permute.xlu1 %4076 }
 0x517   : > { %4153 = vst.msk [vmem:[#allocation4 + $0xa0] sm:$0xff] %vm4132_vm8, %v4077_v63 }
 0x518   : > { %v3886_v15 = vpop.permute.xlu0 %3885  ;;  %3710 = vrot.lane.b32.xlu1 %v3616_v25, %s5072_s7 }
 0x519   : > { %3961 = vst.msk [vmem:[#allocation4 + $0xa8] sm:$0xff] %vm3939_vm7, %v3886_v15 }
 0x51a   : > { %3650 = vrot.lane.b32.xlu0 %v3586_v50, %s5072_s7  ;;  %v3501_v29 = vpop.permute.xlu1 %3500 }
 0x51b   : > { %3575 = vst.msk [vmem:[#allocation4 + $0xb0] sm:$0xff] %vm3552_vm5, %v3501_v29 }
 0x51c   : > { %v3310_v14 = vpop.permute.xlu0 %3309  ;;  %3712 = vrot.lane.b32.xlu1 %v3617_v2, %s5072_s7 }
 0x51d   : > { %3383 = vst.msk [vmem:[#allocation4 + $0xb8] sm:$0xff] %vm3359_vm4, %v3310_v14 }
 0x51e   : > { %3652 = vrot.lane.b32.xlu0 %v3587_v10, %s5072_s7  ;;  %v3503_v44 = vpop.permute.xlu1 %3502  ;;  %v4185_v58 = vld [vmem:[#allocation4 + $0xa0] sm:$0xff] }
 0x51f   : > { %3576 = vst.msk [vmem:[#allocation4 + $0xb8] sm:$0xff] %vm3552_vm5, %v3503_v44  ;;  %4982 = vmatprep.mubr.msk.f32.mxu1 %vm4213_vm9, %v4185_v58 }
 0x520   : > { %v4079_v49 = vpop.permute.xlu0 %4078  ;;  %3903 = vrot.lane.b32.xlu1 %v3809_v47, %s5073_s12 }
 0x521   : > { %4154 = vst.msk [vmem:[#allocation4 + $0xa8] sm:$0xff] %vm4132_vm8, %v4079_v49 }
 0x522   : > { %3843 = vrot.lane.b32.xlu0 %v3779_v0, %s5073_s12  ;;  %v3119_v37 = vpop.permute.xlu1 %3118 }
 0x523   : > { %3191 = vst.msk [vmem:[#allocation4 + $0xc0] sm:$0xff] %vm3166_vm15, %v3119_v37 }
 0x524   : > { %v3695_v52 = vpop.permute.xlu0 %3694  ;;  %3905 = vrot.lane.b32.xlu1 %v3810_v34, %s5073_s12 }
 0x525   : > { %3769 = vst.msk [vmem:[#allocation4 + $0xb0] sm:$0xff] %vm3746_vm6, %v3695_v52 }
 0x526   : > { %3845 = vrot.lane.b32.xlu0 %v3780_v21, %s5073_s12  ;;  %v3888_v40 = vpop.permute.xlu1 %3887 }
 0x527   : > { %3962 = vst.msk [vmem:[#allocation4 + $0xb0] sm:$0xff] %vm3939_vm7, %v3888_v40 }
 0x528   : > { %v3697_v23 = vpop.permute.xlu0 %3696  ;;  %v4186_v55 = vld [vmem:[#allocation4 + $0xa8] sm:$0xff]  ;;  %4096 = vrot.lane.b32.xlu1 %v4002_v60, %s5074_s21 }
 0x529   : > { %3770 = vst.msk [vmem:[#allocation4 + $0xb8] sm:$0xff] %vm3746_vm6, %v3697_v23  ;;  %4983 = vmatmul.mubr.msk.f32.gmra.mrb[18].mxu1 %vm4213_vm9, %v4186_v55 }
 0x52a   : > { %4036 = vrot.lane.b32.xlu0 %v3972_v30, %s5074_s21  ;;  %v3312_v32 = vpop.permute.xlu1 %3311 }
 0x52b   : > { %3384 = vst.msk [vmem:[#allocation4 + $0xc0] sm:$0xff] %vm3359_vm4, %v3312_v32 }
 0x52c   : > { %v3121_v26 = vpop.permute.xlu0 %3120  ;;  %4098 = vrot.lane.b32.xlu1 %v4003_v48, %s5074_s21 }
 0x52d   : > { %3192 = vst.msk [vmem:[#allocation4 + $0xc8] sm:$0xff] %vm3166_vm15, %v3121_v26 }
 0x52e   : > { %4038 = vrot.lane.b32.xlu0 %v3973_v17, %s5074_s21  ;;  %v4081_v24 = vpop.permute.xlu1 %4080 }
 0x52f   : > { %4155 = vst.msk [vmem:[#allocation4 + $0xb0] sm:$0xff] %vm4132_vm8, %v4081_v24 }
 0x530   : > { %v3890_v7 = vpop.permute.xlu0 %3889 }
 0x531   : > { %3963 = vst.msk [vmem:[#allocation4 + $0xb8] sm:$0xff] %vm3939_vm7, %v3890_v7 }
 0x532   : > { %v3505_v62 = vpop.permute.xlu1 %3504 }
 0x533   : > { %3577 = vst.msk [vmem:[#allocation4 + $0xc0] sm:$0xff] %vm3552_vm5, %v3505_v62 }
 0x534   : > { %v3314_v6 = vpop.permute.xlu0 %3313 }
 0x535   : > { %3385 = vst.msk [vmem:[#allocation4 + $0xc8] sm:$0xff] %vm3359_vm4, %v3314_v6 }
 0x536   : > { %v3507_v53 = vpop.permute.xlu1 %3506  ;;  %v4187_v39 = vld [vmem:[#allocation4 + $0xb0] sm:$0xff] }
 0x537   : > { %3578 = vst.msk [vmem:[#allocation4 + $0xc8] sm:$0xff] %vm3552_vm5, %v3507_v53  ;;  %4985 = vmatprep.mubr.msk.f32.mxu1 %vm4213_vm9, %v4187_v39 }
 0x538   : > { %v4083_v28 = vpop.permute.xlu0 %4082 }
 0x539   : > { %4156 = vst.msk [vmem:[#allocation4 + $0xb8] sm:$0xff] %vm4132_vm8, %v4083_v28 }
 0x53a   : > { %v3123_v54 = vpop.permute.xlu1 %3122 }
 0x53b   : > { %3193 = vst.msk [vmem:[#allocation4 + $0xd0] sm:$0xff] %vm3166_vm15, %v3123_v54 }
 0x53c   : > { %v3699_v59 = vpop.permute.xlu0 %3698 }
 0x53d   : > { %3771 = vst.msk [vmem:[#allocation4 + $0xc0] sm:$0xff] %vm3746_vm6, %v3699_v59 }
 0x53e   : > { %v3892_v8 = vpop.permute.xlu1 %3891 }
 0x53f   : > { %3964 = vst.msk [vmem:[#allocation4 + $0xc0] sm:$0xff] %vm3939_vm7, %v3892_v8 }
 0x540   : > { %v4957_v31 = vpop.f32.mrb[0].mxu1  ;;  %v3701_v45 = vpop.permute.xlu0 %3700  ;;  %v4188_v3 = vld [vmem:[#allocation4 + $0xb8] sm:$0xff] }
 0x541   : > { %v4392_v61 = vadd.f32 %v4957_v31, %v7091_v27  ;;  %3772 = vst.msk [vmem:[#allocation4 + $0xc8] sm:$0xff] %vm3746_vm6, %v3701_v45  ;;  %v4386_v38 = vpop.f32.mrb[1].mxu1  ;;  %4986 = vmatmul.mubr.msk.f32.gmra.mrb[20].mxu1 %vm4213_vm9, %v4188_v3 }
 0x542   : > { %v4387_v42 = vadd.f32 %v7091_v27, %v4386_v38  ;;  %v3316_v33 = vpop.permute.xlu1 %3315 }
 0x543   : > { %vm4538_vm10 = vcmp.ge.f32.partialorder %v4392_v61, 0.0  ;;  %v4570_v4 = vmul.f32 0.01, %v4392_v61  ;;  %3386 = vst.msk [vmem:[#allocation4 + $0xd0] sm:$0xff] %vm3359_vm4, %v3316_v33 }
 0x544   : > { %vm4537_vm11 = vcmp.ge.f32.partialorder %v4387_v42, 0.0  ;;  %v4569_v16 = vmul.f32 0.01, %v4387_v42  ;;  %v3125_v56 = vpop.permute.xlu0 %3124 }
 0x545   : > { %v4602_v1 = vsel %vm4538_vm10, %v4392_v61, %v4570_v4  ;;  %3194 = vst.msk [vmem:[#allocation4 + $0xd8] sm:$0xff] %vm3166_vm15, %v3125_v56 }
 0x546   : > { %4634 = vst.msk [vmem:[%s7103_s28 + $0x18] sm:$0xff] %vm2445_vm13, %v4602_v1  ;;  %v4601_v35 = vsel %vm4537_vm11, %v4387_v42, %v4569_v16  ;;  %v4085_v11 = vpop.permute.xlu1 %4084 }
 0x547   : > { %4633 = vst.msk [vmem:[%s7103_s28 + $0x10] sm:$0xff] %vm2445_vm13, %v4601_v35 }
 0x548   : > { %4157 = vst.msk [vmem:[#allocation4 + $0xc0] sm:$0xff] %vm4132_vm8, %v4085_v11  ;;  %v3894_v36 = vpop.permute.xlu0 %3893 }
 0x549   : > { %3965 = vst.msk [vmem:[#allocation4 + $0xc8] sm:$0xff] %vm3939_vm7, %v3894_v36 }
 0x54a   : > { %v3509_v12 = vpop.permute.xlu1 %3508 }
 0x54b   : > { %3579 = vst.msk [vmem:[#allocation4 + $0xd0] sm:$0xff] %vm3552_vm5, %v3509_v12 }
 0x54c   : > { %v3318_v43 = vpop.permute.xlu0 %3317 }
 0x54d   : > { %3387 = vst.msk [vmem:[#allocation4 + $0xd8] sm:$0xff] %vm3359_vm4, %v3318_v43 }
 0x54e   : > { %v3511_v46 = vpop.permute.xlu1 %3510 }
 0x54f   : > { %v4189_v18 = vld [vmem:[#allocation4 + $0xc0] sm:$0xff]  ;;  %3580 = vst.msk [vmem:[#allocation4 + $0xd8] sm:$0xff] %vm3552_vm5, %v3511_v46 }
 0x550   : > { %v4087_v13 = vpop.permute.xlu0 %4086  ;;  %4988 = vmatprep.mubr.msk.f32.mxu1 %vm4213_vm9, %v4189_v18 }
 0x551   : > { %4158 = vst.msk [vmem:[#allocation4 + $0xc8] sm:$0xff] %vm4132_vm8, %v4087_v13 }
 0x552   : > { %v3127_v9 = vpop.permute.xlu1 %3126 }
 0x553   : > { %3195 = vst.msk [vmem:[#allocation4 + $0xe0] sm:$0xff] %vm3166_vm15, %v3127_v9 }
 0x554   : > { %v3703_v19 = vpop.permute.xlu0 %3702  ;;  %v4960_v51 = vpop.f32.mrb[2].mxu1 }
 0x555   : > { %3773 = vst.msk [vmem:[#allocation4 + $0xd0] sm:$0xff] %vm3746_vm6, %v3703_v19  ;;  %v4402_v57 = vadd.f32 %v4960_v51, %v7091_v27  ;;  %v4396_v20 = vpop.f32.mrb[3].mxu1 }
 0x556   : > { %v4397_v5 = vadd.f32 %v7091_v27, %v4396_v20  ;;  %v3896_v22 = vpop.permute.xlu1 %3895 }
 0x557   : > { %vm4540_vm12 = vcmp.ge.f32.partialorder %v4402_v57, 0.0  ;;  %v4572_v41 = vmul.f32 0.01, %v4402_v57  ;;  %3966 = vst.msk [vmem:[#allocation4 + $0xd0] sm:$0xff] %vm3939_vm7, %v3896_v22 }
 0x558   : > { %vm4539_vm14 = vcmp.ge.f32.partialorder %v4397_v5, 0.0  ;;  %v4571_v63 = vmul.f32 0.01, %v4397_v5  ;;  %v3705_v15 = vpop.permute.xlu0 %3704  ;;  %v4190_v25 = vld [vmem:[#allocation4 + $0xc8] sm:$0xff] }
 0x559   : > { %v4604_v50 = vsel %vm4540_vm12, %v4402_v57, %v4572_v41  ;;  %3774 = vst.msk [vmem:[#allocation4 + $0xd8] sm:$0xff] %vm3746_vm6, %v3705_v15  ;;  %4989 = vmatmul.mubr.msk.f32.gmra.mrb[22].mxu1 %vm4213_vm9, %v4190_v25 }
 0x55a   : > { %4636 = vst.msk [vmem:[%s7103_s28 + $0x28] sm:$0xff] %vm2445_vm13, %v4604_v50  ;;  %v4603_v29 = vsel %vm4539_vm14, %v4397_v5, %v4571_v63  ;;  %v3320_v14 = vpop.permute.xlu1 %3319 }
 0x55b   : > { %4635 = vst.msk [vmem:[%s7103_s28 + $0x20] sm:$0xff] %vm2445_vm13, %v4603_v29 }
 0x55c   : > { %3388 = vst.msk [vmem:[#allocation4 + $0xe0] sm:$0xff] %vm3359_vm4, %v3320_v14  ;;  %v3129_v2 = vpop.permute.xlu0 %3128 }
 0x55d   : > { %3196 = vst.msk [vmem:[#allocation4 + $0xe8] sm:$0xff] %vm3166_vm15, %v3129_v2 }
 0x55e   : > { %v4089_v10 = vpop.permute.xlu1 %4088 }
 0x55f   : > { %4159 = vst.msk [vmem:[#allocation4 + $0xd0] sm:$0xff] %vm4132_vm8, %v4089_v10 }
 0x560   : > { %v3898_v44 = vpop.permute.xlu0 %3897 }
 0x561   : > { %3967 = vst.msk [vmem:[#allocation4 + $0xd8] sm:$0xff] %vm3939_vm7, %v3898_v44 }
 0x562   : > { %v3513_v58 = vpop.permute.xlu1 %3512 }
 0x563   : > { %3581 = vst.msk [vmem:[#allocation4 + $0xe0] sm:$0xff] %vm3552_vm5, %v3513_v58 }
 0x564   : > { %v3322_v49 = vpop.permute.xlu0 %3321 }
 0x565   : > { %3389 = vst.msk [vmem:[#allocation4 + $0xe8] sm:$0xff] %vm3359_vm4, %v3322_v49 }
 0x566   : > { %v3515_v47 = vpop.permute.xlu1 %3514  ;;  %v4191_v0 = vld [vmem:[#allocation4 + $0xd0] sm:$0xff] }
 0x567   : > { %3582 = vst.msk [vmem:[#allocation4 + $0xe8] sm:$0xff] %vm3552_vm5, %v3515_v47  ;;  %4991 = vmatprep.mubr.msk.f32.mxu1 %vm4213_vm9, %v4191_v0 }
 0x568   : > { %v4091_v37 = vpop.permute.xlu0 %4090  ;;  %v4963_v52 = vpop.f32.mrb[4].mxu1 }
 0x569   : > { %4160 = vst.msk [vmem:[#allocation4 + $0xd8] sm:$0xff] %vm4132_vm8, %v4091_v37  ;;  %v4412_v34 = vadd.f32 %v4963_v52, %v7091_v27  ;;  %v4406_v21 = vpop.f32.mrb[5].mxu1 }
 0x56a   : > { %v4407_v40 = vadd.f32 %v7091_v27, %v4406_v21  ;;  %v3131_v60 = vpop.permute.xlu1 %3130 }
 0x56b   : > { %vm4542_vm0 = vcmp.ge.f32.partialorder %v4412_v34, 0.0  ;;  %v4574_v23 = vmul.f32 0.01, %v4412_v34  ;;  %3197 = vst.msk [vmem:[#allocation4 + $0xf0] sm:$0xff] %vm3166_vm15, %v3131_v60 }
 0x56c   : > { %vm4541_vm1 = vcmp.ge.f32.partialorder %v4407_v40, 0.0  ;;  %v4573_v55 = vmul.f32 0.01, %v4407_v40  ;;  %v3707_v30 = vpop.permute.xlu0 %3706 }
 0x56d   : > { %v4606_v32 = vsel %vm4542_vm0, %v4412_v34, %v4574_v23  ;;  %3775 = vst.msk [vmem:[#allocation4 + $0xe0] sm:$0xff] %vm3746_vm6, %v3707_v30 }
 0x56e   : > { %4638 = vst.msk [vmem:[%s7103_s28 + $0x38] sm:$0xff] %vm2445_vm13, %v4606_v32  ;;  %v4605_v26 = vsel %vm4541_vm1, %v4407_v40, %v4573_v55  ;;  %v3900_v48 = vpop.permute.xlu1 %3899 }
 0x56f   : > { %4637 = vst.msk [vmem:[%s7103_s28 + $0x30] sm:$0xff] %vm2445_vm13, %v4605_v26 }
 0x570   : > { %3968 = vst.msk [vmem:[#allocation4 + $0xe0] sm:$0xff] %vm3939_vm7, %v3900_v48  ;;  %v3709_v17 = vpop.permute.xlu0 %3708  ;;  %v4192_v24 = vld [vmem:[#allocation4 + $0xd8] sm:$0xff] }
 0x571   : > { %3776 = vst.msk [vmem:[#allocation4 + $0xe8] sm:$0xff] %vm3746_vm6, %v3709_v17  ;;  %4992 = vmatmul.mubr.msk.f32.gmra.mrb[24].mxu1 %vm4213_vm9, %v4192_v24 }
 0x572   : > { %v3264_v7 = vpop.permute.xlu1 %3263 }
 0x573   : > { %3360 = vst.msk [vmem:[#allocation4] sm:$0xff] %vm3359_vm4, %v3264_v7 }
 0x574   : > { %v3133_v62 = vpop.permute.xlu0 %3132 }
 0x575   : > { %3198 = vst.msk [vmem:[#allocation4 + $0xf8] sm:$0xff] %vm3166_vm15, %v3133_v62 }
 0x576   : > { %v3902_v6 = vpop.permute.xlu1 %3901 }
 0x577   : > { %3969 = vst.msk [vmem:[#allocation4 + $0xe8] sm:$0xff] %vm3939_vm7, %v3902_v6 }
 0x578   : > { %v3324_v53 = vpop.permute.xlu0 %3323 }
 0x579   : > { %3390 = vst.msk [vmem:[#allocation4 + $0xf0] sm:$0xff] %vm3359_vm4, %v3324_v53 }
 0x57a   : > { %v3266_v39 = vpop.permute.xlu1 %3265 }
 0x57b   : > { %3361 = vst.msk [vmem:[#allocation4 + $0x8] sm:$0xff] %vm3359_vm4, %v3266_v39 }
 0x57c   : > { %v4093_v28 = vpop.permute.xlu0 %4092  ;;  %v4966_v54 = vpop.f32.mrb[6].mxu1 }
 0x57d   : > { %4161 = vst.msk [vmem:[#allocation4 + $0xe0] sm:$0xff] %vm4132_vm8, %v4093_v28  ;;  %v4422_v59 = vadd.f32 %v4966_v54, %v7091_v27  ;;  %v4416_v8 = vpop.f32.mrb[7].mxu1 }
 0x57e   : > { %v4417_v31 = vadd.f32 %v7091_v27, %v4416_v8  ;;  %v3457_v3 = vpop.permute.xlu1 %3456 }
 0x57f   : > { %vm4544_vm2 = vcmp.ge.f32.partialorder %v4422_v59, 0.0  ;;  %v4576_v45 = vmul.f32 0.01, %v4422_v59  ;;  %3553 = vst.msk [vmem:[#allocation4] sm:$0xff] %vm3552_vm5, %v3457_v3 }
 0x580   : > { %vm4543_vm3 = vcmp.ge.f32.partialorder %v4417_v31, 0.0  ;;  %v4575_v61 = vmul.f32 0.01, %v4417_v31  ;;  %v3326_v38 = vpop.permute.xlu0 %3325 }
 0x581   : > { %v4608_v42 = vsel %vm4544_vm2, %v4422_v59, %v4576_v45  ;;  %3391 = vst.msk [vmem:[#allocation4 + $0xf8] sm:$0xff] %vm3359_vm4, %v3326_v38 }
 0x582   : > { %4640 = vst.msk [vmem:[%s7103_s28 + $0x48] sm:$0xff] %vm2445_vm13, %v4608_v42  ;;  %v4607_v4 = vsel %vm4543_vm3, %v4417_v31, %v4575_v61  ;;  %v4095_v33 = vpop.permute.xlu1 %4094 }
 0x583   : > { %4639 = vst.msk [vmem:[%s7103_s28 + $0x40] sm:$0xff] %vm2445_vm13, %v4607_v4 }
 0x584   : > { %4162 = vst.msk [vmem:[#allocation4 + $0xe8] sm:$0xff] %vm4132_vm8, %v4095_v33  ;;  %v3517_v16 = vpop.permute.xlu0 %3516  ;;  %v4193_v56 = vld [vmem:[#allocation4 + $0xe0] sm:$0xff] }
 0x585   : > { %3583 = vst.msk [vmem:[#allocation4 + $0xf0] sm:$0xff] %vm3552_vm5, %v3517_v16  ;;  %4994 = vmatprep.mubr.msk.f32.mxu1 %vm4213_vm9, %v4193_v56 }
 0x586   : > { %v3519_v1 = vpop.permute.xlu1 %3518 }
 0x587   : > { %3584 = vst.msk [vmem:[#allocation4 + $0xf8] sm:$0xff] %vm3552_vm5, %v3519_v1 }
 0x588   : > { %v3459_v35 = vpop.permute.xlu0 %3458 }
 0x589   : > { %3554 = vst.msk [vmem:[#allocation4 + $0x8] sm:$0xff] %vm3552_vm5, %v3459_v35 }
 0x58a   : > { %v3711_v11 = vpop.permute.xlu1 %3710 }
 0x58b   : > { %v4194_v36 = vld [vmem:[#allocation4 + $0xe8] sm:$0xff]  ;;  %3777 = vst.msk [vmem:[#allocation4 + $0xf0] sm:$0xff] %vm3746_vm6, %v3711_v11 }
 0x58c   : > { %v3651_v12 = vpop.permute.xlu0 %3650  ;;  %4995 = vmatmul.mubr.msk.f32.gmra.mrb[26].mxu1 %vm4213_vm9, %v4194_v36 }
 0x58d   : > { %3747 = vst.msk [vmem:[#allocation4] sm:$0xff] %vm3746_vm6, %v3651_v12 }
 0x58e   : > { %v3713_v43 = vpop.permute.xlu1 %3712 }
 0x58f   : > { %3778 = vst.msk [vmem:[#allocation4 + $0xf8] sm:$0xff] %vm3746_vm6, %v3713_v43 }
 0x590   : > { %v3653_v46 = vpop.permute.xlu0 %3652  ;;  %v4969_v18 = vpop.f32.mrb[8].mxu1 }
 0x591   : > { %3748 = vst.msk [vmem:[#allocation4 + $0x8] sm:$0xff] %vm3746_vm6, %v3653_v46  ;;  %v4432_v13 = vadd.f32 %v4969_v18, %v7091_v27  ;;  %v4426_v9 = vpop.f32.mrb[9].mxu1 }
 0x592   : > { %v4427_v19 = vadd.f32 %v7091_v27, %v4426_v9  ;;  %v3904_v57 = vpop.permute.xlu1 %3903 }
 0x593   : > { %vm4546_vm15 = vcmp.ge.f32.partialorder %v4432_v13, 0.0  ;;  %v4578_v51 = vmul.f32 0.01, %v4432_v13  ;;  %3970 = vst.msk [vmem:[#allocation4 + $0xf0] sm:$0xff] %vm3939_vm7, %v3904_v57 }
 0x594   : > { %vm4545_vm4 = vcmp.ge.f32.partialorder %v4427_v19, 0.0  ;;  %v4577_v20 = vmul.f32 0.01, %v4427_v19  ;;  %v3844_v5 = vpop.permute.xlu0 %3843 }
 0x595   : > { %v4610_v41 = vsel %vm4546_vm15, %v4432_v13, %v4578_v51  ;;  %3940 = vst.msk [vmem:[#allocation4] sm:$0xff] %vm3939_vm7, %v3844_v5 }
 0x596   : > { %4642 = vst.msk [vmem:[%s7103_s28 + $0x58] sm:$0xff] %vm2445_vm13, %v4610_v41  ;;  %v4609_v22 = vsel %vm4545_vm4, %v4427_v19, %v4577_v20  ;;  %v3906_v63 = vpop.permute.xlu1 %3905 }
 0x597   : > { %4641 = vst.msk [vmem:[%s7103_s28 + $0x50] sm:$0xff] %vm2445_vm13, %v4609_v22 }
 0x598   : > { %3971 = vst.msk [vmem:[#allocation4 + $0xf8] sm:$0xff] %vm3939_vm7, %v3906_v63  ;;  %v3846_v15 = vpop.permute.xlu0 %3845 }
 0x599   : > { %3941 = vst.msk [vmem:[#allocation4 + $0x8] sm:$0xff] %vm3939_vm7, %v3846_v15 }
 0x59a   : > { %v4097_v25 = vpop.permute.xlu1 %4096 }
 0x59b   : > { %4163 = vst.msk [vmem:[#allocation4 + $0xf0] sm:$0xff] %vm4132_vm8, %v4097_v25 }
 0x59c   : > { %v4037_v50 = vpop.permute.xlu0 %4036 }
 0x59d   : > { %4133 = vst.msk [vmem:[#allocation4] sm:$0xff] %vm4132_vm8, %v4037_v50 }
 0x59e   : > { %v4099_v29 = vpop.permute.xlu1 %4098 }
 0x59f   : > { %4164 = vst.msk [vmem:[#allocation4 + $0xf8] sm:$0xff] %vm4132_vm8, %v4099_v29 }
 0x5a0   : > { %v4039_v14 = vpop.permute.xlu0 %4038 }
 0x5a1   : > { %4134 = vst.msk [vmem:[#allocation4 + $0x8] sm:$0xff] %vm4132_vm8, %v4039_v14 }
 0x5a2   : > { %v4195_v2 = vld [vmem:[#allocation4 + $0xf0] sm:$0xff] }
 0x5a3   : > { %4997 = vmatprep.mubr.msk.f32.mxu1 %vm4213_vm9, %v4195_v2 }
 0x5a4   : > { %v4972_v10 = vpop.f32.mrb[10].mxu1  ;;  %v4165_v44 = vld [vmem:[#allocation4] sm:$0xff] }
 0x5a5   : > { %v4442_v58 = vadd.f32 %v4972_v10, %v7091_v27  ;;  %4952 = vmatprep.mubr.msk.f32.mxu0 %vm4213_vm9, %v4165_v44  ;;  %v4436_v49 = vpop.f32.mrb[11].mxu1 }
 0x5a6   : > { %v4437_v47 = vadd.f32 %v7091_v27, %v4436_v49  ;;  %v4196_v37 = vld [vmem:[#allocation4 + $0xf8] sm:$0xff] }
 0x5a7   : > { %vm4548_vm5 = vcmp.ge.f32.partialorder %v4442_v58, 0.0  ;;  %v4580_v0 = vmul.f32 0.01, %v4442_v58  ;;  %4998 = vmatmul.mubr.msk.f32.gmra.mrb[28].mxu1 %vm4213_vm9, %v4196_v37 }
 0x5a8   : > { %vm4547_vm6 = vcmp.ge.f32.partialorder %v4437_v47, 0.0  ;;  %v4579_v52 = vmul.f32 0.01, %v4437_v47  ;;  %v4166_v34 = vld [vmem:[#allocation4 + $0x8] sm:$0xff] }
 0x5a9   : > { %v4612_v21 = vsel %vm4548_vm5, %v4442_v58, %v4580_v0  ;;  %4953 = vmatmul.mubr.msk.f32.vlgmr.msra.gmra.mrb[32].mxu0 %vm4213_vm9, %v4166_v34 }
 0x5aa   : > { %4644 = vst.msk [vmem:[%s7103_s28 + $0x68] sm:$0xff] %vm2445_vm13, %v4612_v21  ;;  %v4611_v40 = vsel %vm4547_vm6, %v4437_v47, %v4579_v52 }
 0x5ab   : > { %4643 = vst.msk [vmem:[%s7103_s28 + $0x60] sm:$0xff] %vm2445_vm13, %v4611_v40 }
 0x5b8   : > { %v4975_v23 = vpop.f32.mrb[12].mxu1 }
 0x5b9   : > { %v4452_v60 = vadd.f32 %v4975_v23, %v7091_v27  ;;  %v4446_v55 = vpop.f32.mrb[13].mxu1 }
 0x5ba   : > { %v4447_v30 = vadd.f32 %v7091_v27, %v4446_v55 }
 0x5bb   : > { %vm4550_vm7 = vcmp.ge.f32.partialorder %v4452_v60, 0.0  ;;  %v4582_v32 = vmul.f32 0.01, %v4452_v60 }
 0x5bc   : > { %vm4549_vm8 = vcmp.ge.f32.partialorder %v4447_v30, 0.0  ;;  %v4581_v26 = vmul.f32 0.01, %v4447_v30 }
 0x5bd   : > { %v4614_v48 = vsel %vm4550_vm7, %v4452_v60, %v4582_v32 }
 0x5be   : > { %4646 = vst.msk [vmem:[%s7103_s28 + $0x78] sm:$0xff] %vm2445_vm13, %v4614_v48  ;;  %v4613_v17 = vsel %vm4549_vm8, %v4447_v30, %v4581_v26 }
 0x5bf   : > { %4645 = vst.msk [vmem:[%s7103_s28 + $0x70] sm:$0xff] %vm2445_vm13, %v4613_v17 }
 0x5cc   : > { %v4978_v24 = vpop.f32.mrb[14].mxu1 }
 0x5cd   : > { %v4462_v7 = vadd.f32 %v4978_v24, %v7091_v27  ;;  %v4456_v62 = vpop.f32.mrb[15].mxu1 }
 0x5ce   : > { %v4457_v6 = vadd.f32 %v7091_v27, %v4456_v62 }
 0x5cf   : > { %vm4552_vm9 = vcmp.ge.f32.partialorder %v4462_v7, 0.0  ;;  %v4584_v53 = vmul.f32 0.01, %v4462_v7 }
 0x5d0   : > { %vm4551_vm10 = vcmp.ge.f32.partialorder %v4457_v6, 0.0  ;;  %v4583_v39 = vmul.f32 0.01, %v4457_v6 }
 0x5d1   : > { %v4616_v28 = vsel %vm4552_vm9, %v4462_v7, %v4584_v53 }
 0x5d2   : > { %4648 = vst.msk [vmem:[%s7103_s28 + $0x88] sm:$0xff] %vm2445_vm13, %v4616_v28  ;;  %v4615_v54 = vsel %vm4551_vm10, %v4457_v6, %v4583_v39 }
 0x5d3   : > { %4647 = vst.msk [vmem:[%s7103_s28 + $0x80] sm:$0xff] %vm2445_vm13, %v4615_v54 }
 0x5e4   : > { %v4981_v59 = vpop.f32.mrb[16].mxu1 }
 0x5e5   : > { %v4472_v8 = vadd.f32 %v4981_v59, %v7091_v27  ;;  %v4466_v31 = vpop.f32.mrb[17].mxu1 }
 0x5e6   : > { %v4467_v45 = vadd.f32 %v7091_v27, %v4466_v31 }
 0x5e7   : > { %vm4554_vm11 = vcmp.ge.f32.partialorder %v4472_v8, 0.0  ;;  %v4586_v3 = vmul.f32 0.01, %v4472_v8 }
 0x5e8   : > { %vm4553_vm12 = vcmp.ge.f32.partialorder %v4467_v45, 0.0  ;;  %v4585_v61 = vmul.f32 0.01, %v4467_v45 }
 0x5e9   : > { %v4618_v38 = vsel %vm4554_vm11, %v4472_v8, %v4586_v3 }
 0x5ea   : > { %4650 = vst.msk [vmem:[%s7103_s28 + $0x98] sm:$0xff] %vm2445_vm13, %v4618_v38  ;;  %v4617_v42 = vsel %vm4553_vm12, %v4467_v45, %v4585_v61 }
 0x5eb   : > { %4649 = vst.msk [vmem:[%s7103_s28 + $0x90] sm:$0xff] %vm2445_vm13, %v4617_v42 }
 0x5fc   : > { %v4984_v4 = vpop.f32.mrb[18].mxu1 }
 0x5fd   : > { %v4482_v33 = vadd.f32 %v4984_v4, %v7091_v27  ;;  %v4476_v16 = vpop.f32.mrb[19].mxu1 }
 0x5fe   : > { %v4477_v56 = vadd.f32 %v7091_v27, %v4476_v16 }
 0x5ff   : > { %vm4556_vm14 = vcmp.ge.f32.partialorder %v4482_v33, 0.0  ;;  %v4588_v1 = vmul.f32 0.01, %v4482_v33 }
 0x600   : > { %vm4555_vm0 = vcmp.ge.f32.partialorder %v4477_v56, 0.0  ;;  %v4587_v35 = vmul.f32 0.01, %v4477_v56 }
 0x601   : > { %v4620_v11 = vsel %vm4556_vm14, %v4482_v33, %v4588_v1 }
 0x602   : > { %4652 = vst.msk [vmem:[%s7103_s28 + $0xa8] sm:$0xff] %vm2445_vm13, %v4620_v11  ;;  %v4619_v36 = vsel %vm4555_vm0, %v4477_v56, %v4587_v35 }
 0x603   : > { %4651 = vst.msk [vmem:[%s7103_s28 + $0xa0] sm:$0xff] %vm2445_vm13, %v4619_v36 }
 0x614   : > { %v4987_v12 = vpop.f32.mrb[20].mxu1 }
 0x615   : > { %v4492_v43 = vadd.f32 %v4987_v12, %v7091_v27  ;;  %v4486_v46 = vpop.f32.mrb[21].mxu1 }
 0x616   : > { %v4487_v18 = vadd.f32 %v7091_v27, %v4486_v46 }
 0x617   : > { %vm4558_vm1 = vcmp.ge.f32.partialorder %v4492_v43, 0.0  ;;  %v4590_v13 = vmul.f32 0.01, %v4492_v43 }
 0x618   : > { %vm4557_vm2 = vcmp.ge.f32.partialorder %v4487_v18, 0.0  ;;  %v4589_v9 = vmul.f32 0.01, %v4487_v18 }
 0x619   : > { %v4622_v19 = vsel %vm4558_vm1, %v4492_v43, %v4590_v13 }
 0x61a   : > { %4654 = vst.msk [vmem:[%s7103_s28 + $0xb8] sm:$0xff] %vm2445_vm13, %v4622_v19  ;;  %v4621_v51 = vsel %vm4557_vm2, %v4487_v18, %v4589_v9 }
 0x61b   : > { %4653 = vst.msk [vmem:[%s7103_s28 + $0xb0] sm:$0xff] %vm2445_vm13, %v4621_v51 }
 0x62c   : > { %v4990_v57 = vpop.f32.mrb[22].mxu1 }
 0x62d   : > { %v4502_v20 = vadd.f32 %v4990_v57, %v7091_v27  ;;  %v4496_v5 = vpop.f32.mrb[23].mxu1 }
 0x62e   : > { %v4497_v41 = vadd.f32 %v7091_v27, %v4496_v5 }
 0x62f   : > { %vm4560_vm3 = vcmp.ge.f32.partialorder %v4502_v20, 0.0  ;;  %v4592_v22 = vmul.f32 0.01, %v4502_v20 }
 0x630   : > { %vm4559_vm15 = vcmp.ge.f32.partialorder %v4497_v41, 0.0  ;;  %v4591_v63 = vmul.f32 0.01, %v4497_v41 }
 0x631   : > { %v4624_v15 = vsel %vm4560_vm3, %v4502_v20, %v4592_v22 }
 0x632   : > { %4656 = vst.msk [vmem:[%s7103_s28 + $0xc8] sm:$0xff] %vm2445_vm13, %v4624_v15  ;;  %v4623_v25 = vsel %vm4559_vm15, %v4497_v41, %v4591_v63 }
 0x633   : > { %4655 = vst.msk [vmem:[%s7103_s28 + $0xc0] sm:$0xff] %vm2445_vm13, %v4623_v25 }
 0x644   : > { %v4993_v50 = vpop.f32.mrb[24].mxu1 }
 0x645   : > { %v4512_v29 = vadd.f32 %v4993_v50, %v7091_v27  ;;  %v4506_v14 = vpop.f32.mrb[25].mxu1 }
 0x646   : > { %v4507_v2 = vadd.f32 %v7091_v27, %v4506_v14 }
 0x647   : > { %vm4562_vm4 = vcmp.ge.f32.partialorder %v4512_v29, 0.0  ;;  %v4594_v10 = vmul.f32 0.01, %v4512_v29 }
 0x648   : > { %vm4561_vm5 = vcmp.ge.f32.partialorder %v4507_v2, 0.0  ;;  %v4593_v44 = vmul.f32 0.01, %v4507_v2 }
 0x649   : > { %v4626_v58 = vsel %vm4562_vm4, %v4512_v29, %v4594_v10 }
 0x64a   : > { %4658 = vst.msk [vmem:[%s7103_s28 + $0xd8] sm:$0xff] %vm2445_vm13, %v4626_v58  ;;  %v4625_v49 = vsel %vm4561_vm5, %v4507_v2, %v4593_v44 }
 0x64b   : > { %4657 = vst.msk [vmem:[%s7103_s28 + $0xd0] sm:$0xff] %vm2445_vm13, %v4625_v49 }
 0x65f   : > { %v4996_v47 = vpop.f32.mrb[26].mxu1 }
 0x660   : > { %v4522_v0 = vadd.f32 %v4996_v47, %v7091_v27  ;;  %v4516_v37 = vpop.f32.mrb[27].mxu1 }
 0x661   : > { %v4517_v52 = vadd.f32 %v7091_v27, %v4516_v37 }
 0x662   : > { %vm4564_vm6 = vcmp.ge.f32.partialorder %v4522_v0, 0.0  ;;  %v4596_v34 = vmul.f32 0.01, %v4522_v0 }
 0x663   : > { %vm4563_vm7 = vcmp.ge.f32.partialorder %v4517_v52, 0.0  ;;  %v4595_v21 = vmul.f32 0.01, %v4517_v52 }
 0x664   : > { %v4628_v40 = vsel %vm4564_vm6, %v4522_v0, %v4596_v34 }
 0x665   : > { %4660 = vst.msk [vmem:[%s7103_s28 + $0xe8] sm:$0xff] %vm2445_vm13, %v4628_v40  ;;  %v4627_v23 = vsel %vm4563_vm7, %v4517_v52, %v4595_v21 }
 0x666   : > { %4659 = vst.msk [vmem:[%s7103_s28 + $0xe0] sm:$0xff] %vm2445_vm13, %v4627_v23 }
 0x67a   : > { %v4999_v60 = vpop.f32.mrb[28].mxu1 }
 0x67b   : > { %v4532_v55 = vadd.f32 %v4999_v60, %v7091_v27  ;;  %v4526_v32 = vpop.f32.mrb[29].mxu1 }
 0x67c   : > { %v4954_v30 = vpop.f32.mrb[32].mxu0  ;;  %v4527_v48 = vadd.f32 %v7091_v27, %v4526_v32 }
 0x67d   : > { %v4382_v26 = vadd.f32 %v4954_v30, %v7091_v27  ;;  %v4376_v17 = vpop.f32.mrb[33].mxu0  ;;  %vm4566_vm8 = vcmp.ge.f32.partialorder %v4532_v55, 0.0  ;;  %v4598_v24 = vmul.f32 0.01, %v4532_v55 }
 0x67e   : > { %v4377_v7 = vadd.f32 %v7091_v27, %v4376_v17  ;;  %vm4565_vm10 = vcmp.ge.f32.partialorder %v4527_v48, 0.0  ;;  %v4597_v6 = vmul.f32 0.01, %v4527_v48 }
 0x67f   : > { %vm4536_vm9 = vcmp.ge.f32.partialorder %v4382_v26, 0.0  ;;  %v4568_v62 = vmul.f32 0.01, %v4382_v26  ;;  %v4630_v53 = vsel %vm4566_vm8, %v4532_v55, %v4598_v24 }
 0x680   : > { %vm4535_vm11 = vcmp.ge.f32.partialorder %v4377_v7, 0.0  ;;  %v4567_v39 = vmul.f32 0.01, %v4377_v7  ;;  %4662 = vst.msk [vmem:[%s7103_s28 + $0xf8] sm:$0xff] %vm2445_vm13, %v4630_v53  ;;  %v4629_v54 = vsel %vm4565_vm10, %v4527_v48, %v4597_v6 }
 0x681   : > { %v4600_v28 = vsel %vm4536_vm9, %v4382_v26, %v4568_v62  ;;  %4661 = vst.msk [vmem:[%s7103_s28 + $0xf0] sm:$0xff] %vm2445_vm13, %v4629_v54 }
 0x682   : > { %4632 = vst.msk [vmem:[%s7103_s28 + $0x8] sm:$0xff] %vm2445_vm13, %v4600_v28  ;;  %v4599_v59 = vsel %vm4535_vm11, %v4377_v7, %v4567_v39 }
 0x683   : > { %4631 = vst.msk [vmem:[%s7103_s28] sm:$0xff] %vm2445_vm13, %v4599_v59 }
 0x684 PF: > { %s15_s18 = sadd.s32 1, %s5061_s18  }
 0x685   : > { %p12_p4 = scmp.ge.s32.totalorder %s15_s18, 4  }
 0x687   :  { %14 = sbr.rel (!%p12_p4) target bundleno = 1 (0x1), region = 76 }

</bundles_post_ra>
